<compile_context>
chip_gen: v7x
topology: tpu7x:2x2x1
jax: 0.10.0
libtpu: 0.0.40
codegen_flags: <defaults>
</compile_context>

<pallas_src>
import functools

import jax
import jax.numpy as jnp
from jax.experimental import pallas as pl
from jax.experimental.pallas import tpu as pltpu

EPS = 1e-5
MATMUL_DTYPE = jnp.bfloat16   # MXU-native; set to jnp.float32 for tighter numerics


# ------------------------------ Pallas kernel ------------------------------- #

def _memory_block_kernel(x_ref, ys_ref, mask_ref,
                         rgamma_ref, rbeta_ref, rw_ref,
                         ggamma_ref, gbeta_ref, gw_ref,
                         o_ref, halo_ref, *,
                         num_resblock, num_memblock, W, C, pad):
    NHW = x_ref.shape[1]

    # Zero ONLY the halo borders; the interior is fully overwritten by every
    # conv, and the zero borders act as the conv's zero padding.
    halo_ref[:, 0:pad] = jnp.zeros((C, pad), halo_ref.dtype)
    halo_ref[:, pad + NHW:pad + NHW + pad] = jnp.zeros((C, pad), halo_ref.dtype)

    inv_nhw = 1.0 / NHW

    def bn_relu(h, gamma, beta):
        # Training-mode BatchNorm2d, one-pass batch stats over (N,H,W) == lanes:
        # var = E[x^2] - mean^2 (single read of h, two XLU reductions, no
        # centered-subtract pass).  rsqrt goes to the EUP (free slot).
        mean = jnp.sum(h, axis=1, keepdims=True) * inv_nhw           # (C, 1)
        ex2 = jnp.sum(h * h, axis=1, keepdims=True) * inv_nhw        # (C, 1)
        var = ex2 - mean * mean
        scale = gamma * jax.lax.rsqrt(var + EPS)
        shift = beta - mean * scale
        return jnp.maximum(h * scale + shift, 0.0)

    def conv3x3(a, r, j):
        # Direct-accumulate 3x3 conv (pad=1, stride=1): 9 small (C,C)@(C,NHW)
        # MXU pushes on masked shifted windows of the zero-halo'ed flat buffer.
        # f32 accumulation; operands cast to bf16 at the matmul.
        halo_ref[:, pad:pad + NHW] = a                 # lane-aligned interior store
        widx = (r * 2 + j) * 9
        # center tap: mask is all ones -> straight use of `a`, no halo re-read.
        acc = jnp.dot(rw_ref[widx + 4], a.astype(MATMUL_DTYPE),
                      preferred_element_type=jnp.float32)
        for t in range(9):
            if t == 4:
                continue
            dy, dx = t // 3, t % 3
            off = (dy - 1) * W + (dx - 1)
            win = halo_ref[:, pad + off:pad + off + NHW]     # shifted window
            tap = (win * mask_ref[t]).astype(MATMUL_DTYPE)   # f32 mask mul, bf16 op
            acc = acc + jnp.dot(rw_ref[widx + t], tap,
                                preferred_element_type=jnp.float32)
        return acc

    # ---- recursive unit: num_resblock residual blocks ----------------------
    h = x_ref[...]
    xs = []
    for r in range(num_resblock):
        a1 = bn_relu(h, rgamma_ref[r, 0], rbeta_ref[r, 0])
        c1 = conv3x3(a1, r, 0)
        a2 = bn_relu(c1, rgamma_ref[r, 1], rbeta_ref[r, 1])
        c2 = conv3x3(a2, r, 1)
        h = c2 + h
        xs.append(h)

    # ---- gate unit: concat-free -------------------------------------------
    # BN over the concatenated channels equals per-source BN (stats never mix
    # channels), and the 1x1 conv over the concat equals a sum of per-source
    # (C,C)@(C,NHW) matmuls accumulated directly into the output.
    sources = xs + [ys_ref[s] for s in range(num_memblock)]
    gate = None
    for s, src in enumerate(sources):
        act = bn_relu(src, ggamma_ref[s], gbeta_ref[s]).astype(MATMUL_DTYPE)
        part = jnp.dot(gw_ref[s], act, preferred_element_type=jnp.float32)
        gate = part if gate is None else gate + part
    o_ref[...] = gate


# ------------------------------- JAX wrappers -------------------------------- #

def _to_cm(x):
    """(N, C, H, W) -> (C, N*H*W): channels on sublanes, spatial on lanes."""
    n, c, h, w = x.shape
    return jnp.transpose(x, (1, 0, 2, 3)).reshape(c, n * h * w)


def _from_cm(x_cm, n, h, w):
    c = x_cm.shape[0]
    return jnp.transpose(x_cm.reshape(c, n, h, w), (1, 0, 2, 3))


def _tap_masks(n, h, w):
    """(9, N*H*W) validity masks for the 9 taps of a 3x3 / pad=1 conv."""
    hh = jnp.arange(h)
    ww = jnp.arange(w)
    rows = []
    for dy in range(3):
        for dx in range(3):
            vh = ((hh + dy - 1) >= 0) & ((hh + dy - 1) < h)
            vw = ((ww + dx - 1) >= 0) & ((ww + dx - 1) < w)
            m = (vh[:, None] & vw[None, :]).astype(jnp.float32).reshape(-1)
            rows.append(jnp.tile(m, (n,)))
    return jnp.stack(rows, axis=0)


@jax.jit
def _memory_block_fwd(x, ys, params):
    """x: (N,C,H,W); ys: tuple of (N,C,H,W). Returns gate_out (N,C,H,W)."""
    N, C, H, W = x.shape
    M = len(ys)
    R = params["rb_w"].shape[0]
    NHW = N * H * W
    n_src = R + M
    ctot = n_src * C
    pad = ((W + 1 + 127) // 128) * 128      # halo width, rounded to a lane tile

    x_cm = _to_cm(x)
    ys_cm = jnp.stack([_to_cm(y) for y in ys], axis=0)
    # Pre-broadcast tap masks to (9, C, NHW) once (wrapper plumbing), so the
    # sublane broadcast is not re-emitted per tap per conv inside the kernel.
    masks = jnp.broadcast_to(_tap_masks(N, H, W)[:, None, :], (9, C, NHW))

    # conv weights OIHW -> (R*2*9, Cout, Cin), tap index t = kh*3 + kw
    rw = jnp.transpose(params["rb_w"], (0, 1, 4, 5, 2, 3)).reshape(R * 2 * 9, C, C)
    rw = rw.astype(MATMUL_DTYPE)
    # gate 1x1 weight (Cout, ctot, 1, 1) -> per-source (n_src, Cout, Cin)
    gw = jnp.transpose(params["gate_w"].reshape(C, n_src, C), (1, 0, 2))
    gw = gw.astype(MATMUL_DTYPE)
    rgamma = params["rb_gamma"].reshape(R, 2, C, 1)
    rbeta = params["rb_beta"].reshape(R, 2, C, 1)
    ggamma = params["gate_gamma"].reshape(n_src, C, 1)
    gbeta = params["gate_beta"].reshape(n_src, C, 1)

    # Advisory cost estimate: 2R 3x3 convs + the 1x1 gate, plus BN/ReLU VPU work.
    flops = (2 * (2 * R) * C * (9 * C) * NHW          # residual-block convs
             + 2 * C * ctot * NHW                     # gate 1x1
             + (2 * 2 * R + n_src) * 8 * C * NHW)     # BN + ReLU elementwise (rough)
    transcendentals = (2 * 2 * R + n_src) * C         # rsqrt per BN channel
    bytes_accessed = (4 * C * NHW * (2 + M)           # x, out, ys
                      + 4 * masks.size
                      + 2 * (rw.size + gw.size)
                      + 4 * (rgamma.size + rbeta.size + ggamma.size + gbeta.size))

    kernel = functools.partial(_memory_block_kernel,
                               num_resblock=R, num_memblock=M,
                               W=W, C=C, pad=pad)
    vmem = pl.BlockSpec(memory_space=pltpu.MemorySpace.VMEM)
    out_cm = pl.pallas_call(
        kernel,
        out_shape=jax.ShapeDtypeStruct((C, NHW), jnp.float32),
        in_specs=[vmem] * 9,
        out_specs=vmem,
        scratch_shapes=[
            pltpu.VMEM((C, NHW + 2 * pad), jnp.float32),   # zero-border halo buffer
        ],
        cost_estimate=pl.CostEstimate(flops=flops,
                                      transcendentals=transcendentals,
                                      bytes_accessed=bytes_accessed),
        compiler_params=pltpu.CompilerParams(vmem_limit_bytes=32 * 1024 * 1024),
    )(x_cm, ys_cm, masks, rgamma, rbeta, rw, ggamma, gbeta, gw)
    return _from_cm(out_cm, N, H, W)


def memory_block(x, ys, params):
    """Mirrors MemoryBlock.forward(x, ys): returns gate_out and appends it to ys."""
    gate_out = _memory_block_fwd(x, tuple(ys), params)
    ys.append(gate_out)
    return gate_out


# ---------------------------- pure-JAX reference ----------------------------- #

def _bn_relu_ref(h, gamma, beta):
    mean = jnp.mean(h, axis=(0, 2, 3), keepdims=True)
    var = jnp.mean(jnp.square(h - mean), axis=(0, 2, 3), keepdims=True)
    hn = (h - mean) * jax.lax.rsqrt(var + EPS)
    return jnp.maximum(hn * gamma.reshape(1, -1, 1, 1) + beta.reshape(1, -1, 1, 1), 0.0)


def _conv_ref(h, w, p):
    return jax.lax.conv_general_dilated(
        h, w, window_strides=(1, 1), padding=[(p, p), (p, p)],
        dimension_numbers=("NCHW", "OIHW", "NCHW"))


def _memory_block_ref(x, ys, params):
    R = params["rb_w"].shape[0]
    xs = []
    h = x
    for r in range(R):
        a1 = _bn_relu_ref(h, params["rb_gamma"][r, 0], params["rb_beta"][r, 0])
        c1 = _conv_ref(a1, params["rb_w"][r, 0], 1)
        a2 = _bn_relu_ref(c1, params["rb_gamma"][r, 1], params["rb_beta"][r, 1])
        c2 = _conv_ref(a2, params["rb_w"][r, 1], 1)
        h = c2 + h
        xs.append(h)
    cat = jnp.concatenate(xs + list(ys), axis=1)
    ga = _bn_relu_ref(cat, params["gate_gamma"], params["gate_beta"])
    return _conv_ref(ga, params["gate_w"], 0)


# ------------------------------ parameter init ------------------------------- #

def init_params(key, channels, num_resblock, num_memblock):
    k1, kg = jax.random.split(key)
    ctot = (num_resblock + num_memblock) * channels
    return dict(
        rb_gamma=jnp.ones((num_resblock, 2, channels), jnp.float32),
        rb_beta=jnp.zeros((num_resblock, 2, channels), jnp.float32),
        rb_w=0.1 * jax.random.normal(
            k1, (num_resblock, 2, channels, channels, 3, 3), jnp.float32),  # OIHW
        gate_gamma=jnp.ones((ctot,), jnp.float32),
        gate_beta=jnp.zeros((ctot,), jnp.float32),
        gate_w=0.1 * jax.random.normal(kg, (channels, ctot, 1, 1), jnp.float32),
    )


# ----------------------------------- main ------------------------------------ #

if __name__ == "__main__":
    N, C, H, W = 2, 4, 16, 16
    num_resblock, num_memblock = 2, 2

    key = jax.random.PRNGKey(0)
    kx, ky1, ky2, kp = jax.random.split(key, 4)

    x = jax.random.normal(kx, (N, C, H, W), jnp.float32)          # NCHW, like PyTorch
    ys = [jax.random.normal(ky1, (N, C, H, W), jnp.float32),
          jax.random.normal(ky2, (N, C, H, W), jnp.float32)]      # len(ys) == num_memblock
    params = init_params(kp, C, num_resblock, num_memblock)

    ref = _memory_block_ref(x, list(ys), params)   # computed before ys is mutated

    gate_out = memory_block(x, ys, params)
    gate_out = jax.block_until_ready(gate_out)

    assert gate_out.shape == (N, C, H, W)
    assert gate_out.dtype == jnp.float32
    assert len(ys) == num_memblock + 1             # forward appends gate_out to ys
    assert bool(jnp.all(jnp.isfinite(gate_out)))
    # loose tolerance: matmul operands are bf16 on the MXU (f32 accumulation)
    assert bool(jnp.allclose(gate_out, ref, rtol=5e-2, atol=5e-2)), \
        float(jnp.max(jnp.abs(gate_out - ref)))
    print("KERNEL_OK")
</pallas_src>

<mosaic_0001>
module attributes {stable_mosaic.version = 11 : i64} {
  func.func @_memory_block_kernel(%arg0: memref<4x512xf32, #tpu.memory_space<vmem>>, %arg1: memref<2x4x512xf32, #tpu.memory_space<vmem>>, %arg2: memref<9x4x512xf32, #tpu.memory_space<vmem>>, %arg3: memref<2x2x4x1xf32, #tpu.memory_space<vmem>>, %arg4: memref<2x2x4x1xf32, #tpu.memory_space<vmem>>, %arg5: memref<36x4x4xbf16, #tpu.memory_space<vmem>>, %arg6: memref<4x4x1xf32, #tpu.memory_space<vmem>>, %arg7: memref<4x4x1xf32, #tpu.memory_space<vmem>>, %arg8: memref<4x4x4xbf16, #tpu.memory_space<vmem>>, %arg9: memref<4x512xf32, #tpu.memory_space<vmem>>, %arg10: memref<4x768xf32, #tpu.memory_space<vmem>>) attributes {dimension_semantics = [], scalar_prefetch = 0 : i64, scratch_operands = 1 : i64, tpu.core_type = #tpu.core_type<tc>} {
    %cst = arith.constant 0.000000e+00 : f32
    %0 = vector.broadcast %cst : f32 to vector<4x128xf32>
    %c0 = arith.constant 0 : index
    %c0_0 = arith.constant 0 : index
    %1 = vector.load %arg10[%c0, %c0_0] : memref<4x768xf32, #tpu.memory_space<vmem>>, vector<4x128xf32>
    tpu.vector_store %arg10[%c0, %c0_0], %0 {strides = array<i32>} : memref<4x768xf32, #tpu.memory_space<vmem>>, vector<4x128xf32>,
    %cst_1 = arith.constant 0.000000e+00 : f32
    %2 = vector.broadcast %cst_1 : f32 to vector<4x128xf32>
    %c0_2 = arith.constant 0 : index
    %c640 = arith.constant 640 : index
    %3 = vector.load %arg10[%c0_2, %c640] : memref<4x768xf32, #tpu.memory_space<vmem>>, vector<4x128xf32>
    tpu.vector_store %arg10[%c0_2, %c640], %2 {strides = array<i32>} : memref<4x768xf32, #tpu.memory_space<vmem>>, vector<4x128xf32>,
    %c0_3 = arith.constant 0 : index
    %c0_4 = arith.constant 0 : index
    %4 = vector.load %arg0[%c0_3, %c0_4] : memref<4x512xf32, #tpu.memory_space<vmem>>, vector<4x512xf32>
    %c0_5 = arith.constant 0 : index
    %c0_6 = arith.constant 0 : index
    %c0_7 = arith.constant 0 : index
    %c0_8 = arith.constant 0 : index
    %5 = vector.load %arg3[%c0_5, %c0_6, %c0_7, %c0_8] : memref<2x2x4x1xf32, #tpu.memory_space<vmem>>, vector<1x1x4x1xf32>
    %6 = vector.shape_cast %5 : vector<1x1x4x1xf32> to vector<4x1xf32>
    %c0_9 = arith.constant 0 : index
    %c0_10 = arith.constant 0 : index
    %c0_11 = arith.constant 0 : index
    %c0_12 = arith.constant 0 : index
    %7 = vector.load %arg4[%c0_9, %c0_10, %c0_11, %c0_12] : memref<2x2x4x1xf32, #tpu.memory_space<vmem>>, vector<1x1x4x1xf32>
    %8 = vector.shape_cast %7 : vector<1x1x4x1xf32> to vector<4x1xf32>
    %cst_13 = arith.constant dense<0.000000e+00> : vector<4xf32>
    %9 = vector.multi_reduction <add>, %4, %cst_13 [1] : vector<4x512xf32> to vector<4xf32>
    %10 = vector.shape_cast %9 : vector<4xf32> to vector<4x1xf32>
    %cst_14 = arith.constant 0.001953125 : f32
    %11 = vector.broadcast %cst_14 : f32 to vector<4x1xf32>
    %12 = arith.mulf %10, %11 : vector<4x1xf32>
    %13 = arith.mulf %4, %4 : vector<4x512xf32>
    %cst_15 = arith.constant dense<0.000000e+00> : vector<4xf32>
    %14 = vector.multi_reduction <add>, %13, %cst_15 [1] : vector<4x512xf32> to vector<4xf32>
    %15 = vector.shape_cast %14 : vector<4xf32> to vector<4x1xf32>
    %cst_16 = arith.constant 0.001953125 : f32
    %16 = vector.broadcast %cst_16 : f32 to vector<4x1xf32>
    %17 = arith.mulf %15, %16 : vector<4x1xf32>
    %18 = arith.mulf %12, %12 : vector<4x1xf32>
    %19 = arith.subf %17, %18 : vector<4x1xf32>
    %cst_17 = arith.constant 9.99999974E-6 : f32
    %20 = vector.broadcast %cst_17 : f32 to vector<4x1xf32>
    %21 = arith.addf %19, %20 : vector<4x1xf32>
    %22 = math.rsqrt %21 : vector<4x1xf32>
    %23 = arith.mulf %6, %22 : vector<4x1xf32>
    %24 = arith.mulf %12, %23 : vector<4x1xf32>
    %25 = arith.subf %8, %24 : vector<4x1xf32>
    %26 = vector.broadcast %23 : vector<4x1xf32> to vector<4x512xf32>
    %27 = arith.mulf %4, %26 : vector<4x512xf32>
    %28 = vector.broadcast %25 : vector<4x1xf32> to vector<4x512xf32>
    %29 = arith.addf %27, %28 : vector<4x512xf32>
    %cst_18 = arith.constant 0.000000e+00 : f32
    %30 = vector.broadcast %cst_18 : f32 to vector<4x512xf32>
    %31 = arith.maximumf %29, %30 : vector<4x512xf32>
    %c0_19 = arith.constant 0 : index
    %c128 = arith.constant 128 : index
    %32 = vector.load %arg10[%c0_19, %c128] : memref<4x768xf32, #tpu.memory_space<vmem>>, vector<4x512xf32>
    tpu.vector_store %arg10[%c0_19, %c128], %31 {strides = array<i32>} : memref<4x768xf32, #tpu.memory_space<vmem>>, vector<4x512xf32>,
    %c4 = arith.constant 4 : index
    %c0_20 = arith.constant 0 : index
    %c0_21 = arith.constant 0 : index
    %33 = vector.load %arg5[%c4, %c0_20, %c0_21] : memref<36x4x4xbf16, #tpu.memory_space<vmem>>, vector<1x4x4xbf16>
    %34 = vector.shape_cast %33 : vector<1x4x4xbf16> to vector<4x4xbf16>
    %35 = arith.truncf %31 : vector<4x512xf32> to vector<4x512xbf16>
    %cst_22 = arith.constant dense<0.000000e+00> : vector<4x512xf32>
    %36 = tpu.matmul %34, %35, %cst_22 {dimension_numbers = #tpu.dot_dimension_numbers<[1], [0], [0], [1], [0, 0, 1, 1], [], []>} : vector<4x4xbf16>, vector<4x512xbf16>, vector<4x512xf32> -> vector<4x512xf32>
    %c0_23 = arith.constant 0 : index
    %c111 = arith.constant 111 : index
    %37 = vector.load %arg10[%c0_23, %c111] : memref<4x768xf32, #tpu.memory_space<vmem>>, vector<4x512xf32>
    %c0_24 = arith.constant 0 : index
    %c0_25 = arith.constant 0 : index
    %c0_26 = arith.constant 0 : index
    %38 = vector.load %arg2[%c0_24, %c0_25, %c0_26] : memref<9x4x512xf32, #tpu.memory_space<vmem>>, vector<1x4x512xf32>
    %39 = vector.shape_cast %38 : vector<1x4x512xf32> to vector<4x512xf32>
    %40 = arith.mulf %37, %39 : vector<4x512xf32>
    %41 = arith.truncf %40 : vector<4x512xf32> to vector<4x512xbf16>
    %c0_27 = arith.constant 0 : index
    %c0_28 = arith.constant 0 : index
    %c0_29 = arith.constant 0 : index
    %42 = vector.load %arg5[%c0_27, %c0_28, %c0_29] : memref<36x4x4xbf16, #tpu.memory_space<vmem>>, vector<1x4x4xbf16>
    %43 = vector.shape_cast %42 : vector<1x4x4xbf16> to vector<4x4xbf16>
    %cst_30 = arith.constant dense<0.000000e+00> : vector<4x512xf32>
    %44 = tpu.matmul %43, %41, %cst_30 {dimension_numbers = #tpu.dot_dimension_numbers<[1], [0], [0], [1], [0, 0, 1, 1], [], []>} : vector<4x4xbf16>, vector<4x512xbf16>, vector<4x512xf32> -> vector<4x512xf32>
    %45 = arith.addf %36, %44 : vector<4x512xf32>
    %c0_31 = arith.constant 0 : index
    %c112 = arith.constant 112 : index
    %46 = vector.load %arg10[%c0_31, %c112] : memref<4x768xf32, #tpu.memory_space<vmem>>, vector<4x512xf32>
    %c1 = arith.constant 1 : index
    %c0_32 = arith.constant 0 : index
    %c0_33 = arith.constant 0 : index
    %47 = vector.load %arg2[%c1, %c0_32, %c0_33] : memref<9x4x512xf32, #tpu.memory_space<vmem>>, vector<1x4x512xf32>
    %48 = vector.shape_cast %47 : vector<1x4x512xf32> to vector<4x512xf32>
    %49 = arith.mulf %46, %48 : vector<4x512xf32>
    %50 = arith.truncf %49 : vector<4x512xf32> to vector<4x512xbf16>
    %c1_34 = arith.constant 1 : index
    %c0_35 = arith.constant 0 : index
    %c0_36 = arith.constant 0 : index
    %51 = vector.load %arg5[%c1_34, %c0_35, %c0_36] : memref<36x4x4xbf16, #tpu.memory_space<vmem>>, vector<1x4x4xbf16>
    %52 = vector.shape_cast %51 : vector<1x4x4xbf16> to vector<4x4xbf16>
    %cst_37 = arith.constant dense<0.000000e+00> : vector<4x512xf32>
    %53 = tpu.matmul %52, %50, %cst_37 {dimension_numbers = #tpu.dot_dimension_numbers<[1], [0], [0], [1], [0, 0, 1, 1], [], []>} : vector<4x4xbf16>, vector<4x512xbf16>, vector<4x512xf32> -> vector<4x512xf32>
    %54 = arith.addf %45, %53 : vector<4x512xf32>
    %c0_38 = arith.constant 0 : index
    %c113 = arith.constant 113 : index
    %55 = vector.load %arg10[%c0_38, %c113] : memref<4x768xf32, #tpu.memory_space<vmem>>, vector<4x512xf32>
    %c2 = arith.constant 2 : index
    %c0_39 = arith.constant 0 : index
    %c0_40 = arith.constant 0 : index
    %56 = vector.load %arg2[%c2, %c0_39, %c0_40] : memref<9x4x512xf32, #tpu.memory_space<vmem>>, vector<1x4x512xf32>
    %57 = vector.shape_cast %56 : vector<1x4x512xf32> to vector<4x512xf32>
    %58 = arith.mulf %55, %57 : vector<4x512xf32>
    %59 = arith.truncf %58 : vector<4x512xf32> to vector<4x512xbf16>
    %c2_41 = arith.constant 2 : index
    %c0_42 = arith.constant 0 : index
    %c0_43 = arith.constant 0 : index
    %60 = vector.load %arg5[%c2_41, %c0_42, %c0_43] : memref<36x4x4xbf16, #tpu.memory_space<vmem>>, vector<1x4x4xbf16>
    %61 = vector.shape_cast %60 : vector<1x4x4xbf16> to vector<4x4xbf16>
    %cst_44 = arith.constant dense<0.000000e+00> : vector<4x512xf32>
    %62 = tpu.matmul %61, %59, %cst_44 {dimension_numbers = #tpu.dot_dimension_numbers<[1], [0], [0], [1], [0, 0, 1, 1], [], []>} : vector<4x4xbf16>, vector<4x512xbf16>, vector<4x512xf32> -> vector<4x512xf32>
    %63 = arith.addf %54, %62 : vector<4x512xf32>
    %c0_45 = arith.constant 0 : index
    %c127 = arith.constant 127 : index
    %64 = vector.load %arg10[%c0_45, %c127] : memref<4x768xf32, #tpu.memory_space<vmem>>, vector<4x512xf32>
    %c3 = arith.constant 3 : index
    %c0_46 = arith.constant 0 : index
    %c0_47 = arith.constant 0 : index
    %65 = vector.load %arg2[%c3, %c0_46, %c0_47] : memref<9x4x512xf32, #tpu.memory_space<vmem>>, vector<1x4x512xf32>
    %66 = vector.shape_cast %65 : vector<1x4x512xf32> to vector<4x512xf32>
    %67 = arith.mulf %64, %66 : vector<4x512xf32>
    %68 = arith.truncf %67 : vector<4x512xf32> to vector<4x512xbf16>
    %c3_48 = arith.constant 3 : index
    %c0_49 = arith.constant 0 : index
    %c0_50 = arith.constant 0 : index
    %69 = vector.load %arg5[%c3_48, %c0_49, %c0_50] : memref<36x4x4xbf16, #tpu.memory_space<vmem>>, vector<1x4x4xbf16>
    %70 = vector.shape_cast %69 : vector<1x4x4xbf16> to vector<4x4xbf16>
    %cst_51 = arith.constant dense<0.000000e+00> : vector<4x512xf32>
    %71 = tpu.matmul %70, %68, %cst_51 {dimension_numbers = #tpu.dot_dimension_numbers<[1], [0], [0], [1], [0, 0, 1, 1], [], []>} : vector<4x4xbf16>, vector<4x512xbf16>, vector<4x512xf32> -> vector<4x512xf32>
    %72 = arith.addf %63, %71 : vector<4x512xf32>
    %c0_52 = arith.constant 0 : index
    %c129 = arith.constant 129 : index
    %73 = vector.load %arg10[%c0_52, %c129] : memref<4x768xf32, #tpu.memory_space<vmem>>, vector<4x512xf32>
    %c5 = arith.constant 5 : index
    %c0_53 = arith.constant 0 : index
    %c0_54 = arith.constant 0 : index
    %74 = vector.load %arg2[%c5, %c0_53, %c0_54] : memref<9x4x512xf32, #tpu.memory_space<vmem>>, vector<1x4x512xf32>
    %75 = vector.shape_cast %74 : vector<1x4x512xf32> to vector<4x512xf32>
    %76 = arith.mulf %73, %75 : vector<4x512xf32>
    %77 = arith.truncf %76 : vector<4x512xf32> to vector<4x512xbf16>
    %c5_55 = arith.constant 5 : index
    %c0_56 = arith.constant 0 : index
    %c0_57 = arith.constant 0 : index
    %78 = vector.load %arg5[%c5_55, %c0_56, %c0_57] : memref<36x4x4xbf16, #tpu.memory_space<vmem>>, vector<1x4x4xbf16>
    %79 = vector.shape_cast %78 : vector<1x4x4xbf16> to vector<4x4xbf16>
    %cst_58 = arith.constant dense<0.000000e+00> : vector<4x512xf32>
    %80 = tpu.matmul %79, %77, %cst_58 {dimension_numbers = #tpu.dot_dimension_numbers<[1], [0], [0], [1], [0, 0, 1, 1], [], []>} : vector<4x4xbf16>, vector<4x512xbf16>, vector<4x512xf32> -> vector<4x512xf32>
    %81 = arith.addf %72, %80 : vector<4x512xf32>
    %c0_59 = arith.constant 0 : index
    %c143 = arith.constant 143 : index
    %82 = vector.load %arg10[%c0_59, %c143] : memref<4x768xf32, #tpu.memory_space<vmem>>, vector<4x512xf32>
    %c6 = arith.constant 6 : index
    %c0_60 = arith.constant 0 : index
    %c0_61 = arith.constant 0 : index
    %83 = vector.load %arg2[%c6, %c0_60, %c0_61] : memref<9x4x512xf32, #tpu.memory_space<vmem>>, vector<1x4x512xf32>
    %84 = vector.shape_cast %83 : vector<1x4x512xf32> to vector<4x512xf32>
    %85 = arith.mulf %82, %84 : vector<4x512xf32>
    %86 = arith.truncf %85 : vector<4x512xf32> to vector<4x512xbf16>
    %c6_62 = arith.constant 6 : index
    %c0_63 = arith.constant 0 : index
    %c0_64 = arith.constant 0 : index
    %87 = vector.load %arg5[%c6_62, %c0_63, %c0_64] : memref<36x4x4xbf16, #tpu.memory_space<vmem>>, vector<1x4x4xbf16>
    %88 = vector.shape_cast %87 : vector<1x4x4xbf16> to vector<4x4xbf16>
    %cst_65 = arith.constant dense<0.000000e+00> : vector<4x512xf32>
    %89 = tpu.matmul %88, %86, %cst_65 {dimension_numbers = #tpu.dot_dimension_numbers<[1], [0], [0], [1], [0, 0, 1, 1], [], []>} : vector<4x4xbf16>, vector<4x512xbf16>, vector<4x512xf32> -> vector<4x512xf32>
    %90 = arith.addf %81, %89 : vector<4x512xf32>
    %c0_66 = arith.constant 0 : index
    %c144 = arith.constant 144 : index
    %91 = vector.load %arg10[%c0_66, %c144] : memref<4x768xf32, #tpu.memory_space<vmem>>, vector<4x512xf32>
    %c7 = arith.constant 7 : index
    %c0_67 = arith.constant 0 : index
    %c0_68 = arith.constant 0 : index
    %92 = vector.load %arg2[%c7, %c0_67, %c0_68] : memref<9x4x512xf32, #tpu.memory_space<vmem>>, vector<1x4x512xf32>
    %93 = vector.shape_cast %92 : vector<1x4x512xf32> to vector<4x512xf32>
    %94 = arith.mulf %91, %93 : vector<4x512xf32>
    %95 = arith.truncf %94 : vector<4x512xf32> to vector<4x512xbf16>
    %c7_69 = arith.constant 7 : index
    %c0_70 = arith.constant 0 : index
    %c0_71 = arith.constant 0 : index
    %96 = vector.load %arg5[%c7_69, %c0_70, %c0_71] : memref<36x4x4xbf16, #tpu.memory_space<vmem>>, vector<1x4x4xbf16>
    %97 = vector.shape_cast %96 : vector<1x4x4xbf16> to vector<4x4xbf16>
    %cst_72 = arith.constant dense<0.000000e+00> : vector<4x512xf32>
    %98 = tpu.matmul %97, %95, %cst_72 {dimension_numbers = #tpu.dot_dimension_numbers<[1], [0], [0], [1], [0, 0, 1, 1], [], []>} : vector<4x4xbf16>, vector<4x512xbf16>, vector<4x512xf32> -> vector<4x512xf32>
    %99 = arith.addf %90, %98 : vector<4x512xf32>
    %c0_73 = arith.constant 0 : index
    %c145 = arith.constant 145 : index
    %100 = vector.load %arg10[%c0_73, %c145] : memref<4x768xf32, #tpu.memory_space<vmem>>, vector<4x512xf32>
    %c8 = arith.constant 8 : index
    %c0_74 = arith.constant 0 : index
    %c0_75 = arith.constant 0 : index
    %101 = vector.load %arg2[%c8, %c0_74, %c0_75] : memref<9x4x512xf32, #tpu.memory_space<vmem>>, vector<1x4x512xf32>
    %102 = vector.shape_cast %101 : vector<1x4x512xf32> to vector<4x512xf32>
    %103 = arith.mulf %100, %102 : vector<4x512xf32>
    %104 = arith.truncf %103 : vector<4x512xf32> to vector<4x512xbf16>
    %c8_76 = arith.constant 8 : index
    %c0_77 = arith.constant 0 : index
    %c0_78 = arith.constant 0 : index
    %105 = vector.load %arg5[%c8_76, %c0_77, %c0_78] : memref<36x4x4xbf16, #tpu.memory_space<vmem>>, vector<1x4x4xbf16>
    %106 = vector.shape_cast %105 : vector<1x4x4xbf16> to vector<4x4xbf16>
    %cst_79 = arith.constant dense<0.000000e+00> : vector<4x512xf32>
    %107 = tpu.matmul %106, %104, %cst_79 {dimension_numbers = #tpu.dot_dimension_numbers<[1], [0], [0], [1], [0, 0, 1, 1], [], []>} : vector<4x4xbf16>, vector<4x512xbf16>, vector<4x512xf32> -> vector<4x512xf32>
    %108 = arith.addf %99, %107 : vector<4x512xf32>
    %c0_80 = arith.constant 0 : index
    %c1_81 = arith.constant 1 : index
    %c0_82 = arith.constant 0 : index
    %c0_83 = arith.constant 0 : index
    %109 = vector.load %arg3[%c0_80, %c1_81, %c0_82, %c0_83] : memref<2x2x4x1xf32, #tpu.memory_space<vmem>>, vector<1x1x4x1xf32>
    %110 = vector.shape_cast %109 : vector<1x1x4x1xf32> to vector<4x1xf32>
    %c0_84 = arith.constant 0 : index
    %c1_85 = arith.constant 1 : index
    %c0_86 = arith.constant 0 : index
    %c0_87 = arith.constant 0 : index
    %111 = vector.load %arg4[%c0_84, %c1_85, %c0_86, %c0_87] : memref<2x2x4x1xf32, #tpu.memory_space<vmem>>, vector<1x1x4x1xf32>
    %112 = vector.shape_cast %111 : vector<1x1x4x1xf32> to vector<4x1xf32>
    %cst_88 = arith.constant dense<0.000000e+00> : vector<4xf32>
    %113 = vector.multi_reduction <add>, %108, %cst_88 [1] : vector<4x512xf32> to vector<4xf32>
    %114 = vector.shape_cast %113 : vector<4xf32> to vector<4x1xf32>
    %cst_89 = arith.constant 0.001953125 : f32
    %115 = vector.broadcast %cst_89 : f32 to vector<4x1xf32>
    %116 = arith.mulf %114, %115 : vector<4x1xf32>
    %117 = arith.mulf %108, %108 : vector<4x512xf32>
    %cst_90 = arith.constant dense<0.000000e+00> : vector<4xf32>
    %118 = vector.multi_reduction <add>, %117, %cst_90 [1] : vector<4x512xf32> to vector<4xf32>
    %119 = vector.shape_cast %118 : vector<4xf32> to vector<4x1xf32>
    %cst_91 = arith.constant 0.001953125 : f32
    %120 = vector.broadcast %cst_91 : f32 to vector<4x1xf32>
    %121 = arith.mulf %119, %120 : vector<4x1xf32>
    %122 = arith.mulf %116, %116 : vector<4x1xf32>
    %123 = arith.subf %121, %122 : vector<4x1xf32>
    %cst_92 = arith.constant 9.99999974E-6 : f32
    %124 = vector.broadcast %cst_92 : f32 to vector<4x1xf32>
    %125 = arith.addf %123, %124 : vector<4x1xf32>
    %126 = math.rsqrt %125 : vector<4x1xf32>
    %127 = arith.mulf %110, %126 : vector<4x1xf32>
    %128 = arith.mulf %116, %127 : vector<4x1xf32>
    %129 = arith.subf %112, %128 : vector<4x1xf32>
    %130 = vector.broadcast %127 : vector<4x1xf32> to vector<4x512xf32>
    %131 = arith.mulf %108, %130 : vector<4x512xf32>
    %132 = vector.broadcast %129 : vector<4x1xf32> to vector<4x512xf32>
    %133 = arith.addf %131, %132 : vector<4x512xf32>
    %cst_93 = arith.constant 0.000000e+00 : f32
    %134 = vector.broadcast %cst_93 : f32 to vector<4x512xf32>
    %135 = arith.maximumf %133, %134 : vector<4x512xf32>
    %c0_94 = arith.constant 0 : index
    %c128_95 = arith.constant 128 : index
    %136 = vector.load %arg10[%c0_94, %c128_95] : memref<4x768xf32, #tpu.memory_space<vmem>>, vector<4x512xf32>
    tpu.vector_store %arg10[%c0_94, %c128_95], %135 {strides = array<i32>} : memref<4x768xf32, #tpu.memory_space<vmem>>, vector<4x512xf32>,
    %c13 = arith.constant 13 : index
    %c0_96 = arith.constant 0 : index
    %c0_97 = arith.constant 0 : index
    %137 = vector.load %arg5[%c13, %c0_96, %c0_97] : memref<36x4x4xbf16, #tpu.memory_space<vmem>>, vector<1x4x4xbf16>
    %138 = vector.shape_cast %137 : vector<1x4x4xbf16> to vector<4x4xbf16>
    %139 = arith.truncf %135 : vector<4x512xf32> to vector<4x512xbf16>
    %cst_98 = arith.constant dense<0.000000e+00> : vector<4x512xf32>
    %140 = tpu.matmul %138, %139, %cst_98 {dimension_numbers = #tpu.dot_dimension_numbers<[1], [0], [0], [1], [0, 0, 1, 1], [], []>} : vector<4x4xbf16>, vector<4x512xbf16>, vector<4x512xf32> -> vector<4x512xf32>
    %c0_99 = arith.constant 0 : index
    %c111_100 = arith.constant 111 : index
    %141 = vector.load %arg10[%c0_99, %c111_100] : memref<4x768xf32, #tpu.memory_space<vmem>>, vector<4x512xf32>
    %c0_101 = arith.constant 0 : index
    %c0_102 = arith.constant 0 : index
    %c0_103 = arith.constant 0 : index
    %142 = vector.load %arg2[%c0_101, %c0_102, %c0_103] : memref<9x4x512xf32, #tpu.memory_space<vmem>>, vector<1x4x512xf32>
    %143 = vector.shape_cast %142 : vector<1x4x512xf32> to vector<4x512xf32>
    %144 = arith.mulf %141, %143 : vector<4x512xf32>
    %145 = arith.truncf %144 : vector<4x512xf32> to vector<4x512xbf16>
    %c9 = arith.constant 9 : index
    %c0_104 = arith.constant 0 : index
    %c0_105 = arith.constant 0 : index
    %146 = vector.load %arg5[%c9, %c0_104, %c0_105] : memref<36x4x4xbf16, #tpu.memory_space<vmem>>, vector<1x4x4xbf16>
    %147 = vector.shape_cast %146 : vector<1x4x4xbf16> to vector<4x4xbf16>
    %cst_106 = arith.constant dense<0.000000e+00> : vector<4x512xf32>
    %148 = tpu.matmul %147, %145, %cst_106 {dimension_numbers = #tpu.dot_dimension_numbers<[1], [0], [0], [1], [0, 0, 1, 1], [], []>} : vector<4x4xbf16>, vector<4x512xbf16>, vector<4x512xf32> -> vector<4x512xf32>
    %149 = arith.addf %140, %148 : vector<4x512xf32>
    %c0_107 = arith.constant 0 : index
    %c112_108 = arith.constant 112 : index
    %150 = vector.load %arg10[%c0_107, %c112_108] : memref<4x768xf32, #tpu.memory_space<vmem>>, vector<4x512xf32>
    %c1_109 = arith.constant 1 : index
    %c0_110 = arith.constant 0 : index
    %c0_111 = arith.constant 0 : index
    %151 = vector.load %arg2[%c1_109, %c0_110, %c0_111] : memref<9x4x512xf32, #tpu.memory_space<vmem>>, vector<1x4x512xf32>
    %152 = vector.shape_cast %151 : vector<1x4x512xf32> to vector<4x512xf32>
    %153 = arith.mulf %150, %152 : vector<4x512xf32>
    %154 = arith.truncf %153 : vector<4x512xf32> to vector<4x512xbf16>
    %c10 = arith.constant 10 : index
    %c0_112 = arith.constant 0 : index
    %c0_113 = arith.constant 0 : index
    %155 = vector.load %arg5[%c10, %c0_112, %c0_113] : memref<36x4x4xbf16, #tpu.memory_space<vmem>>, vector<1x4x4xbf16>
    %156 = vector.shape_cast %155 : vector<1x4x4xbf16> to vector<4x4xbf16>
    %cst_114 = arith.constant dense<0.000000e+00> : vector<4x512xf32>
    %157 = tpu.matmul %156, %154, %cst_114 {dimension_numbers = #tpu.dot_dimension_numbers<[1], [0], [0], [1], [0, 0, 1, 1], [], []>} : vector<4x4xbf16>, vector<4x512xbf16>, vector<4x512xf32> -> vector<4x512xf32>
    %158 = arith.addf %149, %157 : vector<4x512xf32>
    %c0_115 = arith.constant 0 : index
    %c113_116 = arith.constant 113 : index
    %159 = vector.load %arg10[%c0_115, %c113_116] : memref<4x768xf32, #tpu.memory_space<vmem>>, vector<4x512xf32>
    %c2_117 = arith.constant 2 : index
    %c0_118 = arith.constant 0 : index
    %c0_119 = arith.constant 0 : index
    %160 = vector.load %arg2[%c2_117, %c0_118, %c0_119] : memref<9x4x512xf32, #tpu.memory_space<vmem>>, vector<1x4x512xf32>
    %161 = vector.shape_cast %160 : vector<1x4x512xf32> to vector<4x512xf32>
    %162 = arith.mulf %159, %161 : vector<4x512xf32>
    %163 = arith.truncf %162 : vector<4x512xf32> to vector<4x512xbf16>
    %c11 = arith.constant 11 : index
    %c0_120 = arith.constant 0 : index
    %c0_121 = arith.constant 0 : index
    %164 = vector.load %arg5[%c11, %c0_120, %c0_121] : memref<36x4x4xbf16, #tpu.memory_space<vmem>>, vector<1x4x4xbf16>
    %165 = vector.shape_cast %164 : vector<1x4x4xbf16> to vector<4x4xbf16>
    %cst_122 = arith.constant dense<0.000000e+00> : vector<4x512xf32>
    %166 = tpu.matmul %165, %163, %cst_122 {dimension_numbers = #tpu.dot_dimension_numbers<[1], [0], [0], [1], [0, 0, 1, 1], [], []>} : vector<4x4xbf16>, vector<4x512xbf16>, vector<4x512xf32> -> vector<4x512xf32>
    %167 = arith.addf %158, %166 : vector<4x512xf32>
    %c0_123 = arith.constant 0 : index
    %c127_124 = arith.constant 127 : index
    %168 = vector.load %arg10[%c0_123, %c127_124] : memref<4x768xf32, #tpu.memory_space<vmem>>, vector<4x512xf32>
    %c3_125 = arith.constant 3 : index
    %c0_126 = arith.constant 0 : index
    %c0_127 = arith.constant 0 : index
    %169 = vector.load %arg2[%c3_125, %c0_126, %c0_127] : memref<9x4x512xf32, #tpu.memory_space<vmem>>, vector<1x4x512xf32>
    %170 = vector.shape_cast %169 : vector<1x4x512xf32> to vector<4x512xf32>
    %171 = arith.mulf %168, %170 : vector<4x512xf32>
    %172 = arith.truncf %171 : vector<4x512xf32> to vector<4x512xbf16>
    %c12 = arith.constant 12 : index
    %c0_128 = arith.constant 0 : index
    %c0_129 = arith.constant 0 : index
    %173 = vector.load %arg5[%c12, %c0_128, %c0_129] : memref<36x4x4xbf16, #tpu.memory_space<vmem>>, vector<1x4x4xbf16>
    %174 = vector.shape_cast %173 : vector<1x4x4xbf16> to vector<4x4xbf16>
    %cst_130 = arith.constant dense<0.000000e+00> : vector<4x512xf32>
    %175 = tpu.matmul %174, %172, %cst_130 {dimension_numbers = #tpu.dot_dimension_numbers<[1], [0], [0], [1], [0, 0, 1, 1], [], []>} : vector<4x4xbf16>, vector<4x512xbf16>, vector<4x512xf32> -> vector<4x512xf32>
    %176 = arith.addf %167, %175 : vector<4x512xf32>
    %c0_131 = arith.constant 0 : index
    %c129_132 = arith.constant 129 : index
    %177 = vector.load %arg10[%c0_131, %c129_132] : memref<4x768xf32, #tpu.memory_space<vmem>>, vector<4x512xf32>
    %c5_133 = arith.constant 5 : index
    %c0_134 = arith.constant 0 : index
    %c0_135 = arith.constant 0 : index
    %178 = vector.load %arg2[%c5_133, %c0_134, %c0_135] : memref<9x4x512xf32, #tpu.memory_space<vmem>>, vector<1x4x512xf32>
    %179 = vector.shape_cast %178 : vector<1x4x512xf32> to vector<4x512xf32>
    %180 = arith.mulf %177, %179 : vector<4x512xf32>
    %181 = arith.truncf %180 : vector<4x512xf32> to vector<4x512xbf16>
    %c14 = arith.constant 14 : index
    %c0_136 = arith.constant 0 : index
    %c0_137 = arith.constant 0 : index
    %182 = vector.load %arg5[%c14, %c0_136, %c0_137] : memref<36x4x4xbf16, #tpu.memory_space<vmem>>, vector<1x4x4xbf16>
    %183 = vector.shape_cast %182 : vector<1x4x4xbf16> to vector<4x4xbf16>
    %cst_138 = arith.constant dense<0.000000e+00> : vector<4x512xf32>
    %184 = tpu.matmul %183, %181, %cst_138 {dimension_numbers = #tpu.dot_dimension_numbers<[1], [0], [0], [1], [0, 0, 1, 1], [], []>} : vector<4x4xbf16>, vector<4x512xbf16>, vector<4x512xf32> -> vector<4x512xf32>
    %185 = arith.addf %176, %184 : vector<4x512xf32>
    %c0_139 = arith.constant 0 : index
    %c143_140 = arith.constant 143 : index
    %186 = vector.load %arg10[%c0_139, %c143_140] : memref<4x768xf32, #tpu.memory_space<vmem>>, vector<4x512xf32>
    %c6_141 = arith.constant 6 : index
    %c0_142 = arith.constant 0 : index
    %c0_143 = arith.constant 0 : index
    %187 = vector.load %arg2[%c6_141, %c0_142, %c0_143] : memref<9x4x512xf32, #tpu.memory_space<vmem>>, vector<1x4x512xf32>
    %188 = vector.shape_cast %187 : vector<1x4x512xf32> to vector<4x512xf32>
    %189 = arith.mulf %186, %188 : vector<4x512xf32>
    %190 = arith.truncf %189 : vector<4x512xf32> to vector<4x512xbf16>
    %c15 = arith.constant 15 : index
    %c0_144 = arith.constant 0 : index
    %c0_145 = arith.constant 0 : index
    %191 = vector.load %arg5[%c15, %c0_144, %c0_145] : memref<36x4x4xbf16, #tpu.memory_space<vmem>>, vector<1x4x4xbf16>
    %192 = vector.shape_cast %191 : vector<1x4x4xbf16> to vector<4x4xbf16>
    %cst_146 = arith.constant dense<0.000000e+00> : vector<4x512xf32>
    %193 = tpu.matmul %192, %190, %cst_146 {dimension_numbers = #tpu.dot_dimension_numbers<[1], [0], [0], [1], [0, 0, 1, 1], [], []>} : vector<4x4xbf16>, vector<4x512xbf16>, vector<4x512xf32> -> vector<4x512xf32>
    %194 = arith.addf %185, %193 : vector<4x512xf32>
    %c0_147 = arith.constant 0 : index
    %c144_148 = arith.constant 144 : index
    %195 = vector.load %arg10[%c0_147, %c144_148] : memref<4x768xf32, #tpu.memory_space<vmem>>, vector<4x512xf32>
    %c7_149 = arith.constant 7 : index
    %c0_150 = arith.constant 0 : index
    %c0_151 = arith.constant 0 : index
    %196 = vector.load %arg2[%c7_149, %c0_150, %c0_151] : memref<9x4x512xf32, #tpu.memory_space<vmem>>, vector<1x4x512xf32>
    %197 = vector.shape_cast %196 : vector<1x4x512xf32> to vector<4x512xf32>
    %198 = arith.mulf %195, %197 : vector<4x512xf32>
    %199 = arith.truncf %198 : vector<4x512xf32> to vector<4x512xbf16>
    %c16 = arith.constant 16 : index
    %c0_152 = arith.constant 0 : index
    %c0_153 = arith.constant 0 : index
    %200 = vector.load %arg5[%c16, %c0_152, %c0_153] : memref<36x4x4xbf16, #tpu.memory_space<vmem>>, vector<1x4x4xbf16>
    %201 = vector.shape_cast %200 : vector<1x4x4xbf16> to vector<4x4xbf16>
    %cst_154 = arith.constant dense<0.000000e+00> : vector<4x512xf32>
    %202 = tpu.matmul %201, %199, %cst_154 {dimension_numbers = #tpu.dot_dimension_numbers<[1], [0], [0], [1], [0, 0, 1, 1], [], []>} : vector<4x4xbf16>, vector<4x512xbf16>, vector<4x512xf32> -> vector<4x512xf32>
    %203 = arith.addf %194, %202 : vector<4x512xf32>
    %c0_155 = arith.constant 0 : index
    %c145_156 = arith.constant 145 : index
    %204 = vector.load %arg10[%c0_155, %c145_156] : memref<4x768xf32, #tpu.memory_space<vmem>>, vector<4x512xf32>
    %c8_157 = arith.constant 8 : index
    %c0_158 = arith.constant 0 : index
    %c0_159 = arith.constant 0 : index
    %205 = vector.load %arg2[%c8_157, %c0_158, %c0_159] : memref<9x4x512xf32, #tpu.memory_space<vmem>>, vector<1x4x512xf32>
    %206 = vector.shape_cast %205 : vector<1x4x512xf32> to vector<4x512xf32>
    %207 = arith.mulf %204, %206 : vector<4x512xf32>
    %208 = arith.truncf %207 : vector<4x512xf32> to vector<4x512xbf16>
    %c17 = arith.constant 17 : index
    %c0_160 = arith.constant 0 : index
    %c0_161 = arith.constant 0 : index
    %209 = vector.load %arg5[%c17, %c0_160, %c0_161] : memref<36x4x4xbf16, #tpu.memory_space<vmem>>, vector<1x4x4xbf16>
    %210 = vector.shape_cast %209 : vector<1x4x4xbf16> to vector<4x4xbf16>
    %cst_162 = arith.constant dense<0.000000e+00> : vector<4x512xf32>
    %211 = tpu.matmul %210, %208, %cst_162 {dimension_numbers = #tpu.dot_dimension_numbers<[1], [0], [0], [1], [0, 0, 1, 1], [], []>} : vector<4x4xbf16>, vector<4x512xbf16>, vector<4x512xf32> -> vector<4x512xf32>
    %212 = arith.addf %203, %211 : vector<4x512xf32>
    %213 = arith.addf %212, %4 : vector<4x512xf32>
    %c1_163 = arith.constant 1 : index
    %c0_164 = arith.constant 0 : index
    %c0_165 = arith.constant 0 : index
    %c0_166 = arith.constant 0 : index
    %214 = vector.load %arg3[%c1_163, %c0_164, %c0_165, %c0_166] : memref<2x2x4x1xf32, #tpu.memory_space<vmem>>, vector<1x1x4x1xf32>
    %215 = vector.shape_cast %214 : vector<1x1x4x1xf32> to vector<4x1xf32>
    %c1_167 = arith.constant 1 : index
    %c0_168 = arith.constant 0 : index
    %c0_169 = arith.constant 0 : index
    %c0_170 = arith.constant 0 : index
    %216 = vector.load %arg4[%c1_167, %c0_168, %c0_169, %c0_170] : memref<2x2x4x1xf32, #tpu.memory_space<vmem>>, vector<1x1x4x1xf32>
    %217 = vector.shape_cast %216 : vector<1x1x4x1xf32> to vector<4x1xf32>
    %cst_171 = arith.constant dense<0.000000e+00> : vector<4xf32>
    %218 = vector.multi_reduction <add>, %213, %cst_171 [1] : vector<4x512xf32> to vector<4xf32>
    %219 = vector.shape_cast %218 : vector<4xf32> to vector<4x1xf32>
    %cst_172 = arith.constant 0.001953125 : f32
    %220 = vector.broadcast %cst_172 : f32 to vector<4x1xf32>
    %221 = arith.mulf %219, %220 : vector<4x1xf32>
    %222 = arith.mulf %213, %213 : vector<4x512xf32>
    %cst_173 = arith.constant dense<0.000000e+00> : vector<4xf32>
    %223 = vector.multi_reduction <add>, %222, %cst_173 [1] : vector<4x512xf32> to vector<4xf32>
    %224 = vector.shape_cast %223 : vector<4xf32> to vector<4x1xf32>
    %cst_174 = arith.constant 0.001953125 : f32
    %225 = vector.broadcast %cst_174 : f32 to vector<4x1xf32>
    %226 = arith.mulf %224, %225 : vector<4x1xf32>
    %227 = arith.mulf %221, %221 : vector<4x1xf32>
    %228 = arith.subf %226, %227 : vector<4x1xf32>
    %cst_175 = arith.constant 9.99999974E-6 : f32
    %229 = vector.broadcast %cst_175 : f32 to vector<4x1xf32>
    %230 = arith.addf %228, %229 : vector<4x1xf32>
    %231 = math.rsqrt %230 : vector<4x1xf32>
    %232 = arith.mulf %215, %231 : vector<4x1xf32>
    %233 = arith.mulf %221, %232 : vector<4x1xf32>
    %234 = arith.subf %217, %233 : vector<4x1xf32>
    %235 = vector.broadcast %232 : vector<4x1xf32> to vector<4x512xf32>
    %236 = arith.mulf %213, %235 : vector<4x512xf32>
    %237 = vector.broadcast %234 : vector<4x1xf32> to vector<4x512xf32>
    %238 = arith.addf %236, %237 : vector<4x512xf32>
    %cst_176 = arith.constant 0.000000e+00 : f32
    %239 = vector.broadcast %cst_176 : f32 to vector<4x512xf32>
    %240 = arith.maximumf %238, %239 : vector<4x512xf32>
    %c0_177 = arith.constant 0 : index
    %c128_178 = arith.constant 128 : index
    %241 = vector.load %arg10[%c0_177, %c128_178] : memref<4x768xf32, #tpu.memory_space<vmem>>, vector<4x512xf32>
    tpu.vector_store %arg10[%c0_177, %c128_178], %240 {strides = array<i32>} : memref<4x768xf32, #tpu.memory_space<vmem>>, vector<4x512xf32>,
    %c22 = arith.constant 22 : index
    %c0_179 = arith.constant 0 : index
    %c0_180 = arith.constant 0 : index
    %242 = vector.load %arg5[%c22, %c0_179, %c0_180] : memref<36x4x4xbf16, #tpu.memory_space<vmem>>, vector<1x4x4xbf16>
    %243 = vector.shape_cast %242 : vector<1x4x4xbf16> to vector<4x4xbf16>
    %244 = arith.truncf %240 : vector<4x512xf32> to vector<4x512xbf16>
    %cst_181 = arith.constant dense<0.000000e+00> : vector<4x512xf32>
    %245 = tpu.matmul %243, %244, %cst_181 {dimension_numbers = #tpu.dot_dimension_numbers<[1], [0], [0], [1], [0, 0, 1, 1], [], []>} : vector<4x4xbf16>, vector<4x512xbf16>, vector<4x512xf32> -> vector<4x512xf32>
    %c0_182 = arith.constant 0 : index
    %c111_183 = arith.constant 111 : index
    %246 = vector.load %arg10[%c0_182, %c111_183] : memref<4x768xf32, #tpu.memory_space<vmem>>, vector<4x512xf32>
    %c0_184 = arith.constant 0 : index
    %c0_185 = arith.constant 0 : index
    %c0_186 = arith.constant 0 : index
    %247 = vector.load %arg2[%c0_184, %c0_185, %c0_186] : memref<9x4x512xf32, #tpu.memory_space<vmem>>, vector<1x4x512xf32>
    %248 = vector.shape_cast %247 : vector<1x4x512xf32> to vector<4x512xf32>
    %249 = arith.mulf %246, %248 : vector<4x512xf32>
    %250 = arith.truncf %249 : vector<4x512xf32> to vector<4x512xbf16>
    %c18 = arith.constant 18 : index
    %c0_187 = arith.constant 0 : index
    %c0_188 = arith.constant 0 : index
    %251 = vector.load %arg5[%c18, %c0_187, %c0_188] : memref<36x4x4xbf16, #tpu.memory_space<vmem>>, vector<1x4x4xbf16>
    %252 = vector.shape_cast %251 : vector<1x4x4xbf16> to vector<4x4xbf16>
    %cst_189 = arith.constant dense<0.000000e+00> : vector<4x512xf32>
    %253 = tpu.matmul %252, %250, %cst_189 {dimension_numbers = #tpu.dot_dimension_numbers<[1], [0], [0], [1], [0, 0, 1, 1], [], []>} : vector<4x4xbf16>, vector<4x512xbf16>, vector<4x512xf32> -> vector<4x512xf32>
    %254 = arith.addf %245, %253 : vector<4x512xf32>
    %c0_190 = arith.constant 0 : index
    %c112_191 = arith.constant 112 : index
    %255 = vector.load %arg10[%c0_190, %c112_191] : memref<4x768xf32, #tpu.memory_space<vmem>>, vector<4x512xf32>
    %c1_192 = arith.constant 1 : index
    %c0_193 = arith.constant 0 : index
    %c0_194 = arith.constant 0 : index
    %256 = vector.load %arg2[%c1_192, %c0_193, %c0_194] : memref<9x4x512xf32, #tpu.memory_space<vmem>>, vector<1x4x512xf32>
    %257 = vector.shape_cast %256 : vector<1x4x512xf32> to vector<4x512xf32>
    %258 = arith.mulf %255, %257 : vector<4x512xf32>
    %259 = arith.truncf %258 : vector<4x512xf32> to vector<4x512xbf16>
    %c19 = arith.constant 19 : index
    %c0_195 = arith.constant 0 : index
    %c0_196 = arith.constant 0 : index
    %260 = vector.load %arg5[%c19, %c0_195, %c0_196] : memref<36x4x4xbf16, #tpu.memory_space<vmem>>, vector<1x4x4xbf16>
    %261 = vector.shape_cast %260 : vector<1x4x4xbf16> to vector<4x4xbf16>
    %cst_197 = arith.constant dense<0.000000e+00> : vector<4x512xf32>
    %262 = tpu.matmul %261, %259, %cst_197 {dimension_numbers = #tpu.dot_dimension_numbers<[1], [0], [0], [1], [0, 0, 1, 1], [], []>} : vector<4x4xbf16>, vector<4x512xbf16>, vector<4x512xf32> -> vector<4x512xf32>
    %263 = arith.addf %254, %262 : vector<4x512xf32>
    %c0_198 = arith.constant 0 : index
    %c113_199 = arith.constant 113 : index
    %264 = vector.load %arg10[%c0_198, %c113_199] : memref<4x768xf32, #tpu.memory_space<vmem>>, vector<4x512xf32>
    %c2_200 = arith.constant 2 : index
    %c0_201 = arith.constant 0 : index
    %c0_202 = arith.constant 0 : index
    %265 = vector.load %arg2[%c2_200, %c0_201, %c0_202] : memref<9x4x512xf32, #tpu.memory_space<vmem>>, vector<1x4x512xf32>
    %266 = vector.shape_cast %265 : vector<1x4x512xf32> to vector<4x512xf32>
    %267 = arith.mulf %264, %266 : vector<4x512xf32>
    %268 = arith.truncf %267 : vector<4x512xf32> to vector<4x512xbf16>
    %c20 = arith.constant 20 : index
    %c0_203 = arith.constant 0 : index
    %c0_204 = arith.constant 0 : index
    %269 = vector.load %arg5[%c20, %c0_203, %c0_204] : memref<36x4x4xbf16, #tpu.memory_space<vmem>>, vector<1x4x4xbf16>
    %270 = vector.shape_cast %269 : vector<1x4x4xbf16> to vector<4x4xbf16>
    %cst_205 = arith.constant dense<0.000000e+00> : vector<4x512xf32>
    %271 = tpu.matmul %270, %268, %cst_205 {dimension_numbers = #tpu.dot_dimension_numbers<[1], [0], [0], [1], [0, 0, 1, 1], [], []>} : vector<4x4xbf16>, vector<4x512xbf16>, vector<4x512xf32> -> vector<4x512xf32>
    %272 = arith.addf %263, %271 : vector<4x512xf32>
    %c0_206 = arith.constant 0 : index
    %c127_207 = arith.constant 127 : index
    %273 = vector.load %arg10[%c0_206, %c127_207] : memref<4x768xf32, #tpu.memory_space<vmem>>, vector<4x512xf32>
    %c3_208 = arith.constant 3 : index
    %c0_209 = arith.constant 0 : index
    %c0_210 = arith.constant 0 : index
    %274 = vector.load %arg2[%c3_208, %c0_209, %c0_210] : memref<9x4x512xf32, #tpu.memory_space<vmem>>, vector<1x4x512xf32>
    %275 = vector.shape_cast %274 : vector<1x4x512xf32> to vector<4x512xf32>
    %276 = arith.mulf %273, %275 : vector<4x512xf32>
    %277 = arith.truncf %276 : vector<4x512xf32> to vector<4x512xbf16>
    %c21 = arith.constant 21 : index
    %c0_211 = arith.constant 0 : index
    %c0_212 = arith.constant 0 : index
    %278 = vector.load %arg5[%c21, %c0_211, %c0_212] : memref<36x4x4xbf16, #tpu.memory_space<vmem>>, vector<1x4x4xbf16>
    %279 = vector.shape_cast %278 : vector<1x4x4xbf16> to vector<4x4xbf16>
    %cst_213 = arith.constant dense<0.000000e+00> : vector<4x512xf32>
    %280 = tpu.matmul %279, %277, %cst_213 {dimension_numbers = #tpu.dot_dimension_numbers<[1], [0], [0], [1], [0, 0, 1, 1], [], []>} : vector<4x4xbf16>, vector<4x512xbf16>, vector<4x512xf32> -> vector<4x512xf32>
    %281 = arith.addf %272, %280 : vector<4x512xf32>
    %c0_214 = arith.constant 0 : index
    %c129_215 = arith.constant 129 : index
    %282 = vector.load %arg10[%c0_214, %c129_215] : memref<4x768xf32, #tpu.memory_space<vmem>>, vector<4x512xf32>
    %c5_216 = arith.constant 5 : index
    %c0_217 = arith.constant 0 : index
    %c0_218 = arith.constant 0 : index
    %283 = vector.load %arg2[%c5_216, %c0_217, %c0_218] : memref<9x4x512xf32, #tpu.memory_space<vmem>>, vector<1x4x512xf32>
    %284 = vector.shape_cast %283 : vector<1x4x512xf32> to vector<4x512xf32>
    %285 = arith.mulf %282, %284 : vector<4x512xf32>
    %286 = arith.truncf %285 : vector<4x512xf32> to vector<4x512xbf16>
    %c23 = arith.constant 23 : index
    %c0_219 = arith.constant 0 : index
    %c0_220 = arith.constant 0 : index
    %287 = vector.load %arg5[%c23, %c0_219, %c0_220] : memref<36x4x4xbf16, #tpu.memory_space<vmem>>, vector<1x4x4xbf16>
    %288 = vector.shape_cast %287 : vector<1x4x4xbf16> to vector<4x4xbf16>
    %cst_221 = arith.constant dense<0.000000e+00> : vector<4x512xf32>
    %289 = tpu.matmul %288, %286, %cst_221 {dimension_numbers = #tpu.dot_dimension_numbers<[1], [0], [0], [1], [0, 0, 1, 1], [], []>} : vector<4x4xbf16>, vector<4x512xbf16>, vector<4x512xf32> -> vector<4x512xf32>
    %290 = arith.addf %281, %289 : vector<4x512xf32>
    %c0_222 = arith.constant 0 : index
    %c143_223 = arith.constant 143 : index
    %291 = vector.load %arg10[%c0_222, %c143_223] : memref<4x768xf32, #tpu.memory_space<vmem>>, vector<4x512xf32>
    %c6_224 = arith.constant 6 : index
    %c0_225 = arith.constant 0 : index
    %c0_226 = arith.constant 0 : index
    %292 = vector.load %arg2[%c6_224, %c0_225, %c0_226] : memref<9x4x512xf32, #tpu.memory_space<vmem>>, vector<1x4x512xf32>
    %293 = vector.shape_cast %292 : vector<1x4x512xf32> to vector<4x512xf32>
    %294 = arith.mulf %291, %293 : vector<4x512xf32>
    %295 = arith.truncf %294 : vector<4x512xf32> to vector<4x512xbf16>
    %c24 = arith.constant 24 : index
    %c0_227 = arith.constant 0 : index
    %c0_228 = arith.constant 0 : index
    %296 = vector.load %arg5[%c24, %c0_227, %c0_228] : memref<36x4x4xbf16, #tpu.memory_space<vmem>>, vector<1x4x4xbf16>
    %297 = vector.shape_cast %296 : vector<1x4x4xbf16> to vector<4x4xbf16>
    %cst_229 = arith.constant dense<0.000000e+00> : vector<4x512xf32>
    %298 = tpu.matmul %297, %295, %cst_229 {dimension_numbers = #tpu.dot_dimension_numbers<[1], [0], [0], [1], [0, 0, 1, 1], [], []>} : vector<4x4xbf16>, vector<4x512xbf16>, vector<4x512xf32> -> vector<4x512xf32>
    %299 = arith.addf %290, %298 : vector<4x512xf32>
    %c0_230 = arith.constant 0 : index
    %c144_231 = arith.constant 144 : index
    %300 = vector.load %arg10[%c0_230, %c144_231] : memref<4x768xf32, #tpu.memory_space<vmem>>, vector<4x512xf32>
    %c7_232 = arith.constant 7 : index
    %c0_233 = arith.constant 0 : index
    %c0_234 = arith.constant 0 : index
    %301 = vector.load %arg2[%c7_232, %c0_233, %c0_234] : memref<9x4x512xf32, #tpu.memory_space<vmem>>, vector<1x4x512xf32>
    %302 = vector.shape_cast %301 : vector<1x4x512xf32> to vector<4x512xf32>
    %303 = arith.mulf %300, %302 : vector<4x512xf32>
    %304 = arith.truncf %303 : vector<4x512xf32> to vector<4x512xbf16>
    %c25 = arith.constant 25 : index
    %c0_235 = arith.constant 0 : index
    %c0_236 = arith.constant 0 : index
    %305 = vector.load %arg5[%c25, %c0_235, %c0_236] : memref<36x4x4xbf16, #tpu.memory_space<vmem>>, vector<1x4x4xbf16>
    %306 = vector.shape_cast %305 : vector<1x4x4xbf16> to vector<4x4xbf16>
    %cst_237 = arith.constant dense<0.000000e+00> : vector<4x512xf32>
    %307 = tpu.matmul %306, %304, %cst_237 {dimension_numbers = #tpu.dot_dimension_numbers<[1], [0], [0], [1], [0, 0, 1, 1], [], []>} : vector<4x4xbf16>, vector<4x512xbf16>, vector<4x512xf32> -> vector<4x512xf32>
    %308 = arith.addf %299, %307 : vector<4x512xf32>
    %c0_238 = arith.constant 0 : index
    %c145_239 = arith.constant 145 : index
    %309 = vector.load %arg10[%c0_238, %c145_239] : memref<4x768xf32, #tpu.memory_space<vmem>>, vector<4x512xf32>
    %c8_240 = arith.constant 8 : index
    %c0_241 = arith.constant 0 : index
    %c0_242 = arith.constant 0 : index
    %310 = vector.load %arg2[%c8_240, %c0_241, %c0_242] : memref<9x4x512xf32, #tpu.memory_space<vmem>>, vector<1x4x512xf32>
    %311 = vector.shape_cast %310 : vector<1x4x512xf32> to vector<4x512xf32>
    %312 = arith.mulf %309, %311 : vector<4x512xf32>
    %313 = arith.truncf %312 : vector<4x512xf32> to vector<4x512xbf16>
    %c26 = arith.constant 26 : index
    %c0_243 = arith.constant 0 : index
    %c0_244 = arith.constant 0 : index
    %314 = vector.load %arg5[%c26, %c0_243, %c0_244] : memref<36x4x4xbf16, #tpu.memory_space<vmem>>, vector<1x4x4xbf16>
    %315 = vector.shape_cast %314 : vector<1x4x4xbf16> to vector<4x4xbf16>
    %cst_245 = arith.constant dense<0.000000e+00> : vector<4x512xf32>
    %316 = tpu.matmul %315, %313, %cst_245 {dimension_numbers = #tpu.dot_dimension_numbers<[1], [0], [0], [1], [0, 0, 1, 1], [], []>} : vector<4x4xbf16>, vector<4x512xbf16>, vector<4x512xf32> -> vector<4x512xf32>
    %317 = arith.addf %308, %316 : vector<4x512xf32>
    %c1_246 = arith.constant 1 : index
    %c1_247 = arith.constant 1 : index
    %c0_248 = arith.constant 0 : index
    %c0_249 = arith.constant 0 : index
    %318 = vector.load %arg3[%c1_246, %c1_247, %c0_248, %c0_249] : memref<2x2x4x1xf32, #tpu.memory_space<vmem>>, vector<1x1x4x1xf32>
    %319 = vector.shape_cast %318 : vector<1x1x4x1xf32> to vector<4x1xf32>
    %c1_250 = arith.constant 1 : index
    %c1_251 = arith.constant 1 : index
    %c0_252 = arith.constant 0 : index
    %c0_253 = arith.constant 0 : index
    %320 = vector.load %arg4[%c1_250, %c1_251, %c0_252, %c0_253] : memref<2x2x4x1xf32, #tpu.memory_space<vmem>>, vector<1x1x4x1xf32>
    %321 = vector.shape_cast %320 : vector<1x1x4x1xf32> to vector<4x1xf32>
    %cst_254 = arith.constant dense<0.000000e+00> : vector<4xf32>
    %322 = vector.multi_reduction <add>, %317, %cst_254 [1] : vector<4x512xf32> to vector<4xf32>
    %323 = vector.shape_cast %322 : vector<4xf32> to vector<4x1xf32>
    %cst_255 = arith.constant 0.001953125 : f32
    %324 = vector.broadcast %cst_255 : f32 to vector<4x1xf32>
    %325 = arith.mulf %323, %324 : vector<4x1xf32>
    %326 = arith.mulf %317, %317 : vector<4x512xf32>
    %cst_256 = arith.constant dense<0.000000e+00> : vector<4xf32>
    %327 = vector.multi_reduction <add>, %326, %cst_256 [1] : vector<4x512xf32> to vector<4xf32>
    %328 = vector.shape_cast %327 : vector<4xf32> to vector<4x1xf32>
    %cst_257 = arith.constant 0.001953125 : f32
    %329 = vector.broadcast %cst_257 : f32 to vector<4x1xf32>
    %330 = arith.mulf %328, %329 : vector<4x1xf32>
    %331 = arith.mulf %325, %325 : vector<4x1xf32>
    %332 = arith.subf %330, %331 : vector<4x1xf32>
    %cst_258 = arith.constant 9.99999974E-6 : f32
    %333 = vector.broadcast %cst_258 : f32 to vector<4x1xf32>
    %334 = arith.addf %332, %333 : vector<4x1xf32>
    %335 = math.rsqrt %334 : vector<4x1xf32>
    %336 = arith.mulf %319, %335 : vector<4x1xf32>
    %337 = arith.mulf %325, %336 : vector<4x1xf32>
    %338 = arith.subf %321, %337 : vector<4x1xf32>
    %339 = vector.broadcast %336 : vector<4x1xf32> to vector<4x512xf32>
    %340 = arith.mulf %317, %339 : vector<4x512xf32>
    %341 = vector.broadcast %338 : vector<4x1xf32> to vector<4x512xf32>
    %342 = arith.addf %340, %341 : vector<4x512xf32>
    %cst_259 = arith.constant 0.000000e+00 : f32
    %343 = vector.broadcast %cst_259 : f32 to vector<4x512xf32>
    %344 = arith.maximumf %342, %343 : vector<4x512xf32>
    %c0_260 = arith.constant 0 : index
    %c128_261 = arith.constant 128 : index
    %345 = vector.load %arg10[%c0_260, %c128_261] : memref<4x768xf32, #tpu.memory_space<vmem>>, vector<4x512xf32>
    tpu.vector_store %arg10[%c0_260, %c128_261], %344 {strides = array<i32>} : memref<4x768xf32, #tpu.memory_space<vmem>>, vector<4x512xf32>,
    %c31 = arith.constant 31 : index
    %c0_262 = arith.constant 0 : index
    %c0_263 = arith.constant 0 : index
    %346 = vector.load %arg5[%c31, %c0_262, %c0_263] : memref<36x4x4xbf16, #tpu.memory_space<vmem>>, vector<1x4x4xbf16>
    %347 = vector.shape_cast %346 : vector<1x4x4xbf16> to vector<4x4xbf16>
    %348 = arith.truncf %344 : vector<4x512xf32> to vector<4x512xbf16>
    %cst_264 = arith.constant dense<0.000000e+00> : vector<4x512xf32>
    %349 = tpu.matmul %347, %348, %cst_264 {dimension_numbers = #tpu.dot_dimension_numbers<[1], [0], [0], [1], [0, 0, 1, 1], [], []>} : vector<4x4xbf16>, vector<4x512xbf16>, vector<4x512xf32> -> vector<4x512xf32>
    %c0_265 = arith.constant 0 : index
    %c111_266 = arith.constant 111 : index
    %350 = vector.load %arg10[%c0_265, %c111_266] : memref<4x768xf32, #tpu.memory_space<vmem>>, vector<4x512xf32>
    %c0_267 = arith.constant 0 : index
    %c0_268 = arith.constant 0 : index
    %c0_269 = arith.constant 0 : index
    %351 = vector.load %arg2[%c0_267, %c0_268, %c0_269] : memref<9x4x512xf32, #tpu.memory_space<vmem>>, vector<1x4x512xf32>
    %352 = vector.shape_cast %351 : vector<1x4x512xf32> to vector<4x512xf32>
    %353 = arith.mulf %350, %352 : vector<4x512xf32>
    %354 = arith.truncf %353 : vector<4x512xf32> to vector<4x512xbf16>
    %c27 = arith.constant 27 : index
    %c0_270 = arith.constant 0 : index
    %c0_271 = arith.constant 0 : index
    %355 = vector.load %arg5[%c27, %c0_270, %c0_271] : memref<36x4x4xbf16, #tpu.memory_space<vmem>>, vector<1x4x4xbf16>
    %356 = vector.shape_cast %355 : vector<1x4x4xbf16> to vector<4x4xbf16>
    %cst_272 = arith.constant dense<0.000000e+00> : vector<4x512xf32>
    %357 = tpu.matmul %356, %354, %cst_272 {dimension_numbers = #tpu.dot_dimension_numbers<[1], [0], [0], [1], [0, 0, 1, 1], [], []>} : vector<4x4xbf16>, vector<4x512xbf16>, vector<4x512xf32> -> vector<4x512xf32>
    %358 = arith.addf %349, %357 : vector<4x512xf32>
    %c0_273 = arith.constant 0 : index
    %c112_274 = arith.constant 112 : index
    %359 = vector.load %arg10[%c0_273, %c112_274] : memref<4x768xf32, #tpu.memory_space<vmem>>, vector<4x512xf32>
    %c1_275 = arith.constant 1 : index
    %c0_276 = arith.constant 0 : index
    %c0_277 = arith.constant 0 : index
    %360 = vector.load %arg2[%c1_275, %c0_276, %c0_277] : memref<9x4x512xf32, #tpu.memory_space<vmem>>, vector<1x4x512xf32>
    %361 = vector.shape_cast %360 : vector<1x4x512xf32> to vector<4x512xf32>
    %362 = arith.mulf %359, %361 : vector<4x512xf32>
    %363 = arith.truncf %362 : vector<4x512xf32> to vector<4x512xbf16>
    %c28 = arith.constant 28 : index
    %c0_278 = arith.constant 0 : index
    %c0_279 = arith.constant 0 : index
    %364 = vector.load %arg5[%c28, %c0_278, %c0_279] : memref<36x4x4xbf16, #tpu.memory_space<vmem>>, vector<1x4x4xbf16>
    %365 = vector.shape_cast %364 : vector<1x4x4xbf16> to vector<4x4xbf16>
    %cst_280 = arith.constant dense<0.000000e+00> : vector<4x512xf32>
    %366 = tpu.matmul %365, %363, %cst_280 {dimension_numbers = #tpu.dot_dimension_numbers<[1], [0], [0], [1], [0, 0, 1, 1], [], []>} : vector<4x4xbf16>, vector<4x512xbf16>, vector<4x512xf32> -> vector<4x512xf32>
    %367 = arith.addf %358, %366 : vector<4x512xf32>
    %c0_281 = arith.constant 0 : index
    %c113_282 = arith.constant 113 : index
    %368 = vector.load %arg10[%c0_281, %c113_282] : memref<4x768xf32, #tpu.memory_space<vmem>>, vector<4x512xf32>
    %c2_283 = arith.constant 2 : index
    %c0_284 = arith.constant 0 : index
    %c0_285 = arith.constant 0 : index
    %369 = vector.load %arg2[%c2_283, %c0_284, %c0_285] : memref<9x4x512xf32, #tpu.memory_space<vmem>>, vector<1x4x512xf32>
    %370 = vector.shape_cast %369 : vector<1x4x512xf32> to vector<4x512xf32>
    %371 = arith.mulf %368, %370 : vector<4x512xf32>
    %372 = arith.truncf %371 : vector<4x512xf32> to vector<4x512xbf16>
    %c29 = arith.constant 29 : index
    %c0_286 = arith.constant 0 : index
    %c0_287 = arith.constant 0 : index
    %373 = vector.load %arg5[%c29, %c0_286, %c0_287] : memref<36x4x4xbf16, #tpu.memory_space<vmem>>, vector<1x4x4xbf16>
    %374 = vector.shape_cast %373 : vector<1x4x4xbf16> to vector<4x4xbf16>
    %cst_288 = arith.constant dense<0.000000e+00> : vector<4x512xf32>
    %375 = tpu.matmul %374, %372, %cst_288 {dimension_numbers = #tpu.dot_dimension_numbers<[1], [0], [0], [1], [0, 0, 1, 1], [], []>} : vector<4x4xbf16>, vector<4x512xbf16>, vector<4x512xf32> -> vector<4x512xf32>
    %376 = arith.addf %367, %375 : vector<4x512xf32>
    %c0_289 = arith.constant 0 : index
    %c127_290 = arith.constant 127 : index
    %377 = vector.load %arg10[%c0_289, %c127_290] : memref<4x768xf32, #tpu.memory_space<vmem>>, vector<4x512xf32>
    %c3_291 = arith.constant 3 : index
    %c0_292 = arith.constant 0 : index
    %c0_293 = arith.constant 0 : index
    %378 = vector.load %arg2[%c3_291, %c0_292, %c0_293] : memref<9x4x512xf32, #tpu.memory_space<vmem>>, vector<1x4x512xf32>
    %379 = vector.shape_cast %378 : vector<1x4x512xf32> to vector<4x512xf32>
    %380 = arith.mulf %377, %379 : vector<4x512xf32>
    %381 = arith.truncf %380 : vector<4x512xf32> to vector<4x512xbf16>
    %c30 = arith.constant 30 : index
    %c0_294 = arith.constant 0 : index
    %c0_295 = arith.constant 0 : index
    %382 = vector.load %arg5[%c30, %c0_294, %c0_295] : memref<36x4x4xbf16, #tpu.memory_space<vmem>>, vector<1x4x4xbf16>
    %383 = vector.shape_cast %382 : vector<1x4x4xbf16> to vector<4x4xbf16>
    %cst_296 = arith.constant dense<0.000000e+00> : vector<4x512xf32>
    %384 = tpu.matmul %383, %381, %cst_296 {dimension_numbers = #tpu.dot_dimension_numbers<[1], [0], [0], [1], [0, 0, 1, 1], [], []>} : vector<4x4xbf16>, vector<4x512xbf16>, vector<4x512xf32> -> vector<4x512xf32>
    %385 = arith.addf %376, %384 : vector<4x512xf32>
    %c0_297 = arith.constant 0 : index
    %c129_298 = arith.constant 129 : index
    %386 = vector.load %arg10[%c0_297, %c129_298] : memref<4x768xf32, #tpu.memory_space<vmem>>, vector<4x512xf32>
    %c5_299 = arith.constant 5 : index
    %c0_300 = arith.constant 0 : index
    %c0_301 = arith.constant 0 : index
    %387 = vector.load %arg2[%c5_299, %c0_300, %c0_301] : memref<9x4x512xf32, #tpu.memory_space<vmem>>, vector<1x4x512xf32>
    %388 = vector.shape_cast %387 : vector<1x4x512xf32> to vector<4x512xf32>
    %389 = arith.mulf %386, %388 : vector<4x512xf32>
    %390 = arith.truncf %389 : vector<4x512xf32> to vector<4x512xbf16>
    %c32 = arith.constant 32 : index
    %c0_302 = arith.constant 0 : index
    %c0_303 = arith.constant 0 : index
    %391 = vector.load %arg5[%c32, %c0_302, %c0_303] : memref<36x4x4xbf16, #tpu.memory_space<vmem>>, vector<1x4x4xbf16>
    %392 = vector.shape_cast %391 : vector<1x4x4xbf16> to vector<4x4xbf16>
    %cst_304 = arith.constant dense<0.000000e+00> : vector<4x512xf32>
    %393 = tpu.matmul %392, %390, %cst_304 {dimension_numbers = #tpu.dot_dimension_numbers<[1], [0], [0], [1], [0, 0, 1, 1], [], []>} : vector<4x4xbf16>, vector<4x512xbf16>, vector<4x512xf32> -> vector<4x512xf32>
    %394 = arith.addf %385, %393 : vector<4x512xf32>
    %c0_305 = arith.constant 0 : index
    %c143_306 = arith.constant 143 : index
    %395 = vector.load %arg10[%c0_305, %c143_306] : memref<4x768xf32, #tpu.memory_space<vmem>>, vector<4x512xf32>
    %c6_307 = arith.constant 6 : index
    %c0_308 = arith.constant 0 : index
    %c0_309 = arith.constant 0 : index
    %396 = vector.load %arg2[%c6_307, %c0_308, %c0_309] : memref<9x4x512xf32, #tpu.memory_space<vmem>>, vector<1x4x512xf32>
    %397 = vector.shape_cast %396 : vector<1x4x512xf32> to vector<4x512xf32>
    %398 = arith.mulf %395, %397 : vector<4x512xf32>
    %399 = arith.truncf %398 : vector<4x512xf32> to vector<4x512xbf16>
    %c33 = arith.constant 33 : index
    %c0_310 = arith.constant 0 : index
    %c0_311 = arith.constant 0 : index
    %400 = vector.load %arg5[%c33, %c0_310, %c0_311] : memref<36x4x4xbf16, #tpu.memory_space<vmem>>, vector<1x4x4xbf16>
    %401 = vector.shape_cast %400 : vector<1x4x4xbf16> to vector<4x4xbf16>
    %cst_312 = arith.constant dense<0.000000e+00> : vector<4x512xf32>
    %402 = tpu.matmul %401, %399, %cst_312 {dimension_numbers = #tpu.dot_dimension_numbers<[1], [0], [0], [1], [0, 0, 1, 1], [], []>} : vector<4x4xbf16>, vector<4x512xbf16>, vector<4x512xf32> -> vector<4x512xf32>
    %403 = arith.addf %394, %402 : vector<4x512xf32>
    %c0_313 = arith.constant 0 : index
    %c144_314 = arith.constant 144 : index
    %404 = vector.load %arg10[%c0_313, %c144_314] : memref<4x768xf32, #tpu.memory_space<vmem>>, vector<4x512xf32>
    %c7_315 = arith.constant 7 : index
    %c0_316 = arith.constant 0 : index
    %c0_317 = arith.constant 0 : index
    %405 = vector.load %arg2[%c7_315, %c0_316, %c0_317] : memref<9x4x512xf32, #tpu.memory_space<vmem>>, vector<1x4x512xf32>
    %406 = vector.shape_cast %405 : vector<1x4x512xf32> to vector<4x512xf32>
    %407 = arith.mulf %404, %406 : vector<4x512xf32>
    %408 = arith.truncf %407 : vector<4x512xf32> to vector<4x512xbf16>
    %c34 = arith.constant 34 : index
    %c0_318 = arith.constant 0 : index
    %c0_319 = arith.constant 0 : index
    %409 = vector.load %arg5[%c34, %c0_318, %c0_319] : memref<36x4x4xbf16, #tpu.memory_space<vmem>>, vector<1x4x4xbf16>
    %410 = vector.shape_cast %409 : vector<1x4x4xbf16> to vector<4x4xbf16>
    %cst_320 = arith.constant dense<0.000000e+00> : vector<4x512xf32>
    %411 = tpu.matmul %410, %408, %cst_320 {dimension_numbers = #tpu.dot_dimension_numbers<[1], [0], [0], [1], [0, 0, 1, 1], [], []>} : vector<4x4xbf16>, vector<4x512xbf16>, vector<4x512xf32> -> vector<4x512xf32>
    %412 = arith.addf %403, %411 : vector<4x512xf32>
    %c0_321 = arith.constant 0 : index
    %c145_322 = arith.constant 145 : index
    %413 = vector.load %arg10[%c0_321, %c145_322] : memref<4x768xf32, #tpu.memory_space<vmem>>, vector<4x512xf32>
    %c8_323 = arith.constant 8 : index
    %c0_324 = arith.constant 0 : index
    %c0_325 = arith.constant 0 : index
    %414 = vector.load %arg2[%c8_323, %c0_324, %c0_325] : memref<9x4x512xf32, #tpu.memory_space<vmem>>, vector<1x4x512xf32>
    %415 = vector.shape_cast %414 : vector<1x4x512xf32> to vector<4x512xf32>
    %416 = arith.mulf %413, %415 : vector<4x512xf32>
    %417 = arith.truncf %416 : vector<4x512xf32> to vector<4x512xbf16>
    %c35 = arith.constant 35 : index
    %c0_326 = arith.constant 0 : index
    %c0_327 = arith.constant 0 : index
    %418 = vector.load %arg5[%c35, %c0_326, %c0_327] : memref<36x4x4xbf16, #tpu.memory_space<vmem>>, vector<1x4x4xbf16>
    %419 = vector.shape_cast %418 : vector<1x4x4xbf16> to vector<4x4xbf16>
    %cst_328 = arith.constant dense<0.000000e+00> : vector<4x512xf32>
    %420 = tpu.matmul %419, %417, %cst_328 {dimension_numbers = #tpu.dot_dimension_numbers<[1], [0], [0], [1], [0, 0, 1, 1], [], []>} : vector<4x4xbf16>, vector<4x512xbf16>, vector<4x512xf32> -> vector<4x512xf32>
    %421 = arith.addf %412, %420 : vector<4x512xf32>
    %422 = arith.addf %421, %213 : vector<4x512xf32>
    %c0_329 = arith.constant 0 : index
    %c0_330 = arith.constant 0 : index
    %c0_331 = arith.constant 0 : index
    %423 = vector.load %arg1[%c0_329, %c0_330, %c0_331] : memref<2x4x512xf32, #tpu.memory_space<vmem>>, vector<1x4x512xf32>
    %424 = vector.shape_cast %423 : vector<1x4x512xf32> to vector<4x512xf32>
    %c1_332 = arith.constant 1 : index
    %c0_333 = arith.constant 0 : index
    %c0_334 = arith.constant 0 : index
    %425 = vector.load %arg1[%c1_332, %c0_333, %c0_334] : memref<2x4x512xf32, #tpu.memory_space<vmem>>, vector<1x4x512xf32>
    %426 = vector.shape_cast %425 : vector<1x4x512xf32> to vector<4x512xf32>
    %c0_335 = arith.constant 0 : index
    %c0_336 = arith.constant 0 : index
    %c0_337 = arith.constant 0 : index
    %427 = vector.load %arg6[%c0_335, %c0_336, %c0_337] : memref<4x4x1xf32, #tpu.memory_space<vmem>>, vector<1x4x1xf32>
    %428 = vector.shape_cast %427 : vector<1x4x1xf32> to vector<4x1xf32>
    %c0_338 = arith.constant 0 : index
    %c0_339 = arith.constant 0 : index
    %c0_340 = arith.constant 0 : index
    %429 = vector.load %arg7[%c0_338, %c0_339, %c0_340] : memref<4x4x1xf32, #tpu.memory_space<vmem>>, vector<1x4x1xf32>
    %430 = vector.shape_cast %429 : vector<1x4x1xf32> to vector<4x1xf32>
    %cst_341 = arith.constant dense<0.000000e+00> : vector<4xf32>
    %431 = vector.multi_reduction <add>, %213, %cst_341 [1] : vector<4x512xf32> to vector<4xf32>
    %432 = vector.shape_cast %431 : vector<4xf32> to vector<4x1xf32>
    %cst_342 = arith.constant 0.001953125 : f32
    %433 = vector.broadcast %cst_342 : f32 to vector<4x1xf32>
    %434 = arith.mulf %432, %433 : vector<4x1xf32>
    %435 = arith.mulf %213, %213 : vector<4x512xf32>
    %cst_343 = arith.constant dense<0.000000e+00> : vector<4xf32>
    %436 = vector.multi_reduction <add>, %435, %cst_343 [1] : vector<4x512xf32> to vector<4xf32>
    %437 = vector.shape_cast %436 : vector<4xf32> to vector<4x1xf32>
    %cst_344 = arith.constant 0.001953125 : f32
    %438 = vector.broadcast %cst_344 : f32 to vector<4x1xf32>
    %439 = arith.mulf %437, %438 : vector<4x1xf32>
    %440 = arith.mulf %434, %434 : vector<4x1xf32>
    %441 = arith.subf %439, %440 : vector<4x1xf32>
    %cst_345 = arith.constant 9.99999974E-6 : f32
    %442 = vector.broadcast %cst_345 : f32 to vector<4x1xf32>
    %443 = arith.addf %441, %442 : vector<4x1xf32>
    %444 = math.rsqrt %443 : vector<4x1xf32>
    %445 = arith.mulf %428, %444 : vector<4x1xf32>
    %446 = arith.mulf %434, %445 : vector<4x1xf32>
    %447 = arith.subf %430, %446 : vector<4x1xf32>
    %448 = vector.broadcast %445 : vector<4x1xf32> to vector<4x512xf32>
    %449 = arith.mulf %213, %448 : vector<4x512xf32>
    %450 = vector.broadcast %447 : vector<4x1xf32> to vector<4x512xf32>
    %451 = arith.addf %449, %450 : vector<4x512xf32>
    %cst_346 = arith.constant 0.000000e+00 : f32
    %452 = vector.broadcast %cst_346 : f32 to vector<4x512xf32>
    %453 = arith.maximumf %451, %452 : vector<4x512xf32>
    %454 = arith.truncf %453 : vector<4x512xf32> to vector<4x512xbf16>
    %c0_347 = arith.constant 0 : index
    %c0_348 = arith.constant 0 : index
    %c0_349 = arith.constant 0 : index
    %455 = vector.load %arg8[%c0_347, %c0_348, %c0_349] : memref<4x4x4xbf16, #tpu.memory_space<vmem>>, vector<1x4x4xbf16>
    %456 = vector.shape_cast %455 : vector<1x4x4xbf16> to vector<4x4xbf16>
    %cst_350 = arith.constant dense<0.000000e+00> : vector<4x512xf32>
    %457 = tpu.matmul %456, %454, %cst_350 {dimension_numbers = #tpu.dot_dimension_numbers<[1], [0], [0], [1], [0, 0, 1, 1], [], []>} : vector<4x4xbf16>, vector<4x512xbf16>, vector<4x512xf32> -> vector<4x512xf32>
    %c1_351 = arith.constant 1 : index
    %c0_352 = arith.constant 0 : index
    %c0_353 = arith.constant 0 : index
    %458 = vector.load %arg6[%c1_351, %c0_352, %c0_353] : memref<4x4x1xf32, #tpu.memory_space<vmem>>, vector<1x4x1xf32>
    %459 = vector.shape_cast %458 : vector<1x4x1xf32> to vector<4x1xf32>
    %c1_354 = arith.constant 1 : index
    %c0_355 = arith.constant 0 : index
    %c0_356 = arith.constant 0 : index
    %460 = vector.load %arg7[%c1_354, %c0_355, %c0_356] : memref<4x4x1xf32, #tpu.memory_space<vmem>>, vector<1x4x1xf32>
    %461 = vector.shape_cast %460 : vector<1x4x1xf32> to vector<4x1xf32>
    %cst_357 = arith.constant dense<0.000000e+00> : vector<4xf32>
    %462 = vector.multi_reduction <add>, %422, %cst_357 [1] : vector<4x512xf32> to vector<4xf32>
    %463 = vector.shape_cast %462 : vector<4xf32> to vector<4x1xf32>
    %cst_358 = arith.constant 0.001953125 : f32
    %464 = vector.broadcast %cst_358 : f32 to vector<4x1xf32>
    %465 = arith.mulf %463, %464 : vector<4x1xf32>
    %466 = arith.mulf %422, %422 : vector<4x512xf32>
    %cst_359 = arith.constant dense<0.000000e+00> : vector<4xf32>
    %467 = vector.multi_reduction <add>, %466, %cst_359 [1] : vector<4x512xf32> to vector<4xf32>
    %468 = vector.shape_cast %467 : vector<4xf32> to vector<4x1xf32>
    %cst_360 = arith.constant 0.001953125 : f32
    %469 = vector.broadcast %cst_360 : f32 to vector<4x1xf32>
    %470 = arith.mulf %468, %469 : vector<4x1xf32>
    %471 = arith.mulf %465, %465 : vector<4x1xf32>
    %472 = arith.subf %470, %471 : vector<4x1xf32>
    %cst_361 = arith.constant 9.99999974E-6 : f32
    %473 = vector.broadcast %cst_361 : f32 to vector<4x1xf32>
    %474 = arith.addf %472, %473 : vector<4x1xf32>
    %475 = math.rsqrt %474 : vector<4x1xf32>
    %476 = arith.mulf %459, %475 : vector<4x1xf32>
    %477 = arith.mulf %465, %476 : vector<4x1xf32>
    %478 = arith.subf %461, %477 : vector<4x1xf32>
    %479 = vector.broadcast %476 : vector<4x1xf32> to vector<4x512xf32>
    %480 = arith.mulf %422, %479 : vector<4x512xf32>
    %481 = vector.broadcast %478 : vector<4x1xf32> to vector<4x512xf32>
    %482 = arith.addf %480, %481 : vector<4x512xf32>
    %cst_362 = arith.constant 0.000000e+00 : f32
    %483 = vector.broadcast %cst_362 : f32 to vector<4x512xf32>
    %484 = arith.maximumf %482, %483 : vector<4x512xf32>
    %485 = arith.truncf %484 : vector<4x512xf32> to vector<4x512xbf16>
    %c1_363 = arith.constant 1 : index
    %c0_364 = arith.constant 0 : index
    %c0_365 = arith.constant 0 : index
    %486 = vector.load %arg8[%c1_363, %c0_364, %c0_365] : memref<4x4x4xbf16, #tpu.memory_space<vmem>>, vector<1x4x4xbf16>
    %487 = vector.shape_cast %486 : vector<1x4x4xbf16> to vector<4x4xbf16>
    %cst_366 = arith.constant dense<0.000000e+00> : vector<4x512xf32>
    %488 = tpu.matmul %487, %485, %cst_366 {dimension_numbers = #tpu.dot_dimension_numbers<[1], [0], [0], [1], [0, 0, 1, 1], [], []>} : vector<4x4xbf16>, vector<4x512xbf16>, vector<4x512xf32> -> vector<4x512xf32>
    %489 = arith.addf %457, %488 : vector<4x512xf32>
    %c2_367 = arith.constant 2 : index
    %c0_368 = arith.constant 0 : index
    %c0_369 = arith.constant 0 : index
    %490 = vector.load %arg6[%c2_367, %c0_368, %c0_369] : memref<4x4x1xf32, #tpu.memory_space<vmem>>, vector<1x4x1xf32>
    %491 = vector.shape_cast %490 : vector<1x4x1xf32> to vector<4x1xf32>
    %c2_370 = arith.constant 2 : index
    %c0_371 = arith.constant 0 : index
    %c0_372 = arith.constant 0 : index
    %492 = vector.load %arg7[%c2_370, %c0_371, %c0_372] : memref<4x4x1xf32, #tpu.memory_space<vmem>>, vector<1x4x1xf32>
    %493 = vector.shape_cast %492 : vector<1x4x1xf32> to vector<4x1xf32>
    %cst_373 = arith.constant dense<0.000000e+00> : vector<4xf32>
    %494 = vector.multi_reduction <add>, %424, %cst_373 [1] : vector<4x512xf32> to vector<4xf32>
    %495 = vector.shape_cast %494 : vector<4xf32> to vector<4x1xf32>
    %cst_374 = arith.constant 0.001953125 : f32
    %496 = vector.broadcast %cst_374 : f32 to vector<4x1xf32>
    %497 = arith.mulf %495, %496 : vector<4x1xf32>
    %498 = arith.mulf %424, %424 : vector<4x512xf32>
    %cst_375 = arith.constant dense<0.000000e+00> : vector<4xf32>
    %499 = vector.multi_reduction <add>, %498, %cst_375 [1] : vector<4x512xf32> to vector<4xf32>
    %500 = vector.shape_cast %499 : vector<4xf32> to vector<4x1xf32>
    %cst_376 = arith.constant 0.001953125 : f32
    %501 = vector.broadcast %cst_376 : f32 to vector<4x1xf32>
    %502 = arith.mulf %500, %501 : vector<4x1xf32>
    %503 = arith.mulf %497, %497 : vector<4x1xf32>
    %504 = arith.subf %502, %503 : vector<4x1xf32>
    %cst_377 = arith.constant 9.99999974E-6 : f32
    %505 = vector.broadcast %cst_377 : f32 to vector<4x1xf32>
    %506 = arith.addf %504, %505 : vector<4x1xf32>
    %507 = math.rsqrt %506 : vector<4x1xf32>
    %508 = arith.mulf %491, %507 : vector<4x1xf32>
    %509 = arith.mulf %497, %508 : vector<4x1xf32>
    %510 = arith.subf %493, %509 : vector<4x1xf32>
    %511 = vector.broadcast %508 : vector<4x1xf32> to vector<4x512xf32>
    %512 = arith.mulf %424, %511 : vector<4x512xf32>
    %513 = vector.broadcast %510 : vector<4x1xf32> to vector<4x512xf32>
    %514 = arith.addf %512, %513 : vector<4x512xf32>
    %cst_378 = arith.constant 0.000000e+00 : f32
    %515 = vector.broadcast %cst_378 : f32 to vector<4x512xf32>
    %516 = arith.maximumf %514, %515 : vector<4x512xf32>
    %517 = arith.truncf %516 : vector<4x512xf32> to vector<4x512xbf16>
    %c2_379 = arith.constant 2 : index
    %c0_380 = arith.constant 0 : index
    %c0_381 = arith.constant 0 : index
    %518 = vector.load %arg8[%c2_379, %c0_380, %c0_381] : memref<4x4x4xbf16, #tpu.memory_space<vmem>>, vector<1x4x4xbf16>
    %519 = vector.shape_cast %518 : vector<1x4x4xbf16> to vector<4x4xbf16>
    %cst_382 = arith.constant dense<0.000000e+00> : vector<4x512xf32>
    %520 = tpu.matmul %519, %517, %cst_382 {dimension_numbers = #tpu.dot_dimension_numbers<[1], [0], [0], [1], [0, 0, 1, 1], [], []>} : vector<4x4xbf16>, vector<4x512xbf16>, vector<4x512xf32> -> vector<4x512xf32>
    %521 = arith.addf %489, %520 : vector<4x512xf32>
    %c3_383 = arith.constant 3 : index
    %c0_384 = arith.constant 0 : index
    %c0_385 = arith.constant 0 : index
    %522 = vector.load %arg6[%c3_383, %c0_384, %c0_385] : memref<4x4x1xf32, #tpu.memory_space<vmem>>, vector<1x4x1xf32>
    %523 = vector.shape_cast %522 : vector<1x4x1xf32> to vector<4x1xf32>
    %c3_386 = arith.constant 3 : index
    %c0_387 = arith.constant 0 : index
    %c0_388 = arith.constant 0 : index
    %524 = vector.load %arg7[%c3_386, %c0_387, %c0_388] : memref<4x4x1xf32, #tpu.memory_space<vmem>>, vector<1x4x1xf32>
    %525 = vector.shape_cast %524 : vector<1x4x1xf32> to vector<4x1xf32>
    %cst_389 = arith.constant dense<0.000000e+00> : vector<4xf32>
    %526 = vector.multi_reduction <add>, %426, %cst_389 [1] : vector<4x512xf32> to vector<4xf32>
    %527 = vector.shape_cast %526 : vector<4xf32> to vector<4x1xf32>
    %cst_390 = arith.constant 0.001953125 : f32
    %528 = vector.broadcast %cst_390 : f32 to vector<4x1xf32>
    %529 = arith.mulf %527, %528 : vector<4x1xf32>
    %530 = arith.mulf %426, %426 : vector<4x512xf32>
    %cst_391 = arith.constant dense<0.000000e+00> : vector<4xf32>
    %531 = vector.multi_reduction <add>, %530, %cst_391 [1] : vector<4x512xf32> to vector<4xf32>
    %532 = vector.shape_cast %531 : vector<4xf32> to vector<4x1xf32>
    %cst_392 = arith.constant 0.001953125 : f32
    %533 = vector.broadcast %cst_392 : f32 to vector<4x1xf32>
    %534 = arith.mulf %532, %533 : vector<4x1xf32>
    %535 = arith.mulf %529, %529 : vector<4x1xf32>
    %536 = arith.subf %534, %535 : vector<4x1xf32>
    %cst_393 = arith.constant 9.99999974E-6 : f32
    %537 = vector.broadcast %cst_393 : f32 to vector<4x1xf32>
    %538 = arith.addf %536, %537 : vector<4x1xf32>
    %539 = math.rsqrt %538 : vector<4x1xf32>
    %540 = arith.mulf %523, %539 : vector<4x1xf32>
    %541 = arith.mulf %529, %540 : vector<4x1xf32>
    %542 = arith.subf %525, %541 : vector<4x1xf32>
    %543 = vector.broadcast %540 : vector<4x1xf32> to vector<4x512xf32>
    %544 = arith.mulf %426, %543 : vector<4x512xf32>
    %545 = vector.broadcast %542 : vector<4x1xf32> to vector<4x512xf32>
    %546 = arith.addf %544, %545 : vector<4x512xf32>
    %cst_394 = arith.constant 0.000000e+00 : f32
    %547 = vector.broadcast %cst_394 : f32 to vector<4x512xf32>
    %548 = arith.maximumf %546, %547 : vector<4x512xf32>
    %549 = arith.truncf %548 : vector<4x512xf32> to vector<4x512xbf16>
    %c3_395 = arith.constant 3 : index
    %c0_396 = arith.constant 0 : index
    %c0_397 = arith.constant 0 : index
    %550 = vector.load %arg8[%c3_395, %c0_396, %c0_397] : memref<4x4x4xbf16, #tpu.memory_space<vmem>>, vector<1x4x4xbf16>
    %551 = vector.shape_cast %550 : vector<1x4x4xbf16> to vector<4x4xbf16>
    %cst_398 = arith.constant dense<0.000000e+00> : vector<4x512xf32>
    %552 = tpu.matmul %551, %549, %cst_398 {dimension_numbers = #tpu.dot_dimension_numbers<[1], [0], [0], [1], [0, 0, 1, 1], [], []>} : vector<4x4xbf16>, vector<4x512xbf16>, vector<4x512xf32> -> vector<4x512xf32>
    %553 = arith.addf %521, %552 : vector<4x512xf32>
    %c0_399 = arith.constant 0 : index
    %c0_400 = arith.constant 0 : index
    %554 = vector.load %arg9[%c0_399, %c0_400] : memref<4x512xf32, #tpu.memory_space<vmem>>, vector<4x512xf32>
    tpu.vector_store %arg9[%c0_399, %c0_400], %553 {strides = array<i32>} : memref<4x512xf32, #tpu.memory_space<vmem>>, vector<4x512xf32>,
    return
  }
}

</mosaic_0001>

<bundles_post_ra>
// kernel: _memory_block_fwd.1
= control target key start
LH: loop header
LB: loop body
LE: loop exit
PB: predicated region body
PF: predicated region fallthrough
CT: control target
= control target key end

     0   :  { %vm45_vm0 = vcmask 1043456   ;;  %v6847_v22 = vmov 0   ;;  %s6848_s15 = smov 111   ;;  %s6849_s18 = smov 127   ;;  %v6851_v41 = vmov 0.0   ;;  %v88_v49 = vlaneseq  ;;  %s8437_s0 = inlined_call_operand.vmem [shape: f32[4,512], index: 0, kind: input, shape index: {}]   ;;  %s8438_s2 = inlined_call_operand.vmem [shape: f32[9,4,512], index: 2, kind: input, shape index: {}]   ;;  %s8439_s3 = inlined_call_operand.vmem [shape: f32[2,2,4,1], index: 3, kind: input, shape index: {}]   ;;  %s8440_s4 = inlined_call_operand.vmem [shape: f32[2,2,4,1], index: 4, kind: input, shape index: {}]   ;;  %s8441_s5 = inlined_call_operand.vmem [shape: bf16[36,4,4], index: 5, kind: input, shape index: {}]   ;;  %s8442_s6 = inlined_call_operand.vmem [shape: f32[4,4,1], index: 6, kind: input, shape index: {}]   ;;  %s8443_s1 = inlined_call_operand.vmem [shape: f32[2,4,512], index: 1, kind: input, shape index: {}]   ;;  %s8444_s7 = inlined_call_operand.vmem [shape: f32[4,4,1], index: 7, kind: input, shape index: {}]   ;;  %s8445_s8 = inlined_call_operand.vmem [shape: bf16[4,4,4], index: 8, kind: input, shape index: {}]   ;;  %s8446_s9 = inlined_call_operand.vmem [shape: f32[4,512], index: 9, kind: output, shape index: {}]  }
   0x1   :  { %v6911_v0 = vld [vmem:[%s8437_s0] sm:$0xff]  ;;  %v6916_v1 = vld [vmem:[%s8437_s0 + $0x8] sm:$0xff]  ;;  %6823 = vset.pattern.permute.xlu1 %v6847_v22  ;;  %229 = vmatprep.mubr.bf16.mxu0 %v6847_v22  ;;  %v6956_v24 = vld [vmem:[%s8438_s2 + $0x38] sm:$0xff]  ;;  %s6850_s21 = smov 1   ;;  %33 = vst [vmem:[#allocation2] sm:$0xf] %v6851_v41 }
   0x2   :  { %v6920_v2 = vcombine.high %v6911_v0, %v6911_v0  ;;  %v6924_v3 = vcombine.high %v6916_v1, %v6916_v1  ;;  %v46_v4 = vsel %vm45_vm0, %v6911_v0, 0.0  ;;  %v56_v5 = vmul.f32 %v6911_v0, %v6911_v0  ;;  %270 = vmatprep.mubr.bf16.mxu1 %v6847_v22  ;;  %6824 = vset.pattern.permute.xlu0 %v6847_v22  ;;  %v6949_v23 = vld [vmem:[%s8438_s2] sm:$0xff]  ;;  %v6963_v25 = vld [vmem:[%s8438_s2 + $0x58] sm:$0xff]  ;;  %v6976_v39 = vld [vmem:[%s8438_s2 + $0x8] sm:$0xff]  ;;  %s6852_s30 = smov 112   ;;  %s6853_s14 = smov 113  }
   0x3   :  { %v57_v6 = vmul.f32 %v6916_v1, %v6916_v1  ;;  %v49_v8 = vsel %vm45_vm0, %v6916_v1, 0.0  ;;  %v37_v33 = vld [vmem:[%s8439_s3] sm:$0xf]  ;;  %v6983_v40 = vld [vmem:[%s8438_s2 + $0x10] sm:$0xff]  ;;  %34 = vst [vmem:[#allocation2 + $0x14] sm:$0xf] %v6851_v41 }
   0x4   :  { %v47_v7 = vsel %vm45_vm0, %v6920_v2, 0.0  ;;  %v60_v10 = vcombine.high %v56_v5, %v56_v5  ;;  %v64_v12 = vsel %vm45_vm0, %v56_v5, 0.0  ;;  %v51_v13 = vsel %vm45_vm0, %v6924_v3, 0.0  ;;  %v38_v36 = vld [vmem:[%s8440_s4] sm:$0xf]  ;;  %v6990_v42 = vld [vmem:[%s8438_s2 + $0x18] sm:$0xff] }
   0x5   :  { %v48_v9 = vadd.f32 %v47_v7, %v46_v4  ;;  %v61_v11 = vcombine.high %v57_v6, %v57_v6  ;;  %v67_v16 = vsel %vm45_vm0, %v57_v6, 0.0  ;;  %v6997_v43 = vld [vmem:[%s8438_s2 + $0x20] sm:$0xff]  ;;  %v7004_v44 = vld [vmem:[%s8438_s2 + $0x28] sm:$0xff]  ;;  %v7011_v45 = vld [vmem:[%s8438_s2 + $0x30] sm:$0xff]  ;;  %v6854_v47 = vmov 839922192  }
   0x6   :  { %v65_v15 = vsel %vm45_vm0, %v60_v10, 0.0  ;;  %v7018_v46 = vld [vmem:[%s8438_s2 + $0x50] sm:$0xff]  ;;  %v86_v48 = vunpack.c.l.s4 %v6854_v47  ;;  %v89_v51 = vshrl.u32 %v88_v49, 7  ;;  %vm138_vm1 = vcmask 908288   ;;  %s6855_s24 = smov 17   ;;  %s6856_s29 = smov 15  }
   0x7   :  { %v50_v14 = vadd.f32 %v49_v8, %v48_v9  ;;  %v66_v17 = vadd.f32 %v65_v15, %v64_v12  ;;  %v69_v19 = vsel %vm45_vm0, %v61_v11, 0.0  ;;  %vm390_vm2 = vcmask 916480   ;;  %s6857_s16 = smov 16   ;;  %v7084_v49 = vld [vmem:[%s8438_s2 + $0x80] sm:$0xff] }
   0x8   :  { %v87_v50 = vunpack.c.0.s8 %v86_v48  ;;  %vm548_vm3 = vcmask 924672   ;;  %vm706_vm4 = vcmask 1039360   ;;  %vm744_vm5 = vcmask 7168  }
   0x9   :  { %v52_v18 = vadd.f32 %v51_v13, %v50_v14  ;;  %v68_v20 = vadd.f32 %v67_v16, %v66_v17  ;;  %vm175_vm6 = vcmask 138240   ;;  %vm184_vm7 = vcmask 1041408  }
   0xa   :  { %v7022_v52 = vsub.s32 %v87_v50, %v89_v51  ;;  %vm180_vm8 = vcmask 31744   ;;  %vm586_vm9 = vcmask 121856   ;;  %vm428_vm10 = vcmask 130048  }
   0xb   :  { %53 = vadd.xlane.f32.xlu0 %v52_v18  ;;  %v70_v21 = vadd.f32 %v69_v19, %v68_v20 }
   0xf   :  { %71 = vadd.xlane.f32.xlu0 %v70_v21 }
  0x25   :  { %132 = vrot.lane.b32.xlu0 %v6949_v23, %s6848_s15 }
  0x29   :  { %702 = vrot.lane.b32.xlu0 %v6956_v24, %s6849_s18 }
  0x2d   :  { %860 = vrot.lane.b32.xlu0 %v6963_v25, %s6850_s21 }
  0x98   :  { %v54_v26 = vpop.xlane.xlu0 %53 }
  0x99   :  { %v55_v27 = vmul.f32 0.001953125, %v54_v26 }
  0x9b   :  { %v74_v29 = vmul.f32 %v55_v27, %v55_v27 }
  0x9c   :  { %v72_v28 = vpop.xlane.xlu0 %71 }
  0x9d   :  { %v73_v30 = vmul.f32 0.001953125, %v72_v28 }
  0x9f   :  { %v75_v31 = vsub.f32 %v73_v30, %v74_v29  ;;  %v7050_v29 = vld [vmem:[%s8438_s2 + $0x60] sm:$0xff] }
  0xa0   :  { %v133_v59 = vpop.permute.xlu0 %132 }
  0xa1   :  { %v76_v32 = vadd.f32 1e-05, %v75_v31  ;;  %v136_v6 = vrot.slane %v133_v59, 4 }
  0xa3   :  { %6831 = vrsqrt.f32 %v76_v32  ;;  %v139_v8 = vsel %vm138_vm1, %v136_v6, %v133_v59  ;;  %v7057_v32 = vld [vmem:[%s8438_s2 + $0x68] sm:$0xff] }
  0xad   :  { %v6832_v34 = vpop.eup %6831 }
  0xae   :  { %v78_v35 = vmul.f32 %v6832_v34, %v37_v33  ;;  %v7065_v34 = vld [vmem:[%s8438_s2 + $0x70] sm:$0xff] }
  0xb0   :  { %83 = vperm.xlu1 %6823, %v78_v35   ;;  %v79_v37 = vmul.f32 %v78_v35, %v55_v27 }
  0xb2   :  { %v80_v38 = vsub.f32 %v38_v36, %v79_v37  ;;  %v7074_v37 = vld [vmem:[%s8438_s2 + $0x78] sm:$0xff] }
  0xb4   :  { %97 = vperm.xlu1 %6823, %v80_v38  }
  0xb8   :  { %134 = vrot.lane.b32.xlu1 %v6976_v39, %s6848_s15 }
  0xbc   :  { %384 = vrot.lane.b32.xlu1 %v6983_v40, %s6852_s30 }
  0xc0   :  { %386 = vrot.lane.b32.xlu1 %v6990_v42, %s6852_s30 }
  0xc4   :  { %542 = vrot.lane.b32.xlu1 %v6997_v43, %s6853_s14 }
  0xc8   :  { %544 = vrot.lane.b32.xlu1 %v7004_v44, %s6853_s14 }
  0xcc   :  { %700 = vrot.lane.b32.xlu1 %v7011_v45, %s6849_s18 }
  0xd0   :  { %858 = vrot.lane.b32.xlu1 %v7018_v46, %s6850_s21 }
 0x12f   :  { %v84_v53 = vpop.permute.xlu1 %83 }
 0x130   :  { %v91_v54 = vrot.slane %v84_v53, %v7022_v52 }
 0x132   :  { %v93_v56 = vmul.f32 %v91_v54, %v6911_v0  ;;  %v94_v57 = vmul.f32 %v91_v54, %v6916_v1 }
 0x133   :  { %v98_v55 = vpop.permute.xlu1 %97 }
 0x134   :  { %v105_v58 = vrot.slane %v98_v55, %v7022_v52 }
 0x136   :  { %v107_v60 = vadd.f32 %v105_v58, %v93_v56  ;;  %v108_v61 = vadd.f32 %v105_v58, %v94_v57 }
 0x137   :  { %v135_v62 = vpop.permute.xlu1 %134 }
 0x138   :  { %v7028_v63 = vmax.f32 %v107_v60, 0.0  ;;  %v7030_v4 = vmax.f32 %v108_v61, 0.0  ;;  %v137_v5 = vrot.slane %v135_v62, 4 }
 0x13a   :  { %111 = vst [vmem:[#allocation2 + $0x4] sm:$0xff] %v7028_v63  ;;  %112 = vst [vmem:[#allocation2 + $0xc] sm:$0xff] %v7030_v4  ;;  %v140_v0 = vsel %vm45_vm0, %v136_v6, %v137_v5 }
 0x13b   :  { %v141_v1 = vsel %vm138_vm1, %v140_v0, %v135_v62  ;;  %v385_v12 = vpop.permute.xlu1 %384  ;;  %v703_v0 = vpop.permute.xlu0 %702 }
 0x13c   :  { %v388_v26 = vrot.slane %v385_v12, 4 }
 0x13e   :  { %v391_v30 = vsel %vm390_vm2, %v388_v26, %v385_v12  ;;  %v705_v12 = vrot.slane %v703_v0, 4 }
 0x13f   :  { %v387_v20 = vpop.permute.xlu1 %386 }
 0x140   :  { %v389_v27 = vrot.slane %v387_v20, 4 }
 0x141   :  { %v7036_v7 = vld [vmem:[#allocation2] sm:$0xff]  ;;  %v7039_v9 = vld [vmem:[#allocation2 + $0x8] sm:$0xff]  ;;  %v127_v15 = vld [vmem:[#allocation2 + $0x10] sm:$0xf] }
 0x142   :  { %v145_v10 = vmul.f32 %v7036_v7, %v139_v8  ;;  %v146_v11 = vmul.f32 %v7039_v9, %v141_v1  ;;  %v147_v19 = vmul.f32 %v137_v5, %v127_v15  ;;  %v392_v33 = vsel %vm45_vm0, %v388_v26, %v389_v27  ;;  %v378_v50 = vld [vmem:[#allocation2 + $0x10] sm:$0xf]  ;;  %v7099_v8 = vld [vmem:[%s8438_s2 + $0x88] sm:$0xff] }
 0x143   :  { %v543_v31 = vpop.permute.xlu1 %542  ;;  %v397_v35 = vmul.f32 %v391_v30, %v7036_v7  ;;  %v393_v36 = vsel %vm390_vm2, %v392_v33, %v387_v20  ;;  %v399_v55 = vmul.f32 %v389_v27, %v378_v50  ;;  %v861_v27 = vpop.permute.xlu0 %860 }
 0x144   :  { %v154_v13 = vpack.c.bf16 %v145_v10, %v145_v10  ;;  %v150_v14 = vcombine.high %v145_v10, %v145_v10  ;;  %v151_v17 = vcombine.high %v146_v11, %v146_v11  ;;  %v156_v18 = vpack.c.bf16 %v146_v11, %v146_v11 }
 0x145   :  { %v158_v28 = vpack.c.bf16 %v147_v19, %v147_v19  ;;  %v398_v41 = vmul.f32 %v393_v36, %v7039_v9  ;;  %v406_v47 = vpack.c.bf16 %v397_v35, %v397_v35  ;;  %v546_v48 = vrot.slane %v543_v31, 4 }
 0x146   :  { %165 = vrot.lane.b32.xlu1 %v154_v13, %s6855_s24  ;;  %v155_v16 = vpack.c.bf16 %v150_v14, %v150_v14  ;;  %v157_v21 = vpack.c.bf16 %v151_v17, %v151_v17  ;;  %v402_v53 = vcombine.high %v397_v35, %v397_v35  ;;  %v410_v62 = vpack.c.bf16 %v399_v55, %v399_v55 }
 0x147   :  { %v545_v38 = vpop.permute.xlu1 %544  ;;  %v408_v54 = vpack.c.bf16 %v398_v41, %v398_v41  ;;  %v549_v56 = vsel %vm548_vm3, %v546_v48, %v543_v31  ;;  %v403_v59 = vcombine.high %v398_v41, %v398_v41  ;;  %v863_v33 = vrot.slane %v861_v27, 4 }
 0x148   :  { %167 = vrot.lane.b32.xlu0 %v155_v16, %s6855_s24  ;;  %v547_v51 = vrot.slane %v545_v38, 4  ;;  %v407_v58 = vpack.c.bf16 %v402_v53, %v402_v53  ;;  %v555_v60 = vmul.f32 %v549_v56, %v7036_v7 }
 0x149   :  { %v409_v6 = vpack.c.bf16 %v403_v59, %v403_v59 }
 0x14a   :  { %169 = vrot.lane.b32.xlu1 %v156_v18, %s6855_s24  ;;  %v550_v57 = vsel %vm45_vm0, %v546_v48, %v547_v51  ;;  %v560_v11 = vcombine.high %v555_v60, %v555_v60  ;;  %v564_v13 = vpack.c.bf16 %v555_v60, %v555_v60  ;;  %v536_v18 = vld [vmem:[#allocation2 + $0x10] sm:$0xf]  ;;  %v852_v60 = vld [vmem:[#allocation2 + $0x14] sm:$0xf] }
 0x14b   :  { %v701_v61 = vpop.permute.xlu1 %700  ;;  %v551_v5 = vsel %vm548_vm3, %v550_v57, %v545_v38  ;;  %v557_v26 = vmul.f32 %v547_v51, %v536_v18 }
 0x14c   :  { %171 = vrot.lane.b32.xlu0 %v157_v21, %s6855_s24  ;;  %v704_v1 = vrot.slane %v701_v61, 4  ;;  %v556_v10 = vmul.f32 %v551_v5, %v7039_v9  ;;  %v565_v16 = vpack.c.bf16 %v560_v11, %v560_v11 }
 0x14d   :  { %v568_v35 = vpack.c.bf16 %v557_v26, %v557_v26  ;;  %v159_v26 = vld [vmem:[%s8441_s5] sm:$0x3] }
 0x14e   :  { %173 = vrot.lane.b32.xlu1 %v158_v28, %s6855_s24  ;;  %v707_v14 = vsel %vm706_vm4, %v704_v1, %v701_v61  ;;  %v708_v15 = vsel %vm45_vm0, %v704_v1, %v705_v12  ;;  %v561_v17 = vcombine.high %v556_v10, %v556_v10  ;;  %v566_v21 = vpack.c.bf16 %v556_v10, %v556_v10 }
 0x14f   :  { %v713_v19 = vmul.f32 %v707_v14, %v7036_v7  ;;  %v859_v20 = vpop.permute.xlu1 %858  ;;  %v709_v28 = vsel %vm706_vm4, %v708_v15, %v703_v0 }
 0x150   :  { %1016 = vrot.lane.b32.xlu0 %v7050_v29, %s6856_s29  ;;  %v567_v30 = vpack.c.bf16 %v561_v17, %v561_v17  ;;  %v862_v31 = vrot.slane %v859_v20, 4  ;;  %v714_v7 = vmul.f32 %v709_v28, %v7039_v9 }
 0x151   :  { %v718_v36 = vcombine.high %v713_v19, %v713_v19  ;;  %v722_v38 = vpack.c.bf16 %v713_v19, %v713_v19 }
 0x152   :  { %1018 = vrot.lane.b32.xlu1 %v7057_v32, %s6856_s29  ;;  %v865_v41 = vsel %vm744_vm5, %v862_v31, %v859_v20  ;;  %v866_v48 = vsel %vm45_vm0, %v862_v31, %v863_v33  ;;  %v719_v51 = vcombine.high %v714_v7, %v714_v7  ;;  %v121_v20 = vpack.c.bf16 %v7028_v63, %v7028_v63 }
 0x153   :  { %v723_v50 = vpack.c.bf16 %v718_v36, %v718_v36  ;;  %v871_v53 = vmul.f32 %v865_v41, %v7028_v63  ;;  %v867_v9 = vsel %vm744_vm5, %v866_v48, %v861_v27  ;;  %v123_v31 = vpack.c.bf16 %v7030_v4, %v7030_v4 }
 0x154   :  { %1174 = vrot.lane.b32.xlu0 %v7065_v34, %s6857_s16  ;;  %v725_v56 = vpack.c.bf16 %v719_v51, %v719_v51  ;;  %v872_v57 = vmul.f32 %v867_v9, %v7030_v4  ;;  %v283_v36 = vsel %vm184_vm7, %v121_v20, 0 }
 0x155   :  { %v876_v59 = vcombine.high %v871_v53, %v871_v53  ;;  %v880_v61 = vpack.c.bf16 %v871_v53, %v871_v53  ;;  %v289_v53 = vsel %vm184_vm7, %v123_v31, 0 }
 0x156   :  { %1176 = vrot.lane.b32.xlu1 %v7074_v37, %s6857_s16  ;;  %v877_v5 = vcombine.high %v872_v57, %v872_v57  ;;  %v882_v0 = vpack.c.bf16 %v872_v57, %v872_v57 }
 0x158   :  { %418 = vrot.lane.b32.xlu0 %v406_v47, %s6857_s16  ;;  %v694_v47 = vld [vmem:[#allocation2 + $0x10] sm:$0xf]  ;;  %v883_v1 = vpack.c.bf16 %v877_v5, %v877_v5 }
 0x159   :  { %v715_v55 = vmul.f32 %v705_v12, %v694_v47 }
 0x15a   :  { %1332 = vrot.lane.b32.xlu1 %v7084_v49, %s6855_s24 }
 0x15c   :  { %422 = vrot.lane.b32.xlu0 %v408_v54, %s6857_s16  ;;  %v724_v54 = vpack.c.bf16 %v714_v7, %v714_v7 }
 0x15e   :  { %420 = vrot.lane.b32.xlu1 %v407_v58, %s6857_s16  ;;  %v726_v58 = vpack.c.bf16 %v715_v55, %v715_v55 }
 0x160   :  { %426 = vrot.lane.b32.xlu0 %v410_v62, %s6857_s16  ;;  %v881_v62 = vpack.c.bf16 %v876_v59, %v876_v59 }
 0x162   :  { %424 = vrot.lane.b32.xlu1 %v409_v6, %s6857_s16  ;;  %v873_v6 = vmul.f32 %v863_v33, %v852_v60 }
 0x164   :  { %1334 = vrot.lane.b32.xlu0 %v7099_v8, %s6855_s24  ;;  %v884_v10 = vpack.c.bf16 %v873_v6, %v873_v6 }
 0x166   :  { %576 = vrot.lane.b32.xlu1 %v564_v13, %s6856_s29  ;;  %v117_v13 = vcombine.high %v7028_v63, %v7028_v63 }
 0x168   :  { %578 = vrot.lane.b32.xlu0 %v565_v16, %s6856_s29  ;;  %v122_v19 = vpack.c.bf16 %v117_v13, %v117_v13 }
 0x16a   :  { %580 = vrot.lane.b32.xlu1 %v566_v21, %s6856_s29  ;;  %v118_v21 = vcombine.high %v7030_v4, %v7030_v4 }
 0x16c   :  { %582 = vrot.lane.b32.xlu0 %v567_v30, %s6856_s29  ;;  %v124_v7 = vpack.c.bf16 %v118_v21, %v118_v21 }
 0x16e   :  { %584 = vrot.lane.b32.xlu1 %v568_v35, %s6856_s29 }
 0x170   :  { %734 = vrot.lane.b32.xlu0 %v722_v38, %s6850_s21 }
 0x172   :  { %736 = vrot.lane.b32.xlu1 %v723_v50, %s6850_s21 }
 0x174   :  { %738 = vrot.lane.b32.xlu0 %v724_v54, %s6850_s21 }
 0x176   :  { %740 = vrot.lane.b32.xlu1 %v725_v56, %s6850_s21 }
 0x178   :  { %742 = vrot.lane.b32.xlu0 %v726_v58, %s6850_s21 }
 0x17a   :  { %892 = vrot.lane.b32.xlu1 %v880_v61, %s6849_s18 }
 0x17c   :  { %894 = vrot.lane.b32.xlu0 %v881_v62, %s6849_s18  ;;  %v1010_v62 = vld [vmem:[#allocation2 + $0x14] sm:$0xf] }
 0x17e   :  { %896 = vrot.lane.b32.xlu1 %v882_v0, %s6849_s18 }
 0x180   :  { %898 = vrot.lane.b32.xlu0 %v883_v1, %s6849_s18 }
 0x182   :  { %900 = vrot.lane.b32.xlu1 %v884_v10, %s6849_s18  ;;  %v6392_v10 = vld [vmem:[%s8441_s5 + $0x8] sm:$0x3] }
 0x1b8   :  { %v166_v11 = vpop.permute.xlu1 %165 }
 0x1ba   :  { %v168_v12 = vpop.permute.xlu0 %167 }
 0x1bb   :  { %v176_v14 = vsel %vm175_vm6, %v166_v11, %v168_v12 }
 0x1bc   :  { %v170_v15 = vpop.permute.xlu1 %169  ;;  %v186_v18 = vsel %vm184_vm7, %v176_v14, 0 }
 0x1bd   :  { %v177_v16 = vsel %vm175_vm6, %v168_v12, %v170_v15 }
 0x1be   :  { %6393 = vmatprep.subr.msk.bf16.mxu0 %vm184_vm7, %v177_v16  ;;  %v172_v17 = vpop.permute.xlu0 %171 }
 0x1bf   :  { %198 = vmatpush1.bf16.msra.mxu0 %v186_v18  ;;  %v178_v27 = vsel %vm175_vm6, %v170_v15, %v172_v17 }
 0x1c0   :  { %v174_v28 = vpop.permute.xlu1 %173  ;;  %6397 = vmatprep.subr.msk.bf16.mxu0 %vm184_vm7, %v122_v19  ;;  %v192_v35 = vsel %vm184_vm7, %v178_v27, 0 }
 0x1c1   :  { %v179_v30 = vsel %vm175_vm6, %v172_v17, %v174_v28 }
 0x1c2   :  { %6395 = vmatprep.subr.msk.bf16.mxu1 %vm184_vm7, %v179_v30  ;;  %v1017_v33 = vpop.permute.xlu0 %1016  ;;  %6394 = vmatmul.mubr.msk.bf16.vlgmr.msra.gmra.mrb[0].mxu0 %vm180_vm8, %v159_v26 }
 0x1c3   :  { %v1020_v38 = vrot.slane %v1017_v33, 4  ;;  %239 = vmatpush1.bf16.msra.mxu1 %v192_v35  ;;  %295 = vmatpush1.bf16.msra.mxu0 %v283_v36  ;;  %v1168_v36 = vld [vmem:[#allocation2 + $0x14] sm:$0xf] }
 0x1c4   :  { %v1019_v41 = vpop.permute.xlu1 %1018  ;;  %6399 = vmatprep.subr.msk.bf16.mxu1 %vm184_vm7, %v124_v7  ;;  %326 = vmatprep.mubr.bf16.mxu0 %v6847_v22 }
 0x1c5   :  { %v1023_v47 = vsel %vm586_vm9, %v1020_v38, %v1017_v33  ;;  %v1021_v48 = vrot.slane %v1019_v41, 4 }
 0x1c6   :  { %v1029_v50 = vmul.f32 %v1023_v47, %v7028_v63  ;;  %v1175_v51 = vpop.permute.xlu0 %1174  ;;  %6396 = vmatmul.mubr.msk.bf16.vlgmr.msra.gmra.mrb[0].mxu1 %vm180_vm8, %v159_v26 }
 0x1c7   :  { %v1024_v54 = vsel %vm45_vm0, %v1020_v38, %v1021_v48  ;;  %v1178_v55 = vrot.slane %v1175_v51, 4  ;;  %336 = vmatpush1.bf16.msra.mxu1 %v289_v53  ;;  %367 = vmatprep.mubr.bf16.mxu1 %v6847_v22  ;;  %v1031_v14 = vmul.f32 %v1021_v48, %v1010_v62 }
 0x1c8   :  { %v1025_v9 = vsel %vm586_vm9, %v1024_v54, %v1019_v41  ;;  %v1177_v56 = vpop.permute.xlu1 %1176  ;;  %v1038_v57 = vpack.c.bf16 %v1029_v50, %v1029_v50  ;;  %v1034_v58 = vcombine.high %v1029_v50, %v1029_v50 }
 0x1c9   :  { %v1030_v59 = vmul.f32 %v1025_v9, %v7030_v4  ;;  %v1181_v60 = vsel %vm428_vm10, %v1178_v55, %v1175_v51  ;;  %v1179_v61 = vrot.slane %v1177_v56, 4  ;;  %v1042_v21 = vpack.c.bf16 %v1031_v14, %v1031_v14 }
 0x1ca   :  { %1050 = vrot.lane.b32.xlu0 %v1038_v57, %s6853_s14  ;;  %v419_v5 = vpop.permute.xlu0 %418  ;;  %v1039_v6 = vpack.c.bf16 %v1034_v58, %v1034_v58  ;;  %v1187_v12 = vmul.f32 %v1181_v60, %v7028_v63 }
 0x1cb   :  { %v1182_v0 = vsel %vm45_vm0, %v1178_v55, %v1179_v61  ;;  %v1040_v1 = vpack.c.bf16 %v1030_v59, %v1030_v59  ;;  %v1035_v11 = vcombine.high %v1030_v59, %v1030_v59  ;;  %v1189_v55 = vmul.f32 %v1179_v61, %v1168_v36 }
 0x1cc   :  { %v1333_v13 = vpop.permute.xlu1 %1332  ;;  %1052 = vrot.lane.b32.xlu1 %v1039_v6, %s6853_s14  ;;  %v1183_v15 = vsel %vm428_vm10, %v1182_v0, %v1177_v56  ;;  %v1192_v26 = vcombine.high %v1187_v12, %v1187_v12  ;;  %v1196_v33 = vpack.c.bf16 %v1187_v12, %v1187_v12  ;;  %v6403_v56 = vld [vmem:[%s8441_s5 + $0x2] sm:$0x3] }
 0x1cd   :  { %v1041_v16 = vpack.c.bf16 %v1035_v11, %v1035_v11  ;;  %v1336_v18 = vrot.slane %v1333_v13, 4  ;;  %v1188_v19 = vmul.f32 %v1183_v15, %v7030_v4  ;;  %v1200_v61 = vpack.c.bf16 %v1189_v55, %v1189_v55  ;;  %v1326_v11 = vld [vmem:[#allocation2 + $0x14] sm:$0xf] }
 0x1ce   :  { %1054 = vrot.lane.b32.xlu0 %v1040_v1, %s6853_s14  ;;  %v423_v17 = vpop.permute.xlu0 %422  ;;  %6398 = vmatmul.mubr.msk.bf16.vlgmr.msra.gmra.mrb[0].mxu0 %vm180_vm8, %v6392_v10  ;;  %v1197_v38 = vpack.c.bf16 %v1192_v26, %v1192_v26 }
 0x1cf   :  { %480 = vmatprep.mubr.bf16.mxu0 %v6847_v22  ;;  %v1339_v35 = vsel %vm175_vm6, %v1336_v18, %v1333_v13  ;;  %v1193_v41 = vcombine.high %v1188_v19, %v1188_v19  ;;  %v1198_v54 = vpack.c.bf16 %v1188_v19, %v1188_v19 }
 0x1d0   :  { %v421_v20 = vpop.permute.xlu1 %420  ;;  %1056 = vrot.lane.b32.xlu1 %v1041_v16, %s6853_s14  ;;  %v1345_v50 = vmul.f32 %v1339_v35, %v7028_v63 }
 0x1d1   :  { %v429_v27 = vsel %vm428_vm10, %v419_v5, %v421_v20  ;;  %v430_v28 = vsel %vm428_vm10, %v421_v20, %v423_v17  ;;  %v1199_v58 = vpack.c.bf16 %v1193_v41, %v1193_v41 }
 0x1d2   :  { %1058 = vrot.lane.b32.xlu0 %v1042_v21, %s6853_s14  ;;  %6404 = vmatprep.subr.msk.bf16.mxu0 %vm184_vm7, %v430_v28  ;;  %v427_v30 = vpop.permute.xlu0 %426  ;;  %v437_v31 = vsel %vm184_vm7, %v429_v27, 0  ;;  %v1350_v62 = vcombine.high %v1345_v50, %v1345_v50  ;;  %v1354_v1 = vpack.c.bf16 %v1345_v50, %v1345_v50  ;;  %v6410_v27 = vld [vmem:[%s8441_s5 + $0x4] sm:$0x3] }
 0x1d3   :  { %6400 = vmatmul.mubr.msk.bf16.vlgmr.msra.gmra.mrb[0].mxu1 %vm180_vm8, %v6392_v10  ;;  %449 = vmatpush1.bf16.msra.mxu0 %v437_v31 }
 0x1d4   :  { %v425_v7 = vpop.permute.xlu1 %424  ;;  %1208 = vrot.lane.b32.xlu1 %v1196_v33, %s6852_s30  ;;  %521 = vmatprep.mubr.bf16.mxu1 %v6847_v22  ;;  %v1355_v14 = vpack.c.bf16 %v1350_v62, %v1350_v62 }
 0x1d5   :  { %v431_v47 = vsel %vm428_vm10, %v423_v17, %v425_v7  ;;  %v432_v48 = vsel %vm428_vm10, %v425_v7, %v427_v30 }
 0x1d6   :  { %1210 = vrot.lane.b32.xlu0 %v1197_v38, %s6852_s30  ;;  %6406 = vmatprep.subr.msk.bf16.mxu1 %vm184_vm7, %v432_v48  ;;  %v1335_v51 = vpop.permute.xlu0 %1334  ;;  %v443_v53 = vsel %vm184_vm7, %v431_v47, 0 }
 0x1d7   :  { %v1337_v9 = vrot.slane %v1335_v51, 4  ;;  %490 = vmatpush1.bf16.msra.mxu1 %v443_v53 }
 0x1d8   :  { %v577_v57 = vpop.permute.xlu1 %576  ;;  %1212 = vrot.lane.b32.xlu1 %v1198_v54, %s6852_s30  ;;  %v6417_v54 = vld [vmem:[%s8441_s5 + $0x6] sm:$0x3] }
 0x1d9   :  { %v1340_v63 = vsel %vm45_vm0, %v1336_v18, %v1337_v9  ;;  %v1347_v18 = vmul.f32 %v1337_v9, %v1326_v11 }
 0x1da   :  { %v1341_v59 = vsel %vm175_vm6, %v1340_v63, %v1335_v51  ;;  %1214 = vrot.lane.b32.xlu0 %v1199_v58, %s6852_s30  ;;  %v579_v60 = vpop.permute.xlu0 %578  ;;  %6405 = vmatmul.mubr.msk.bf16.vlgmr.msra.gmra.mrb[0].mxu0 %vm180_vm8, %v6403_v56 }
 0x1db   :  { %v1346_v5 = vmul.f32 %v1341_v59, %v7030_v4  ;;  %v587_v6 = vsel %vm586_vm9, %v577_v57, %v579_v60  ;;  %638 = vmatprep.mubr.bf16.mxu0 %v6847_v22  ;;  %v1358_v30 = vpack.c.bf16 %v1347_v18, %v1347_v18 }
 0x1dc   :  { %v581_v0 = vpop.permute.xlu1 %580  ;;  %1216 = vrot.lane.b32.xlu1 %v1200_v61, %s6852_s30  ;;  %v595_v13 = vsel %vm184_vm7, %v587_v6, 0  ;;  %v6424_v61 = vld [vmem:[%s8441_s5 + $0xa] sm:$0x3] }
 0x1dd   :  { %v588_v10 = vsel %vm586_vm9, %v579_v60, %v581_v0  ;;  %v1351_v4 = vcombine.high %v1346_v5, %v1346_v5  ;;  %v1356_v17 = vpack.c.bf16 %v1346_v5, %v1346_v5 }
 0x1de   :  { %1366 = vrot.lane.b32.xlu0 %v1354_v1, %s6848_s15  ;;  %6411 = vmatprep.subr.msk.bf16.mxu0 %vm184_vm7, %v588_v10  ;;  %v583_v12 = vpop.permute.xlu0 %582 }
 0x1df   :  { %v589_v15 = vsel %vm586_vm9, %v581_v0, %v583_v12  ;;  %6407 = vmatmul.mubr.msk.bf16.vlgmr.msra.gmra.mrb[0].mxu1 %vm180_vm8, %v6403_v56  ;;  %607 = vmatpush1.bf16.msra.mxu0 %v595_v13  ;;  %v1357_v26 = vpack.c.bf16 %v1351_v4, %v1351_v4  ;;  %v6431_v13 = vld [vmem:[%s8441_s5 + $0xc] sm:$0x3] }
 0x1e0   :  { %v585_v16 = vpop.permute.xlu1 %584  ;;  %1368 = vrot.lane.b32.xlu1 %v1355_v14, %s6848_s15  ;;  %679 = vmatprep.mubr.bf16.mxu1 %v6847_v22  ;;  %v601_v21 = vsel %vm184_vm7, %v589_v15, 0 }
 0x1e1   :  { %v590_v19 = vsel %vm586_vm9, %v583_v12, %v585_v16 }
 0x1e2   :  { %1370 = vrot.lane.b32.xlu0 %v1356_v17, %s6848_s15  ;;  %6413 = vmatprep.subr.msk.bf16.mxu1 %vm184_vm7, %v590_v19  ;;  %v735_v20 = vpop.permute.xlu0 %734 }
 0x1e3   :  { %648 = vmatpush1.bf16.msra.mxu1 %v601_v21 }
 0x1e4   :  { %v737_v28 = vpop.permute.xlu1 %736  ;;  %1372 = vrot.lane.b32.xlu1 %v1357_v26, %s6848_s15 }
 0x1e5   :  { %v745_v31 = vsel %vm744_vm5, %v735_v20, %v737_v28 }
 0x1e6   :  { %1374 = vrot.lane.b32.xlu0 %v1358_v30, %s6848_s15  ;;  %v739_v33 = vpop.permute.xlu0 %738  ;;  %6412 = vmatmul.mubr.msk.bf16.vlgmr.msra.gmra.mrb[0].mxu0 %vm180_vm8, %v6410_v27  ;;  %v753_v7 = vsel %vm184_vm7, %v745_v31, 0  ;;  %v6438_v31 = vld [vmem:[%s8441_s5 + $0xe] sm:$0x3] }
 0x1e7   :  { %v746_v35 = vsel %vm744_vm5, %v737_v28, %v739_v33  ;;  %796 = vmatprep.mubr.bf16.mxu0 %v6847_v22 }
 0x1e8   :  { %v741_v36 = vpop.permute.xlu1 %740  ;;  %6418 = vmatprep.subr.msk.bf16.mxu0 %vm184_vm7, %v746_v35 }
 0x1e9   :  { %v747_v38 = vsel %vm744_vm5, %v739_v33, %v741_v36  ;;  %765 = vmatpush1.bf16.msra.mxu0 %v753_v7 }
 0x1ea   :  { %v743_v41 = vpop.permute.xlu0 %742  ;;  %v759_v50 = vsel %vm184_vm7, %v747_v38, 0 }
 0x1eb   :  { %v748_v47 = vsel %vm744_vm5, %v741_v36, %v743_v41  ;;  %6414 = vmatmul.mubr.msk.bf16.vlgmr.msra.gmra.mrb[0].mxu1 %vm180_vm8, %v6410_v27 }
 0x1ec   :  { %v893_v48 = vpop.permute.xlu1 %892  ;;  %6420 = vmatprep.subr.msk.bf16.mxu1 %vm184_vm7, %v748_v47  ;;  %837 = vmatprep.mubr.bf16.mxu1 %v6847_v22 }
 0x1ed   :  { %806 = vmatpush1.bf16.msra.mxu1 %v759_v50 }
 0x1ee   :  { %v895_v51 = vpop.permute.xlu0 %894 }
 0x1ef   :  { %v903_v53 = vsel %vm706_vm4, %v893_v48, %v895_v51 }
 0x1f0   :  { %v897_v55 = vpop.permute.xlu1 %896  ;;  %v911_v57 = vsel %vm184_vm7, %v903_v53, 0 }
 0x1f1   :  { %v904_v9 = vsel %vm706_vm4, %v895_v51, %v897_v55 }
 0x1f2   :  { %6425 = vmatprep.subr.msk.bf16.mxu0 %vm184_vm7, %v904_v9  ;;  %v899_v56 = vpop.permute.xlu0 %898  ;;  %6419 = vmatmul.mubr.msk.bf16.vlgmr.msra.gmra.mrb[0].mxu0 %vm180_vm8, %v6417_v54 }
 0x1f3   :  { %923 = vmatpush1.bf16.msra.mxu0 %v911_v57  ;;  %954 = vmatprep.mubr.bf16.mxu0 %v6847_v22  ;;  %v905_v58 = vsel %vm706_vm4, %v897_v55, %v899_v56  ;;  %v6445_v55 = vld [vmem:[%s8441_s5 + $0x10] sm:$0x3] }
 0x1f4   :  { %v901_v63 = vpop.permute.xlu1 %900  ;;  %v917_v60 = vsel %vm184_vm7, %v905_v58, 0 }
 0x1f5   :  { %v906_v59 = vsel %vm706_vm4, %v899_v56, %v901_v63 }
 0x1f6   :  { %6427 = vmatprep.subr.msk.bf16.mxu1 %vm184_vm7, %v906_v59 }
 0x1f7   :  { %6421 = vmatmul.mubr.msk.bf16.vlgmr.msra.gmra.mrb[0].mxu1 %vm180_vm8, %v6417_v54 }
 0x1f8   :  { %964 = vmatpush1.bf16.msra.mxu1 %v917_v60  ;;  %995 = vmatprep.mubr.bf16.mxu1 %v6847_v22 }
 0x1fe   :  { %6426 = vmatmul.mubr.msk.bf16.vlgmr.msra.gmra.mrb[0].mxu0 %vm180_vm8, %v6424_v61 }
 0x1ff   :  { %1112 = vmatprep.mubr.bf16.mxu0 %v6847_v22 }
 0x203   :  { %6428 = vmatmul.mubr.msk.bf16.vlgmr.msra.gmra.mrb[0].mxu1 %vm180_vm8, %v6424_v61 }
 0x204   :  { %1153 = vmatprep.mubr.bf16.mxu1 %v6847_v22 }
 0x23c   :  { %v1051_v62 = vpop.permute.xlu0 %1050 }
 0x23e   :  { %v1053_v5 = vpop.permute.xlu1 %1052 }
 0x23f   :  { %v1061_v6 = vsel %vm548_vm3, %v1051_v62, %v1053_v5 }
 0x240   :  { %v1055_v0 = vpop.permute.xlu0 %1054  ;;  %v1069_v11 = vsel %vm184_vm7, %v1061_v6, 0 }
 0x241   :  { %v1062_v1 = vsel %vm548_vm3, %v1053_v5, %v1055_v0 }
 0x242   :  { %v1057_v10 = vpop.permute.xlu1 %1056  ;;  %6432 = vmatprep.subr.msk.bf16.mxu0 %vm184_vm7, %v1062_v1 }
 0x243   :  { %v1063_v12 = vsel %vm548_vm3, %v1055_v0, %v1057_v10  ;;  %1081 = vmatpush1.bf16.msra.mxu0 %v1069_v11 }
 0x244   :  { %v1059_v14 = vpop.permute.xlu0 %1058  ;;  %v1075_v16 = vsel %vm184_vm7, %v1063_v12, 0 }
 0x245   :  { %v1064_v4 = vsel %vm548_vm3, %v1057_v10, %v1059_v14 }
 0x246   :  { %v1209_v15 = vpop.permute.xlu1 %1208  ;;  %6433 = vmatmul.mubr.msk.bf16.vlgmr.msra.gmra.mrb[0].mxu0 %vm180_vm8, %v6431_v13  ;;  %6434 = vmatprep.subr.msk.bf16.mxu1 %vm184_vm7, %v1064_v4 }
 0x247   :  { %1122 = vmatpush1.bf16.msra.mxu1 %v1075_v16  ;;  %1270 = vmatprep.mubr.bf16.mxu0 %v6847_v22 }
 0x248   :  { %v1211_v17 = vpop.permute.xlu0 %1210 }
 0x249   :  { %v1219_v18 = vsel %vm390_vm2, %v1209_v15, %v1211_v17 }
 0x24a   :  { %v1213_v19 = vpop.permute.xlu1 %1212  ;;  %6435 = vmatmul.mubr.msk.bf16.vlgmr.msra.gmra.mrb[0].mxu1 %vm180_vm8, %v6431_v13  ;;  %v1227_v26 = vsel %vm184_vm7, %v1219_v18, 0 }
 0x24b   :  { %v1220_v20 = vsel %vm390_vm2, %v1211_v17, %v1213_v19  ;;  %1311 = vmatprep.mubr.bf16.mxu1 %v6847_v22 }
 0x24c   :  { %6439 = vmatprep.subr.msk.bf16.mxu0 %vm184_vm7, %v1220_v20  ;;  %v1215_v21 = vpop.permute.xlu0 %1214 }
 0x24d   :  { %v1221_v27 = vsel %vm390_vm2, %v1213_v19, %v1215_v21  ;;  %1239 = vmatpush1.bf16.msra.mxu0 %v1227_v26 }
 0x24e   :  { %v1217_v28 = vpop.permute.xlu1 %1216  ;;  %v1233_v35 = vsel %vm184_vm7, %v1221_v27, 0 }
 0x24f   :  { %v1222_v30 = vsel %vm390_vm2, %v1215_v21, %v1217_v28 }
 0x250   :  { %6441 = vmatprep.subr.msk.bf16.mxu1 %vm184_vm7, %v1222_v30  ;;  %v1367_v33 = vpop.permute.xlu0 %1366 }
 0x251   :  { %1280 = vmatpush1.bf16.msra.mxu1 %v1233_v35 }
 0x252   :  { %v1369_v36 = vpop.permute.xlu1 %1368  ;;  %6440 = vmatmul.mubr.msk.bf16.vlgmr.msra.gmra.mrb[0].mxu0 %vm180_vm8, %v6438_v31 }
 0x253   :  { %v1377_v7 = vsel %vm138_vm1, %v1367_v33, %v1369_v36  ;;  %1428 = vmatprep.mubr.bf16.mxu0 %v6847_v22 }
 0x254   :  { %v1371_v38 = vpop.permute.xlu0 %1370  ;;  %v1385_v48 = vsel %vm184_vm7, %v1377_v7, 0 }
 0x255   :  { %v1378_v41 = vsel %vm138_vm1, %v1369_v36, %v1371_v38  ;;  %v6450_v36 = vld [vmem:[%s8439_s3 + $0x4] sm:$0xf] }
 0x256   :  { %v1373_v47 = vpop.permute.xlu1 %1372  ;;  %6442 = vmatmul.mubr.msk.bf16.vlgmr.msra.gmra.mrb[0].mxu1 %vm180_vm8, %v6438_v31  ;;  %6446 = vmatprep.subr.msk.bf16.mxu0 %vm184_vm7, %v1378_v41  ;;  %v6451_v41 = vld [vmem:[%s8440_s4 + $0x4] sm:$0xf] }
 0x257   :  { %v1379_v50 = vsel %vm138_vm1, %v1371_v38, %v1373_v47  ;;  %1397 = vmatpush1.bf16.msra.mxu0 %v1385_v48  ;;  %1469 = vmatprep.mubr.bf16.mxu1 %v6847_v22 }
 0x258   :  { %v1375_v51 = vpop.permute.xlu0 %1374  ;;  %v1391_v54 = vsel %vm184_vm7, %v1379_v50, 0 }
 0x259   :  { %v1380_v53 = vsel %vm138_vm1, %v1373_v47, %v1375_v51 }
 0x25a   :  { %6448 = vmatprep.subr.msk.bf16.mxu1 %vm184_vm7, %v1380_v53 }
 0x25b   :  { %1438 = vmatpush1.bf16.msra.mxu1 %v1391_v54 }
 0x25e   :  { %6447 = vmatmul.mubr.msk.bf16.vlgmr.msra.gmra.mrb[0].mxu0 %vm180_vm8, %v6445_v55 }
 0x25f   :  { %1656 = vmatprep.mubr.bf16.mxu0 %v6847_v22 }
 0x262   :  { %6449 = vmatmul.mubr.msk.bf16.vlgmr.msra.gmra.mrb[0].mxu1 %vm180_vm8, %v6445_v55 }
 0x263   :  { %1697 = vmatprep.mubr.bf16.mxu1 %v6847_v22 }
 0x331   :  { %v1430_v9 = vpop.f32.mrb[0].mxu0 }
 0x332   :  { %v1486_v56 = vsel %vm45_vm0, %v1430_v9, 0.0  ;;  %v1496_v57 = vmul.f32 %v1430_v9, %v1430_v9  ;;  %v1432_v58 = vpop.f32.mrb[1].mxu0 }
 0x333   :  { %v1487_v63 = vsel %vm45_vm0, %v1432_v58, 0.0  ;;  %v1497_v59 = vmul.f32 %v1432_v58, %v1432_v58  ;;  %v1434_v60 = vpop.f32.mrb[2].mxu0 }
 0x334   :  { %v1500_v61 = vsel %vm45_vm0, %v1496_v57, 0.0  ;;  %v1488_v62 = vadd.f32 %v1487_v63, %v1486_v56  ;;  %v1435_v5 = vpop.f32.mrb[3].mxu0 }
 0x335   :  { %v1501_v6 = vsel %vm45_vm0, %v1497_v59, 0.0  ;;  %v1471_v0 = vpop.f32.mrb[0].mxu1 }
 0x336   :  { %v1489_v1 = vsel %vm45_vm0, %v1471_v0, 0.0  ;;  %v1498_v10 = vmul.f32 %v1471_v0, %v1471_v0  ;;  %v1473_v11 = vpop.f32.mrb[1].mxu1  ;;  %v1502_v12 = vadd.f32 %v1501_v6, %v1500_v61 }
 0x337   :  { %v1499_v13 = vmul.f32 %v1473_v11, %v1473_v11  ;;  %v1475_v14 = vpop.f32.mrb[2].mxu1  ;;  %v1490_v4 = vadd.f32 %v1489_v1, %v1488_v62  ;;  %v1491_v15 = vsel %vm45_vm0, %v1473_v11, 0.0 }
 0x338   :  { %v1476_v16 = vpop.f32.mrb[3].mxu1  ;;  %v1503_v17 = vsel %vm45_vm0, %v1498_v10, 0.0 }
 0x339   :  { %v1492_v18 = vadd.f32 %v1491_v15, %v1490_v4  ;;  %v1504_v19 = vadd.f32 %v1503_v17, %v1502_v12  ;;  %v1505_v20 = vsel %vm45_vm0, %v1499_v13, 0.0 }
 0x33b   :  { %1493 = vadd.xlane.f32.xlu1 %v1492_v18  ;;  %v1506_v21 = vadd.f32 %v1505_v20, %v1504_v19 }
 0x33d   :  { %1507 = vadd.xlane.f32.xlu0 %v1506_v21 }
 0x3c8   :  { %v1494_v26 = vpop.xlane.xlu1 %1493 }
 0x3c9   :  { %v1495_v27 = vmul.f32 0.001953125, %v1494_v26 }
 0x3ca   :  { %v1508_v28 = vpop.xlane.xlu0 %1507 }
 0x3cb   :  { %v1510_v30 = vmul.f32 %v1495_v27, %v1495_v27  ;;  %v1509_v31 = vmul.f32 0.001953125, %v1508_v28 }
 0x3cd   :  { %v1511_v33 = vsub.f32 %v1509_v31, %v1510_v30 }
 0x3cf   :  { %v1512_v35 = vadd.f32 1e-05, %v1511_v33 }
 0x3d1   :  { %6833 = vrsqrt.f32 %v1512_v35 }
 0x3db   :  { %v6834_v7 = vpop.eup %6833 }
 0x3dc   :  { %v1514_v38 = vmul.f32 %v6834_v7, %v6450_v36 }
 0x3de   :  { %1519 = vperm.xlu0 %6824, %v1514_v38   ;;  %v1515_v47 = vmul.f32 %v1514_v38, %v1495_v27 }
 0x3e0   :  { %v1516_v48 = vsub.f32 %v6451_v41, %v1515_v47 }
 0x3e2   :  { %1528 = vperm.xlu1 %6823, %v1516_v48   ;;  %2120 = vrot.lane.b32.xlu0 %v7011_v45, %s6849_s18 }
 0x3e6   :  { %2275 = vrot.lane.b32.xlu0 %v7018_v46, %s6850_s21  ;;  %1562 = vrot.lane.b32.xlu1 %v6949_v23, %s6848_s15 }
 0x3ea   :  { %2430 = vrot.lane.b32.xlu0 %v7050_v29, %s6856_s29  ;;  %1564 = vrot.lane.b32.xlu1 %v6976_v39, %s6848_s15 }
 0x3ee   :  { %2585 = vrot.lane.b32.xlu0 %v7065_v34, %s6857_s16  ;;  %1810 = vrot.lane.b32.xlu1 %v6983_v40, %s6852_s30 }
 0x3f2   :  { %2740 = vrot.lane.b32.xlu0 %v7084_v49, %s6855_s24  ;;  %1812 = vrot.lane.b32.xlu1 %v6990_v42, %s6852_s30 }
 0x3f6   :  { %1965 = vrot.lane.b32.xlu1 %v6997_v43, %s6853_s14 }
 0x3fa   :  { %1967 = vrot.lane.b32.xlu1 %v7004_v44, %s6853_s14 }
 0x3fe   :  { %2122 = vrot.lane.b32.xlu1 %v6956_v24, %s6849_s18 }
 0x402   :  { %2277 = vrot.lane.b32.xlu1 %v6963_v25, %s6850_s21 }
 0x406   :  { %2432 = vrot.lane.b32.xlu1 %v7057_v32, %s6856_s29 }
 0x40a   :  { %2587 = vrot.lane.b32.xlu1 %v7074_v37, %s6857_s16 }
 0x40e   :  { %2742 = vrot.lane.b32.xlu1 %v7099_v8, %s6855_s24 }
 0x45d   :  { %v1520_v23 = vpop.permute.xlu0 %1519 }
 0x45e   :  { %v1522_v39 = vmul.f32 %v1520_v23, %v1430_v9  ;;  %v1523_v40 = vmul.f32 %v1520_v23, %v1432_v58  ;;  %v1524_v42 = vmul.f32 %v1520_v23, %v1471_v0  ;;  %v1525_v43 = vmul.f32 %v1520_v23, %v1473_v11 }
 0x461   :  { %v1529_v44 = vpop.permute.xlu1 %1528  ;;  %v2121_v30 = vpop.permute.xlu0 %2120 }
 0x462   :  { %v1531_v45 = vadd.f32 %v1529_v44, %v1522_v39  ;;  %v1532_v24 = vadd.f32 %v1529_v44, %v1523_v40  ;;  %v1533_v46 = vadd.f32 %v1529_v44, %v1524_v42  ;;  %v1534_v29 = vadd.f32 %v1529_v44, %v1525_v43 }
 0x463   :  { %v2124_v36 = vrot.slane %v2121_v30, 4 }
 0x464   :  { %v7345_v25 = vmax.f32 %v1531_v45, 0.0  ;;  %v7347_v34 = vmax.f32 %v1532_v24, 0.0  ;;  %v7349_v32 = vmax.f32 %v1533_v46, 0.0  ;;  %v7351_v37 = vmax.f32 %v1534_v29, 0.0 }
 0x465   :  { %v1563_v49 = vpop.permute.xlu1 %1562  ;;  %v2126_v42 = vsel %vm706_vm4, %v2124_v36, %v2121_v30  ;;  %v2276_v46 = vpop.permute.xlu0 %2275 }
 0x466   :  { %v7355_v8 = vcombine.low %v7345_v25, %v7347_v34  ;;  %v7359_v50 = vcombine.low %v7349_v32, %v7351_v37  ;;  %v1566_v54 = vrot.slane %v1563_v49, 4 }
 0x468   :  { %1547 = vst [vmem:[#allocation2 + $0x4] sm:$0xff] %v7355_v8  ;;  %1548 = vst [vmem:[#allocation2 + $0xc] sm:$0xff] %v7359_v50  ;;  %v1568_v58 = vsel %vm138_vm1, %v1566_v54, %v1563_v49 }
 0x469   :  { %v1565_v51 = vpop.permute.xlu1 %1564 }
 0x46a   :  { %v1567_v53 = vrot.slane %v1565_v51, 4 }
 0x46c   :  { %v1569_v9 = vsel %vm45_vm0, %v1566_v54, %v1567_v53 }
 0x46d   :  { %v1811_v55 = vpop.permute.xlu1 %1810  ;;  %v1570_v61 = vsel %vm138_vm1, %v1569_v9, %v1565_v51  ;;  %v2279_v9 = vrot.slane %v2276_v46, 4 }
 0x46e   :  { %v1814_v56 = vrot.slane %v1811_v55, 4 }
 0x46f   :  { %v1555_v57 = vld [vmem:[#allocation2] sm:$0xff]  ;;  %v1556_v59 = vld [vmem:[#allocation2 + $0x8] sm:$0xff]  ;;  %v1557_v11 = vld [vmem:[#allocation2 + $0x10] sm:$0xf] }
 0x470   :  { %v1574_v63 = vmul.f32 %v1568_v58, %v1555_v57  ;;  %v1816_v60 = vsel %vm390_vm2, %v1814_v56, %v1811_v55  ;;  %v1575_v6 = vmul.f32 %v1570_v61, %v1556_v59  ;;  %v1576_v17 = vmul.f32 %v1567_v53, %v1557_v11  ;;  %v1805_v23 = vld [vmem:[#allocation2 + $0x10] sm:$0xf] }
 0x471   :  { %v1822_v62 = vmul.f32 %v1816_v60, %v1555_v57  ;;  %v1813_v5 = vpop.permute.xlu1 %1812  ;;  %v1960_v43 = vld [vmem:[#allocation2 + $0x10] sm:$0xf]  ;;  %v2132_v49 = vmul.f32 %v2126_v42, %v1555_v57 }
 0x472   :  { %v1815_v0 = vrot.slane %v1813_v5, 4  ;;  %v1583_v1 = vpack.c.bf16 %v1574_v63, %v1574_v63  ;;  %v1585_v16 = vpack.c.bf16 %v1575_v6, %v1575_v6  ;;  %v1579_v20 = vcombine.high %v1574_v63, %v1574_v63 }
 0x473   :  { %v1831_v10 = vpack.c.bf16 %v1822_v62, %v1822_v62  ;;  %v1587_v28 = vpack.c.bf16 %v1576_v17, %v1576_v17  ;;  %v1580_v35 = vcombine.high %v1575_v6, %v1575_v6  ;;  %v1827_v55 = vcombine.high %v1822_v62, %v1822_v62 }
 0x474   :  { %v1817_v12 = vsel %vm45_vm0, %v1814_v56, %v1815_v0  ;;  %1595 = vrot.lane.b32.xlu0 %v1583_v1, %s6855_s24  ;;  %v1584_v33 = vpack.c.bf16 %v1579_v20, %v1579_v20  ;;  %v1824_v39 = vmul.f32 %v1815_v0, %v1805_v23  ;;  %v2141_v63 = vpack.c.bf16 %v2132_v49, %v2132_v49 }
 0x475   :  { %v1818_v13 = vsel %vm390_vm2, %v1817_v12, %v1813_v5  ;;  %1843 = vrot.lane.b32.xlu1 %v1831_v10, %s6857_s16  ;;  %v1966_v14 = vpop.permute.xlu1 %1965  ;;  %v1586_v40 = vpack.c.bf16 %v1580_v35, %v1580_v35  ;;  %v1832_v60 = vpack.c.bf16 %v1827_v55, %v1827_v55  ;;  %v2281_v5 = vsel %vm744_vm5, %v2279_v9, %v2276_v46 }
 0x476   :  { %v1823_v4 = vmul.f32 %v1818_v13, %v1556_v59  ;;  %v1969_v15 = vrot.slane %v1966_v14, 4  ;;  %v1835_v29 = vpack.c.bf16 %v1824_v39, %v1824_v39  ;;  %v2287_v62 = vmul.f32 %v2281_v5, %v7355_v8 }
 0x478   :  { %v1971_v18 = vsel %vm548_vm3, %v1969_v15, %v1966_v14  ;;  %1599 = vrot.lane.b32.xlu0 %v1585_v16, %s6855_s24  ;;  %v1833_v19 = vpack.c.bf16 %v1823_v4, %v1823_v4  ;;  %v1828_v61 = vcombine.high %v1823_v4, %v1823_v4  ;;  %v2296_v17 = vpack.c.bf16 %v2287_v62, %v2287_v62 }
 0x479   :  { %v1968_v21 = vpop.permute.xlu1 %1967  ;;  %v1977_v26 = vmul.f32 %v1971_v18, %v1555_v57  ;;  %v2115_v57 = vld [vmem:[#allocation2 + $0x10] sm:$0xf] }
 0x47a   :  { %v1970_v27 = vrot.slane %v1968_v21, 4  ;;  %1847 = vrot.lane.b32.xlu1 %v1833_v19, %s6857_s16  ;;  %v1834_v10 = vpack.c.bf16 %v1828_v61, %v1828_v61 }
 0x47b   :  { %v1986_v48 = vpack.c.bf16 %v1977_v26, %v1977_v26  ;;  %v1982_v13 = vcombine.high %v1977_v26, %v1977_v26 }
 0x47c   :  { %v1972_v31 = vsel %vm45_vm0, %v1969_v15, %v1970_v27  ;;  %1603 = vrot.lane.b32.xlu0 %v1587_v28, %s6855_s24  ;;  %v1979_v24 = vmul.f32 %v1970_v27, %v1960_v43  ;;  %v2137_v27 = vcombine.high %v2132_v49, %v2132_v49 }
 0x47d   :  { %v1973_v7 = vsel %vm548_vm3, %v1972_v31, %v1968_v21  ;;  %v2123_v38 = vpop.permute.xlu1 %2122  ;;  %v1987_v18 = vpack.c.bf16 %v1982_v13, %v1982_v13 }
 0x47e   :  { %v1978_v41 = vmul.f32 %v1973_v7, %v1556_v59  ;;  %v2125_v47 = vrot.slane %v2123_v38, 4  ;;  %1597 = vrot.lane.b32.xlu1 %v1584_v33, %s6855_s24  ;;  %v1990_v54 = vpack.c.bf16 %v1979_v24, %v1979_v24  ;;  %v2142_v35 = vpack.c.bf16 %v2137_v27, %v2137_v27 }
 0x480   :  { %1998 = vrot.lane.b32.xlu0 %v1986_v48, %s6856_s29  ;;  %v2127_v44 = vsel %vm45_vm0, %v2124_v36, %v2125_v47  ;;  %v1988_v45 = vpack.c.bf16 %v1978_v41, %v1978_v41  ;;  %v2134_v6 = vmul.f32 %v2125_v47, %v2115_v57  ;;  %v1983_v19 = vcombine.high %v1978_v41, %v1978_v41 }
 0x481   :  { %v2128_v51 = vsel %vm706_vm4, %v2127_v44, %v2123_v38  ;;  %v2278_v53 = vpop.permute.xlu1 %2277  ;;  %v2270_v38 = vld [vmem:[#allocation2 + $0x14] sm:$0xf] }
 0x482   :  { %1601 = vrot.lane.b32.xlu1 %v1586_v40, %s6855_s24  ;;  %v2133_v56 = vmul.f32 %v2128_v51, %v1556_v59  ;;  %v2280_v58 = vrot.slane %v2278_v53, 4  ;;  %v2431_v59 = vpop.permute.xlu0 %2430  ;;  %v2145_v14 = vpack.c.bf16 %v2134_v6, %v2134_v6  ;;  %v1989_v31 = vpack.c.bf16 %v1983_v19, %v1983_v19 }
 0x483   :  { %v2434_v4 = vrot.slane %v2431_v59, 4  ;;  %v2292_v40 = vcombine.high %v2287_v62, %v2287_v62 }
 0x484   :  { %2002 = vrot.lane.b32.xlu0 %v1988_v45, %s6856_s29  ;;  %v2143_v0 = vpack.c.bf16 %v2133_v56, %v2133_v56  ;;  %v2282_v1 = vsel %vm45_vm0, %v2279_v9, %v2280_v58  ;;  %v2138_v36 = vcombine.high %v2133_v56, %v2133_v56  ;;  %v2289_v23 = vmul.f32 %v2280_v58, %v2270_v38 }
 0x485   :  { %v2283_v11 = vsel %vm744_vm5, %v2282_v1, %v2278_v53  ;;  %v2433_v12 = vpop.permute.xlu1 %2432  ;;  %v2436_v20 = vsel %vm586_vm9, %v2434_v4, %v2431_v59  ;;  %v2297_v46 = vpack.c.bf16 %v2292_v40, %v2292_v40  ;;  %v2425_v53 = vld [vmem:[#allocation2 + $0x14] sm:$0xf]  ;;  %v1552_v40 = vpack.c.bf16 %v7347_v34, %v7347_v34 }
 0x486   :  { %1851 = vrot.lane.b32.xlu1 %v1835_v29, %s6857_s16  ;;  %v2288_v15 = vmul.f32 %v2283_v11, %v7359_v50  ;;  %v2435_v16 = vrot.slane %v2433_v12, 4  ;;  %v2442_v28 = vmul.f32 %v2436_v20, %v7355_v8  ;;  %v2586_v30 = vpop.permute.xlu0 %2585  ;;  %v2144_v48 = vpack.c.bf16 %v2138_v36, %v2138_v36 }
 0x487   :  { %v2589_v7 = vrot.slane %v2586_v30, 4  ;;  %v2300_v24 = vpack.c.bf16 %v2289_v23, %v2289_v23 }
 0x488   :  { %2006 = vrot.lane.b32.xlu0 %v1990_v54, %s6856_s29  ;;  %v2437_v21 = vsel %vm45_vm0, %v2434_v4, %v2435_v16  ;;  %v2298_v26 = vpack.c.bf16 %v2288_v15, %v2288_v15  ;;  %v2451_v41 = vpack.c.bf16 %v2442_v28, %v2442_v28  ;;  %v2293_v29 = vcombine.high %v2288_v15, %v2288_v15 }
 0x489   :  { %v2438_v33 = vsel %vm586_vm9, %v2437_v21, %v2433_v12  ;;  %v2591_v39 = vsel %vm428_vm10, %v2589_v7, %v2586_v30  ;;  %v2588_v43 = vpop.permute.xlu1 %2587  ;;  %v2447_v54 = vcombine.high %v2442_v28, %v2442_v28  ;;  %v2444_v56 = vmul.f32 %v2435_v16, %v2425_v53  ;;  %v2735_v21 = vld [vmem:[#allocation2 + $0x14] sm:$0xf] }
 0x48a   :  { %2153 = vrot.lane.b32.xlu1 %v2141_v63, %s6850_s21  ;;  %v2443_v47 = vmul.f32 %v2438_v33, %v7359_v50  ;;  %v2597_v44 = vmul.f32 %v2591_v39, %v7355_v8  ;;  %v2741_v45 = vpop.permute.xlu0 %2740  ;;  %v2590_v49 = vrot.slane %v2588_v43, 4  ;;  %v2299_v9 = vpack.c.bf16 %v2293_v29, %v2293_v29 }
 0x48b   :  { %v2744_v51 = vrot.slane %v2741_v45, 4  ;;  %v2452_v61 = vpack.c.bf16 %v2447_v54, %v2447_v54  ;;  %v1554_v29 = vpack.c.bf16 %v7351_v37, %v7351_v37  ;;  %v6452_v37 = vld [vmem:[%s8441_s5 + $0x1a] sm:$0x3] }
 0x48c   :  { %1845 = vrot.lane.b32.xlu0 %v1832_v60, %s6857_s16  ;;  %v2453_v42 = vpack.c.bf16 %v2443_v47, %v2443_v47  ;;  %v2606_v55 = vpack.c.bf16 %v2597_v44, %v2597_v44  ;;  %v2592_v58 = vsel %vm45_vm0, %v2589_v7, %v2590_v49  ;;  %v2448_v5 = vcombine.high %v2443_v47, %v2443_v47 }
 0x48d   :  { %v2746_v63 = vsel %vm175_vm6, %v2744_v51, %v2741_v45  ;;  %v2743_v60 = vpop.permute.xlu1 %2742  ;;  %v2593_v57 = vsel %vm428_vm10, %v2592_v58, %v2588_v43  ;;  %v2602_v11 = vcombine.high %v2597_v44, %v2597_v44  ;;  %v6453_v43 = vld [vmem:[%s8441_s5 + $0x12] sm:$0x3] }
 0x48e   :  { %2157 = vrot.lane.b32.xlu1 %v2143_v0, %s6850_s21  ;;  %v2752_v6 = vmul.f32 %v2746_v63, %v7355_v8  ;;  %v2455_v0 = vpack.c.bf16 %v2444_v56, %v2444_v56  ;;  %v2745_v1 = vrot.slane %v2743_v60, 4  ;;  %v2454_v62 = vpack.c.bf16 %v2448_v5, %v2448_v5 }
 0x48f   :  { %v2598_v59 = vmul.f32 %v2593_v57, %v7359_v50  ;;  %v2607_v15 = vpack.c.bf16 %v2602_v11, %v2602_v11  ;;  %v6464_v57 = vld [vmem:[%s8441_s5 + $0x14] sm:$0x3] }
 0x490   :  { %1849 = vrot.lane.b32.xlu0 %v1834_v10, %s6857_s16  ;;  %v2580_v10 = vld [vmem:[#allocation2 + $0x14] sm:$0xf]  ;;  %v2761_v12 = vpack.c.bf16 %v2752_v6, %v2752_v6  ;;  %v2747_v13 = vsel %vm45_vm0, %v2744_v51, %v2745_v1  ;;  %v2754_v28 = vmul.f32 %v2745_v1, %v2735_v21 }
 0x491   :  { %v2608_v4 = vpack.c.bf16 %v2598_v59, %v2598_v59  ;;  %v2748_v8 = vsel %vm175_vm6, %v2747_v13, %v2743_v60  ;;  %v2603_v16 = vcombine.high %v2598_v59, %v2598_v59  ;;  %v6471_v13 = vld [vmem:[%s8441_s5 + $0x16] sm:$0x3] }
 0x492   :  { %2161 = vrot.lane.b32.xlu1 %v2145_v14, %s6850_s21  ;;  %v2599_v14 = vmul.f32 %v2590_v49, %v2580_v10  ;;  %v2753_v19 = vmul.f32 %v2748_v8, %v7359_v50  ;;  %v2765_v33 = vpack.c.bf16 %v2754_v28, %v2754_v28  ;;  %v1553_v49 = vpack.c.bf16 %v7349_v32, %v7349_v32  ;;  %v6478_v28 = vld [vmem:[%s8441_s5 + $0x18] sm:$0x3] }
 0x493   :  { %v2609_v20 = vpack.c.bf16 %v2603_v16, %v2603_v16 }
 0x494   :  { %2308 = vrot.lane.b32.xlu0 %v2296_v17, %s6849_s18  ;;  %v2757_v17 = vcombine.high %v2752_v6, %v2752_v6  ;;  %v2758_v27 = vcombine.high %v2753_v19, %v2753_v19  ;;  %v2763_v30 = vpack.c.bf16 %v2753_v19, %v2753_v19  ;;  %v1716_v54 = vsel %vm184_vm7, %v1553_v49, 0 }
 0x496   :  { %2000 = vrot.lane.b32.xlu1 %v1987_v18, %s6856_s29  ;;  %v2610_v18 = vpack.c.bf16 %v2599_v14, %v2599_v14 }
 0x498   :  { %2312 = vrot.lane.b32.xlu0 %v2298_v26, %s6849_s18  ;;  %v2762_v26 = vpack.c.bf16 %v2757_v17, %v2757_v17 }
 0x49a   :  { %2004 = vrot.lane.b32.xlu1 %v1989_v31, %s6856_s29  ;;  %v2764_v31 = vpack.c.bf16 %v2758_v27, %v2758_v27 }
 0x49c   :  { %2155 = vrot.lane.b32.xlu0 %v2142_v35, %s6850_s21 }
 0x49e   :  { %2463 = vrot.lane.b32.xlu1 %v2451_v41, %s6853_s14 }
 0x4a0   :  { %2159 = vrot.lane.b32.xlu0 %v2144_v48, %s6850_s21 }
 0x4a2   :  { %2467 = vrot.lane.b32.xlu1 %v2453_v42, %s6853_s14  ;;  %v1551_v42 = vpack.c.bf16 %v7345_v25, %v7345_v25 }
 0x4a4   :  { %2316 = vrot.lane.b32.xlu0 %v2300_v24, %s6849_s18  ;;  %v1710_v25 = vsel %vm184_vm7, %v1551_v42, 0 }
 0x4a6   :  { %2310 = vrot.lane.b32.xlu1 %v2297_v46, %s6849_s18 }
 0x4a8   :  { %2618 = vrot.lane.b32.xlu0 %v2606_v55, %s6852_s30 }
 0x4aa   :  { %2314 = vrot.lane.b32.xlu1 %v2299_v9, %s6849_s18 }
 0x4ac   :  { %2465 = vrot.lane.b32.xlu0 %v2452_v61, %s6853_s14 }
 0x4ae   :  { %2471 = vrot.lane.b32.xlu1 %v2455_v0, %s6853_s14 }
 0x4b0   :  { %2469 = vrot.lane.b32.xlu0 %v2454_v62, %s6853_s14 }
 0x4b2   :  { %2773 = vrot.lane.b32.xlu1 %v2761_v12, %s6848_s15 }
 0x4b4   :  { %2622 = vrot.lane.b32.xlu0 %v2608_v4, %s6852_s30 }
 0x4b6   :  { %2620 = vrot.lane.b32.xlu1 %v2607_v15, %s6852_s30 }
 0x4b8   :  { %2626 = vrot.lane.b32.xlu0 %v2610_v18, %s6852_s30 }
 0x4ba   :  { %2624 = vrot.lane.b32.xlu1 %v2609_v20, %s6852_s30 }
 0x4bc   :  { %2775 = vrot.lane.b32.xlu0 %v2762_v26, %s6848_s15 }
 0x4be   :  { %2777 = vrot.lane.b32.xlu1 %v2763_v30, %s6848_s15 }
 0x4c0   :  { %2779 = vrot.lane.b32.xlu0 %v2764_v31, %s6848_s15 }
 0x4c2   :  { %2781 = vrot.lane.b32.xlu1 %v2765_v33, %s6848_s15 }
 0x4e6   :  { %v1596_v50 = vpop.permute.xlu0 %1595 }
 0x4e7   :  { %v1844_v35 = vpop.permute.xlu1 %1843 }
 0x4ea   :  { %v1600_v36 = vpop.permute.xlu0 %1599 }
 0x4ec   :  { %v1848_v7 = vpop.permute.xlu1 %1847 }
 0x4ee   :  { %v1604_v38 = vpop.permute.xlu0 %1603 }
 0x4f0   :  { %v1598_v41 = vpop.permute.xlu1 %1597 }
 0x4f1   :  { %v1605_v47 = vsel %vm175_vm6, %v1596_v50, %v1598_v41  ;;  %v1606_v48 = vsel %vm175_vm6, %v1598_v41, %v1600_v36  ;;  %v6485_v41 = vld [vmem:[%s8441_s5 + $0x1c] sm:$0x3] }
 0x4f2   :  { %v1999_v23 = vpop.permute.xlu0 %1998  ;;  %6454 = vmatprep.subr.msk.bf16.mxu0 %vm184_vm7, %v1606_v48  ;;  %v1613_v39 = vsel %vm184_vm7, %v1605_v47, 0 }
 0x4f3   :  { %1625 = vmatpush1.bf16.msra.mxu0 %v1613_v39 }
 0x4f4   :  { %6458 = vmatprep.subr.msk.bf16.mxu0 %vm184_vm7, %v1552_v40  ;;  %v1602_v44 = vpop.permute.xlu1 %1601 }
 0x4f5   :  { %v1607_v45 = vsel %vm175_vm6, %v1600_v36, %v1602_v44  ;;  %v1608_v24 = vsel %vm175_vm6, %v1602_v44, %v1604_v38 }
 0x4f6   :  { %v2003_v46 = vpop.permute.xlu0 %2002  ;;  %6455 = vmatmul.mubr.msk.bf16.vlgmr.msra.gmra.mrb[4].mxu0 %vm180_vm8, %v6453_v43  ;;  %6456 = vmatprep.subr.msk.bf16.mxu1 %vm184_vm7, %v1608_v24  ;;  %v1619_v34 = vsel %vm184_vm7, %v1607_v45, 0 }
 0x4f7   :  { %1666 = vmatpush1.bf16.msra.mxu1 %v1619_v34  ;;  %1722 = vmatpush1.bf16.msra.mxu0 %v1710_v25  ;;  %v6492_v25 = vld [vmem:[%s8441_s5 + $0x1e] sm:$0x3] }
 0x4f8   :  { %6460 = vmatprep.subr.msk.bf16.mxu1 %vm184_vm7, %v1554_v29  ;;  %v1852_v51 = vpop.permute.xlu1 %1851  ;;  %1753 = vmatprep.mubr.bf16.mxu0 %v6847_v22 }
 0x4fa   :  { %v2007_v53 = vpop.permute.xlu0 %2006  ;;  %6457 = vmatmul.mubr.msk.bf16.vlgmr.msra.gmra.mrb[4].mxu1 %vm180_vm8, %v6453_v43 }
 0x4fb   :  { %1763 = vmatpush1.bf16.msra.mxu1 %v1716_v54  ;;  %1794 = vmatprep.mubr.bf16.mxu1 %v6847_v22 }
 0x4fc   :  { %v2154_v32 = vpop.permute.xlu1 %2153 }
 0x4fe   :  { %v1846_v55 = vpop.permute.xlu0 %1845  ;;  %6459 = vmatmul.mubr.msk.bf16.vlgmr.msra.gmra.mrb[8].mxu0 %vm180_vm8, %v6452_v37 }
 0x4ff   :  { %v1853_v9 = vsel %vm428_vm10, %v1844_v35, %v1846_v55  ;;  %v1854_v56 = vsel %vm428_vm10, %v1846_v55, %v1848_v7  ;;  %1904 = vmatprep.mubr.bf16.mxu0 %v6847_v22 }
 0x500   :  { %6465 = vmatprep.subr.msk.bf16.mxu0 %vm184_vm7, %v1854_v56  ;;  %v2158_v58 = vpop.permute.xlu1 %2157  ;;  %v1861_v63 = vsel %vm184_vm7, %v1853_v9, 0  ;;  %v6499_v9 = vld [vmem:[%s8441_s5 + $0x20] sm:$0x3] }
 0x501   :  { %1873 = vmatpush1.bf16.msra.mxu0 %v1861_v63 }
 0x502   :  { %v1850_v60 = vpop.permute.xlu0 %1849  ;;  %6461 = vmatmul.mubr.msk.bf16.vlgmr.msra.gmra.mrb[8].mxu1 %vm180_vm8, %v6452_v37 }
 0x503   :  { %v1855_v61 = vsel %vm428_vm10, %v1848_v7, %v1850_v60  ;;  %v1856_v5 = vsel %vm428_vm10, %v1850_v60, %v1852_v51  ;;  %1945 = vmatprep.mubr.bf16.mxu1 %v6847_v22 }
 0x504   :  { %6467 = vmatprep.subr.msk.bf16.mxu1 %vm184_vm7, %v1856_v5  ;;  %v2162_v6 = vpop.permute.xlu1 %2161  ;;  %v1867_v0 = vsel %vm184_vm7, %v1855_v61, 0 }
 0x505   :  { %1914 = vmatpush1.bf16.msra.mxu1 %v1867_v0 }
 0x506   :  { %v2309_v1 = vpop.permute.xlu0 %2308  ;;  %6466 = vmatmul.mubr.msk.bf16.vlgmr.msra.gmra.mrb[12].mxu0 %vm180_vm8, %v6464_v57 }
 0x507   :  { %2059 = vmatprep.mubr.bf16.mxu0 %v6847_v22 }
 0x508   :  { %v2001_v62 = vpop.permute.xlu1 %2000 }
 0x509   :  { %v2008_v59 = vsel %vm586_vm9, %v1999_v23, %v2001_v62  ;;  %v2009_v10 = vsel %vm586_vm9, %v2001_v62, %v2003_v46 }
 0x50a   :  { %v2313_v11 = vpop.permute.xlu0 %2312  ;;  %6468 = vmatmul.mubr.msk.bf16.vlgmr.msra.gmra.mrb[12].mxu1 %vm180_vm8, %v6464_v57  ;;  %6472 = vmatprep.subr.msk.bf16.mxu0 %vm184_vm7, %v2009_v10  ;;  %v2016_v12 = vsel %vm184_vm7, %v2008_v59, 0  ;;  %v6506_v59 = vld [vmem:[%s8441_s5 + $0x22] sm:$0x3] }
 0x50b   :  { %2028 = vmatpush1.bf16.msra.mxu0 %v2016_v12  ;;  %2100 = vmatprep.mubr.bf16.mxu1 %v6847_v22 }
 0x50c   :  { %v2005_v14 = vpop.permute.xlu1 %2004 }
 0x50d   :  { %v2010_v4 = vsel %vm586_vm9, %v2003_v46, %v2005_v14  ;;  %v2011_v8 = vsel %vm586_vm9, %v2005_v14, %v2007_v53 }
 0x50e   :  { %v2156_v15 = vpop.permute.xlu0 %2155  ;;  %6473 = vmatmul.mubr.msk.bf16.vlgmr.msra.gmra.mrb[16].mxu0 %vm180_vm8, %v6471_v13  ;;  %6474 = vmatprep.subr.msk.bf16.mxu1 %vm184_vm7, %v2011_v8  ;;  %v2022_v16 = vsel %vm184_vm7, %v2010_v4, 0 }
 0x50f   :  { %v2163_v17 = vsel %vm744_vm5, %v2154_v32, %v2156_v15  ;;  %2069 = vmatpush1.bf16.msra.mxu1 %v2022_v16  ;;  %v2164_v18 = vsel %vm744_vm5, %v2156_v15, %v2158_v58  ;;  %2214 = vmatprep.mubr.bf16.mxu0 %v6847_v22 }
 0x510   :  { %6479 = vmatprep.subr.msk.bf16.mxu0 %vm184_vm7, %v2164_v18  ;;  %v2464_v19 = vpop.permute.xlu1 %2463  ;;  %v2171_v20 = vsel %vm184_vm7, %v2163_v17, 0 }
 0x511   :  { %2183 = vmatpush1.bf16.msra.mxu0 %v2171_v20 }
 0x512   :  { %v2160_v21 = vpop.permute.xlu0 %2159  ;;  %6475 = vmatmul.mubr.msk.bf16.vlgmr.msra.gmra.mrb[16].mxu1 %vm180_vm8, %v6471_v13 }
 0x513   :  { %v2165_v26 = vsel %vm744_vm5, %v2158_v58, %v2160_v21  ;;  %v2166_v27 = vsel %vm744_vm5, %v2160_v21, %v2162_v6  ;;  %2255 = vmatprep.mubr.bf16.mxu1 %v6847_v22 }
 0x514   :  { %6481 = vmatprep.subr.msk.bf16.mxu1 %vm184_vm7, %v2166_v27  ;;  %v2468_v30 = vpop.permute.xlu1 %2467  ;;  %v2177_v31 = vsel %vm184_vm7, %v2165_v26, 0 }
 0x515   :  { %2224 = vmatpush1.bf16.msra.mxu1 %v2177_v31 }
 0x516   :  { %v2317_v33 = vpop.permute.xlu0 %2316  ;;  %6480 = vmatmul.mubr.msk.bf16.vlgmr.msra.gmra.mrb[20].mxu0 %vm180_vm8, %v6478_v28 }
 0x517   :  { %2369 = vmatprep.mubr.bf16.mxu0 %v6847_v22 }
 0x518   :  { %v2311_v50 = vpop.permute.xlu1 %2310 }
 0x519   :  { %v2318_v35 = vsel %vm706_vm4, %v2309_v1, %v2311_v50  ;;  %v2319_v36 = vsel %vm706_vm4, %v2311_v50, %v2313_v11 }
 0x51a   :  { %v2619_v7 = vpop.permute.xlu0 %2618  ;;  %6482 = vmatmul.mubr.msk.bf16.vlgmr.msra.gmra.mrb[20].mxu1 %vm180_vm8, %v6478_v28  ;;  %6486 = vmatprep.subr.msk.bf16.mxu0 %vm184_vm7, %v2319_v36  ;;  %v2326_v38 = vsel %vm184_vm7, %v2318_v35, 0 }
 0x51b   :  { %2338 = vmatpush1.bf16.msra.mxu0 %v2326_v38  ;;  %2410 = vmatprep.mubr.bf16.mxu1 %v6847_v22 }
 0x51c   :  { %v2315_v47 = vpop.permute.xlu1 %2314 }
 0x51d   :  { %v2320_v48 = vsel %vm706_vm4, %v2313_v11, %v2315_v47  ;;  %v2321_v23 = vsel %vm706_vm4, %v2315_v47, %v2317_v33 }
 0x51e   :  { %v2466_v39 = vpop.permute.xlu0 %2465  ;;  %6487 = vmatmul.mubr.msk.bf16.vlgmr.msra.gmra.mrb[24].mxu0 %vm180_vm8, %v6485_v41  ;;  %6488 = vmatprep.subr.msk.bf16.mxu1 %vm184_vm7, %v2321_v23  ;;  %v2332_v40 = vsel %vm184_vm7, %v2320_v48, 0 }
 0x51f   :  { %v2473_v42 = vsel %vm548_vm3, %v2464_v19, %v2466_v39  ;;  %2379 = vmatpush1.bf16.msra.mxu1 %v2332_v40  ;;  %v2474_v43 = vsel %vm548_vm3, %v2466_v39, %v2468_v30  ;;  %2524 = vmatprep.mubr.bf16.mxu0 %v6847_v22 }
 0x520   :  { %6493 = vmatprep.subr.msk.bf16.mxu0 %vm184_vm7, %v2474_v43  ;;  %v2472_v44 = vpop.permute.xlu1 %2471  ;;  %v2481_v45 = vsel %vm184_vm7, %v2473_v42, 0 }
 0x521   :  { %2493 = vmatpush1.bf16.msra.mxu0 %v2481_v45 }
 0x522   :  { %v2470_v24 = vpop.permute.xlu0 %2469  ;;  %6489 = vmatmul.mubr.msk.bf16.vlgmr.msra.gmra.mrb[24].mxu1 %vm180_vm8, %v6485_v41 }
 0x523   :  { %v2475_v46 = vsel %vm548_vm3, %v2468_v30, %v2470_v24  ;;  %v2476_v34 = vsel %vm548_vm3, %v2470_v24, %v2472_v44  ;;  %2565 = vmatprep.mubr.bf16.mxu1 %v6847_v22 }
 0x524   :  { %6495 = vmatprep.subr.msk.bf16.mxu1 %vm184_vm7, %v2476_v34  ;;  %v2774_v29 = vpop.permute.xlu1 %2773  ;;  %v2487_v49 = vsel %vm184_vm7, %v2475_v46, 0 }
 0x525   :  { %2534 = vmatpush1.bf16.msra.mxu1 %v2487_v49 }
 0x526   :  { %v2623_v51 = vpop.permute.xlu0 %2622  ;;  %6494 = vmatmul.mubr.msk.bf16.vlgmr.msra.gmra.mrb[28].mxu0 %vm180_vm8, %v6492_v25 }
 0x527   :  { %2679 = vmatprep.mubr.bf16.mxu0 %v6847_v22 }
 0x528   :  { %v2621_v53 = vpop.permute.xlu1 %2620 }
 0x529   :  { %v2628_v54 = vsel %vm390_vm2, %v2619_v7, %v2621_v53  ;;  %v2629_v37 = vsel %vm390_vm2, %v2621_v53, %v2623_v51 }
 0x52a   :  { %v2627_v32 = vpop.permute.xlu0 %2626  ;;  %6496 = vmatmul.mubr.msk.bf16.vlgmr.msra.gmra.mrb[28].mxu1 %vm180_vm8, %v6492_v25  ;;  %6500 = vmatprep.subr.msk.bf16.mxu0 %vm184_vm7, %v2629_v37  ;;  %v2636_v55 = vsel %vm184_vm7, %v2628_v54, 0 }
 0x52b   :  { %2648 = vmatpush1.bf16.msra.mxu0 %v2636_v55  ;;  %2720 = vmatprep.mubr.bf16.mxu1 %v6847_v22 }
 0x52c   :  { %v2625_v56 = vpop.permute.xlu1 %2624 }
 0x52d   :  { %v2630_v58 = vsel %vm390_vm2, %v2623_v51, %v2625_v56  ;;  %v2631_v63 = vsel %vm390_vm2, %v2625_v56, %v2627_v32 }
 0x52e   :  { %v2776_v60 = vpop.permute.xlu0 %2775  ;;  %6501 = vmatmul.mubr.msk.bf16.vlgmr.msra.gmra.mrb[32].mxu0 %vm180_vm8, %v6499_v9  ;;  %6502 = vmatprep.subr.msk.bf16.mxu1 %vm184_vm7, %v2631_v63  ;;  %v2642_v61 = vsel %vm184_vm7, %v2630_v58, 0 }
 0x52f   :  { %v2783_v5 = vsel %vm138_vm1, %v2774_v29, %v2776_v60  ;;  %2689 = vmatpush1.bf16.msra.mxu1 %v2642_v61  ;;  %2834 = vmatprep.mubr.bf16.mxu0 %v6847_v22 }
 0x530   :  { %v2778_v57 = vpop.permute.xlu1 %2777  ;;  %v2791_v1 = vsel %vm184_vm7, %v2783_v5, 0 }
 0x531   :  { %v2784_v6 = vsel %vm138_vm1, %v2776_v60, %v2778_v57 }
 0x532   :  { %v2780_v0 = vpop.permute.xlu0 %2779  ;;  %6503 = vmatmul.mubr.msk.bf16.vlgmr.msra.gmra.mrb[32].mxu1 %vm180_vm8, %v6499_v9  ;;  %6507 = vmatprep.subr.msk.bf16.mxu0 %vm184_vm7, %v2784_v6 }
 0x533   :  { %v2785_v62 = vsel %vm138_vm1, %v2778_v57, %v2780_v0  ;;  %2803 = vmatpush1.bf16.msra.mxu0 %v2791_v1  ;;  %2875 = vmatprep.mubr.bf16.mxu1 %v6847_v22 }
 0x534   :  { %v2782_v10 = vpop.permute.xlu1 %2781  ;;  %v2797_v12 = vsel %vm184_vm7, %v2785_v62, 0 }
 0x535   :  { %v2786_v11 = vsel %vm138_vm1, %v2780_v0, %v2782_v10 }
 0x536   :  { %6508 = vmatmul.mubr.msk.bf16.vlgmr.msra.gmra.mrb[36].mxu0 %vm180_vm8, %v6506_v59  ;;  %6509 = vmatprep.subr.msk.bf16.mxu1 %vm184_vm7, %v2786_v11 }
 0x537   :  { %2844 = vmatpush1.bf16.msra.mxu1 %v2797_v12  ;;  %3066 = vmatprep.mubr.bf16.mxu0 %v6847_v22 }
 0x53a   :  { %6510 = vmatmul.mubr.msk.bf16.vlgmr.msra.gmra.mrb[36].mxu1 %vm180_vm8, %v6506_v59 }
 0x53b   :  { %3107 = vmatprep.mubr.bf16.mxu1 %v6847_v22 }
 0x5c9   :  { %v1658_v13 = vpop.f32.mrb[4].mxu0 }
 0x5ca   :  { %v1660_v14 = vpop.f32.mrb[5].mxu0 }
 0x5cb   :  { %v1662_v4 = vpop.f32.mrb[6].mxu0 }
 0x5cc   :  { %v1663_v8 = vpop.f32.mrb[7].mxu0 }
 0x5cd   :  { %v1699_v15 = vpop.f32.mrb[4].mxu1 }
 0x5ce   :  { %v1701_v16 = vpop.f32.mrb[5].mxu1 }
 0x5cf   :  { %v1703_v17 = vpop.f32.mrb[6].mxu1 }
 0x5d0   :  { %v1704_v18 = vpop.f32.mrb[7].mxu1 }
 0x5d1   :  { %v1755_v19 = vpop.f32.mrb[8].mxu0 }
 0x5d2   :  { %v1756_v20 = vadd.f32 %v1755_v19, %v1658_v13  ;;  %v1757_v21 = vpop.f32.mrb[9].mxu0 }
 0x5d3   :  { %v1758_v26 = vadd.f32 %v1757_v21, %v1660_v14  ;;  %v1759_v27 = vpop.f32.mrb[10].mxu0 }
 0x5d4   :  { %v1760_v28 = vpop.f32.mrb[11].mxu0 }
 0x5d5   :  { %v1796_v30 = vpop.f32.mrb[8].mxu1 }
 0x5d6   :  { %v1797_v31 = vadd.f32 %v1796_v30, %v1699_v15  ;;  %v1798_v33 = vpop.f32.mrb[9].mxu1 }
 0x5d7   :  { %v1799_v50 = vadd.f32 %v1798_v33, %v1701_v16  ;;  %v1800_v35 = vpop.f32.mrb[10].mxu1 }
 0x5d8   :  { %v1801_v36 = vpop.f32.mrb[11].mxu1 }
 0x5d9   :  { %v1906_v7 = vpop.f32.mrb[12].mxu0 }
 0x5da   :  { %v1954_v38 = vadd.f32 %v1906_v7, %v1756_v20  ;;  %v1908_v41 = vpop.f32.mrb[13].mxu0 }
 0x5db   :  { %v1955_v47 = vadd.f32 %v1908_v41, %v1758_v26  ;;  %v1910_v48 = vpop.f32.mrb[14].mxu0 }
 0x5dc   :  { %v1911_v23 = vpop.f32.mrb[15].mxu0 }
 0x5dd   :  { %v1947_v39 = vpop.f32.mrb[12].mxu1 }
 0x5de   :  { %v1956_v40 = vadd.f32 %v1947_v39, %v1797_v31  ;;  %v1949_v42 = vpop.f32.mrb[13].mxu1 }
 0x5df   :  { %v1957_v43 = vadd.f32 %v1949_v42, %v1799_v50  ;;  %v1951_v44 = vpop.f32.mrb[14].mxu1 }
 0x5e0   :  { %v1952_v45 = vpop.f32.mrb[15].mxu1 }
 0x5e1   :  { %v2061_v24 = vpop.f32.mrb[16].mxu0 }
 0x5e2   :  { %v2109_v46 = vadd.f32 %v2061_v24, %v1954_v38  ;;  %v2063_v34 = vpop.f32.mrb[17].mxu0 }
 0x5e3   :  { %v2110_v25 = vadd.f32 %v2063_v34, %v1955_v47  ;;  %v2065_v29 = vpop.f32.mrb[18].mxu0 }
 0x5e4   :  { %v2066_v49 = vpop.f32.mrb[19].mxu0 }
 0x5e5   :  { %v2102_v51 = vpop.f32.mrb[16].mxu1  ;;  %v6845_v49 = vld [vmem:[%s8437_s0] sm:$0xff] }
 0x5e6   :  { %v2111_v53 = vadd.f32 %v2102_v51, %v1956_v40  ;;  %v2104_v54 = vpop.f32.mrb[17].mxu1 }
 0x5e7   :  { %v2112_v37 = vadd.f32 %v2104_v54, %v1957_v43  ;;  %v2106_v32 = vpop.f32.mrb[18].mxu1 }
 0x5e8   :  { %v2107_v55 = vpop.f32.mrb[19].mxu1 }
 0x5e9   :  { %v2216_v9 = vpop.f32.mrb[20].mxu0 }
 0x5ea   :  { %v2264_v56 = vadd.f32 %v2216_v9, %v2109_v46  ;;  %v2218_v58 = vpop.f32.mrb[21].mxu0 }
 0x5eb   :  { %v2265_v63 = vadd.f32 %v2218_v58, %v2110_v25  ;;  %v2220_v60 = vpop.f32.mrb[22].mxu0 }
 0x5ec   :  { %v2221_v61 = vpop.f32.mrb[23].mxu0 }
 0x5ed   :  { %v2257_v5 = vpop.f32.mrb[20].mxu1 }
 0x5ee   :  { %v2266_v57 = vadd.f32 %v2257_v5, %v2111_v53  ;;  %v2259_v6 = vpop.f32.mrb[21].mxu1 }
 0x5ef   :  { %v2267_v0 = vadd.f32 %v2259_v6, %v2112_v37  ;;  %v2261_v1 = vpop.f32.mrb[22].mxu1 }
 0x5f0   :  { %v2262_v62 = vpop.f32.mrb[23].mxu1 }
 0x5f1   :  { %v2371_v59 = vpop.f32.mrb[24].mxu0 }
 0x5f2   :  { %v2419_v10 = vadd.f32 %v2371_v59, %v2264_v56  ;;  %v2373_v11 = vpop.f32.mrb[25].mxu0 }
 0x5f3   :  { %v2420_v12 = vadd.f32 %v2373_v11, %v2265_v63  ;;  %v2375_v13 = vpop.f32.mrb[26].mxu0 }
 0x5f4   :  { %v2376_v14 = vpop.f32.mrb[27].mxu0 }
 0x5f5   :  { %v2412_v4 = vpop.f32.mrb[24].mxu1 }
 0x5f6   :  { %v2421_v8 = vadd.f32 %v2412_v4, %v2266_v57  ;;  %v2414_v15 = vpop.f32.mrb[25].mxu1 }
 0x5f7   :  { %v2422_v16 = vadd.f32 %v2414_v15, %v2267_v0  ;;  %v2416_v17 = vpop.f32.mrb[26].mxu1 }
 0x5f8   :  { %v2417_v18 = vpop.f32.mrb[27].mxu1 }
 0x5f9   :  { %v2526_v19 = vpop.f32.mrb[28].mxu0 }
 0x5fa   :  { %v2574_v20 = vadd.f32 %v2526_v19, %v2419_v10  ;;  %v2528_v21 = vpop.f32.mrb[29].mxu0 }
 0x5fb   :  { %v2575_v26 = vadd.f32 %v2528_v21, %v2420_v12  ;;  %v2530_v27 = vpop.f32.mrb[30].mxu0 }
 0x5fc   :  { %v2531_v28 = vpop.f32.mrb[31].mxu0 }
 0x5fd   :  { %v2567_v30 = vpop.f32.mrb[28].mxu1  ;;  %v6511_v28 = vld [vmem:[%s8439_s3 + $0x8] sm:$0xf] }
 0x5fe   :  { %v2576_v31 = vadd.f32 %v2567_v30, %v2421_v8  ;;  %v2569_v33 = vpop.f32.mrb[29].mxu1  ;;  %v5713_v30 = vld [vmem:[%s8442_s6] sm:$0xf] }
 0x5ff   :  { %v2577_v50 = vadd.f32 %v2569_v33, %v2422_v16  ;;  %v2571_v35 = vpop.f32.mrb[30].mxu1 }
 0x600   :  { %v2572_v36 = vpop.f32.mrb[31].mxu1  ;;  %v6512_v35 = vld [vmem:[%s8440_s4 + $0x8] sm:$0xf] }
 0x601   :  { %v2681_v7 = vpop.f32.mrb[32].mxu0 }
 0x602   :  { %v2729_v38 = vadd.f32 %v2681_v7, %v2574_v20  ;;  %v2683_v41 = vpop.f32.mrb[33].mxu0 }
 0x603   :  { %v2730_v47 = vadd.f32 %v2683_v41, %v2575_v26  ;;  %v2685_v48 = vpop.f32.mrb[34].mxu0 }
 0x604   :  { %v2686_v23 = vpop.f32.mrb[35].mxu0  ;;  %v7639_v48 = vld [vmem:[%s8438_s2 + $0x8] sm:$0xff] }
 0x605   :  { %v2722_v39 = vpop.f32.mrb[32].mxu1  ;;  %v7648_v23 = vld [vmem:[%s8438_s2 + $0x20] sm:$0xff] }
 0x606   :  { %v2731_v40 = vadd.f32 %v2722_v39, %v2576_v31  ;;  %v2724_v42 = vpop.f32.mrb[33].mxu1  ;;  %v7653_v39 = vld [vmem:[%s8438_s2 + $0x18] sm:$0xff] }
 0x607   :  { %v2732_v43 = vadd.f32 %v2724_v42, %v2577_v50  ;;  %v2726_v44 = vpop.f32.mrb[34].mxu1  ;;  %v7667_v42 = vld [vmem:[%s8438_s2 + $0x28] sm:$0xff] }
 0x608   :  { %v2727_v45 = vpop.f32.mrb[35].mxu1  ;;  %v7681_v44 = vld [vmem:[%s8438_s2 + $0x38] sm:$0xff] }
 0x609   :  { %v2836_v24 = vpop.f32.mrb[36].mxu0  ;;  %v7690_v45 = vld [vmem:[%s8438_s2 + $0x58] sm:$0xff] }
 0x60a   :  { %v2884_v46 = vadd.f32 %v2836_v24, %v2729_v38  ;;  %v2838_v34 = vpop.f32.mrb[37].mxu0  ;;  %v7627_v38 = vld [vmem:[%s8438_s2] sm:$0xff] }
 0x60b   :  { %v2885_v25 = vadd.f32 %v2838_v34, %v2730_v47  ;;  %v2840_v29 = vpop.f32.mrb[38].mxu0  ;;  %v7634_v47 = vld [vmem:[%s8438_s2 + $0x10] sm:$0xff] }
 0x60c   :  { %v7577_v51 = vadd.f32 %v6845_v49, %v2884_v46  ;;  %v2841_v53 = vpop.f32.mrb[39].mxu0 }
 0x60d   :  { %v7580_v54 = vadd.f32 %v2885_v25, %v6920_v2  ;;  %v2877_v37 = vpop.f32.mrb[36].mxu1  ;;  %v6846_v2 = vld [vmem:[%s8437_s0 + $0x8] sm:$0xff] }
 0x60e   :  { %v2886_v32 = vadd.f32 %v2877_v37, %v2731_v40  ;;  %v2879_v55 = vpop.f32.mrb[37].mxu1  ;;  %v2896_v9 = vsel %vm45_vm0, %v7577_v51, 0.0  ;;  %v2906_v56 = vmul.f32 %v7577_v51, %v7577_v51  ;;  %v7662_v40 = vld [vmem:[%s8438_s2 + $0x30] sm:$0xff] }
 0x60f   :  { %v2887_v58 = vadd.f32 %v2879_v55, %v2732_v43  ;;  %v2881_v63 = vpop.f32.mrb[38].mxu1  ;;  %v2897_v60 = vsel %vm45_vm0, %v7580_v54, 0.0  ;;  %v2907_v61 = vmul.f32 %v7580_v54, %v7580_v54  ;;  %v7676_v43 = vld [vmem:[%s8438_s2 + $0x50] sm:$0xff] }
 0x610   :  { %v7593_v5 = vadd.f32 %v6846_v2, %v2886_v32  ;;  %v2882_v57 = vpop.f32.mrb[39].mxu1  ;;  %v2898_v6 = vadd.f32 %v2897_v60, %v2896_v9  ;;  %v2910_v0 = vsel %vm45_vm0, %v2906_v56, 0.0 }
 0x611   :  { %v7597_v1 = vadd.f32 %v2887_v58, %v6924_v3  ;;  %v2911_v62 = vsel %vm45_vm0, %v2907_v61, 0.0 }
 0x612   :  { %v2899_v59 = vsel %vm45_vm0, %v7593_v5, 0.0  ;;  %v2908_v10 = vmul.f32 %v7593_v5, %v7593_v5  ;;  %v2912_v11 = vadd.f32 %v2911_v62, %v2910_v0 }
 0x613   :  { %v2900_v12 = vadd.f32 %v2899_v59, %v2898_v6  ;;  %v2901_v13 = vsel %vm45_vm0, %v7597_v1, 0.0  ;;  %v2909_v14 = vmul.f32 %v7597_v1, %v7597_v1 }
 0x614   :  { %v2913_v4 = vsel %vm45_vm0, %v2908_v10, 0.0 }
 0x615   :  { %v2902_v3 = vadd.f32 %v2901_v13, %v2900_v12  ;;  %v2914_v8 = vadd.f32 %v2913_v4, %v2912_v11  ;;  %v2915_v15 = vsel %vm45_vm0, %v2909_v14, 0.0 }
 0x617   :  { %2903 = vadd.xlane.f32.xlu0 %v2902_v3  ;;  %v2916_v16 = vadd.f32 %v2915_v15, %v2914_v8 }
 0x619   :  { %2917 = vadd.xlane.f32.xlu1 %v2916_v16 }
 0x6a4   :  { %v2904_v17 = vpop.xlane.xlu0 %2903 }
 0x6a5   :  { %v2905_v18 = vmul.f32 0.001953125, %v2904_v17 }
 0x6a6   :  { %v2918_v19 = vpop.xlane.xlu1 %2917 }
 0x6a7   :  { %v2919_v20 = vmul.f32 0.001953125, %v2918_v19  ;;  %v2920_v21 = vmul.f32 %v2905_v18, %v2905_v18 }
 0x6a9   :  { %v2921_v26 = vsub.f32 %v2919_v20, %v2920_v21 }
 0x6ab   :  { %v2922_v27 = vadd.f32 1e-05, %v2921_v26 }
 0x6ad   :  { %6835 = vrsqrt.f32 %v2922_v27 }
 0x6b7   :  { %v6836_v31 = vpop.eup %6835 }
 0x6b8   :  { %v2924_v33 = vmul.f32 %v6836_v31, %v6511_v28  ;;  %v7616_v50 = vmul.f32 %v6836_v31, %v5713_v30  ;;  %v7733_v30 = vld [vmem:[%s8438_s2 + $0x60] sm:$0xff]  ;;  %v7738_v31 = vld [vmem:[%s8438_s2 + $0x68] sm:$0xff] }
 0x6ba   :  { %2929 = vperm.xlu0 %6824, %v2924_v33   ;;  %v2925_v36 = vmul.f32 %v2924_v33, %v2905_v18  ;;  %v7622_v7 = vmul.f32 %v7616_v50, %v2905_v18 }
 0x6bc   :  { %v2926_v41 = vsub.f32 %v6512_v35, %v2925_v36  ;;  %v7749_v36 = vld [vmem:[%s8438_s2 + $0x70] sm:$0xff] }
 0x6be   :  { %2938 = vperm.xlu1 %6823, %v2926_v41   ;;  %2972 = vrot.lane.b32.xlu0 %v7627_v38, %s6848_s15  ;;  %v7754_v41 = vld [vmem:[%s8438_s2 + $0x78] sm:$0xff] }
 0x6c2   :  { %3220 = vrot.lane.b32.xlu0 %v7634_v47, %s6852_s30  ;;  %2974 = vrot.lane.b32.xlu1 %v7639_v48, %s6848_s15 }
 0x6c6   :  { %3375 = vrot.lane.b32.xlu0 %v7648_v23, %s6853_s14  ;;  %3222 = vrot.lane.b32.xlu1 %v7653_v39, %s6852_s30 }
 0x6ca   :  { %3530 = vrot.lane.b32.xlu0 %v7662_v40, %s6849_s18  ;;  %3377 = vrot.lane.b32.xlu1 %v7667_v42, %s6853_s14 }
 0x6ce   :  { %3685 = vrot.lane.b32.xlu0 %v7676_v43, %s6850_s21  ;;  %3532 = vrot.lane.b32.xlu1 %v7681_v44, %s6849_s18 }
 0x6d2   :  { %3687 = vrot.lane.b32.xlu1 %v7690_v45, %s6850_s21 }
 0x739   :  { %v2930_v24 = vpop.permute.xlu0 %2929 }
 0x73a   :  { %v2932_v46 = vmul.f32 %v2930_v24, %v7577_v51  ;;  %v2933_v34 = vmul.f32 %v2930_v24, %v7580_v54  ;;  %v2934_v25 = vmul.f32 %v2930_v24, %v7593_v5  ;;  %v2935_v29 = vmul.f32 %v2930_v24, %v7597_v1 }
 0x73d   :  { %v2939_v49 = vpop.permute.xlu1 %2938  ;;  %v2973_v2 = vpop.permute.xlu0 %2972 }
 0x73e   :  { %v2941_v53 = vadd.f32 %v2939_v49, %v2932_v46  ;;  %v2942_v37 = vadd.f32 %v2939_v49, %v2933_v34  ;;  %v2943_v32 = vadd.f32 %v2939_v49, %v2934_v25  ;;  %v2944_v55 = vadd.f32 %v2939_v49, %v2935_v29  ;;  %v7765_v49 = vld [vmem:[%s8438_s2 + $0x80] sm:$0xff] }
 0x73f   :  { %v2976_v6 = vrot.slane %v2973_v2, 4 }
 0x740   :  { %v7698_v9 = vmax.f32 %v2941_v53, 0.0  ;;  %v7700_v56 = vmax.f32 %v2942_v37, 0.0  ;;  %v7702_v58 = vmax.f32 %v2943_v32, 0.0  ;;  %v7704_v63 = vmax.f32 %v2944_v55, 0.0 }
 0x741   :  { %v2975_v57 = vpop.permute.xlu1 %2974  ;;  %v2978_v10 = vsel %vm138_vm1, %v2976_v6, %v2973_v2  ;;  %v3221_v19 = vpop.permute.xlu0 %3220 }
 0x742   :  { %v7708_v60 = vcombine.low %v7698_v9, %v7700_v56  ;;  %v7712_v61 = vcombine.low %v7702_v58, %v7704_v63  ;;  %v2977_v0 = vrot.slane %v2975_v57, 4  ;;  %v3224_v26 = vrot.slane %v3221_v19, 4 }
 0x744   :  { %2957 = vst [vmem:[#allocation2 + $0x4] sm:$0xff] %v7708_v60  ;;  %2958 = vst [vmem:[#allocation2 + $0xc] sm:$0xff] %v7712_v61  ;;  %v2979_v59 = vsel %vm45_vm0, %v2976_v6, %v2977_v0  ;;  %v3226_v33 = vsel %vm390_vm2, %v3224_v26, %v3221_v19  ;;  %v7782_v19 = vld [vmem:[%s8438_s2 + $0x88] sm:$0xff] }
 0x745   :  { %v2980_v12 = vsel %vm138_vm1, %v2979_v59, %v2975_v57  ;;  %v3223_v27 = vpop.permute.xlu1 %3222  ;;  %v3376_v34 = vpop.permute.xlu0 %3375 }
 0x746   :  { %v3225_v28 = vrot.slane %v3223_v27, 4  ;;  %v3379_v25 = vrot.slane %v3376_v34, 4 }
 0x748   :  { %v3227_v35 = vsel %vm45_vm0, %v3224_v26, %v3225_v28  ;;  %v3381_v57 = vsel %vm548_vm3, %v3379_v25, %v3376_v34 }
 0x749   :  { %v3228_v46 = vsel %vm390_vm2, %v3227_v35, %v3223_v27  ;;  %v3378_v29 = vpop.permute.xlu1 %3377 }
 0x74a   :  { %v3380_v2 = vrot.slane %v3378_v29, 4 }
 0x74b   :  { %v7716_v62 = vld [vmem:[#allocation2] sm:$0xff]  ;;  %v7720_v11 = vld [vmem:[#allocation2 + $0x8] sm:$0xff]  ;;  %v2967_v3 = vld [vmem:[#allocation2 + $0x10] sm:$0xf] }
 0x74c   :  { %v2984_v13 = vmul.f32 %v7716_v62, %v2978_v10  ;;  %v2985_v14 = vmul.f32 %v2980_v12, %v7720_v11  ;;  %v2986_v15 = vmul.f32 %v2977_v0, %v2967_v3  ;;  %v3232_v24 = vmul.f32 %v3226_v33, %v7716_v62  ;;  %v3215_v55 = vld [vmem:[#allocation2 + $0x10] sm:$0xf]  ;;  %v3531_v12 = vpop.permute.xlu0 %3530 }
 0x74d   :  { %v3233_v32 = vmul.f32 %v3228_v46, %v7720_v11  ;;  %v3234_v0 = vmul.f32 %v3225_v28, %v3215_v55  ;;  %v3370_v27 = vld [vmem:[#allocation2 + $0x10] sm:$0xf] }
 0x74e   :  { %v2993_v4 = vpack.c.bf16 %v2984_v13, %v2984_v13  ;;  %v2989_v8 = vcombine.high %v2984_v13, %v2984_v13  ;;  %v2990_v16 = vcombine.high %v2985_v14, %v2985_v14  ;;  %v2995_v17 = vpack.c.bf16 %v2985_v14, %v2985_v14 }
 0x74f   :  { %v2997_v21 = vpack.c.bf16 %v2986_v15, %v2986_v15  ;;  %v3237_v53 = vcombine.high %v3232_v24, %v3232_v24  ;;  %v3241_v37 = vpack.c.bf16 %v3232_v24, %v3232_v24  ;;  %v3238_v59 = vcombine.high %v3233_v32, %v3233_v32 }
 0x750   :  { %3005 = vrot.lane.b32.xlu0 %v2993_v4, %s6855_s24  ;;  %v2994_v18 = vpack.c.bf16 %v2989_v8, %v2989_v8  ;;  %v2996_v20 = vpack.c.bf16 %v2990_v16, %v2990_v16  ;;  %v3243_v10 = vpack.c.bf16 %v3233_v32, %v3233_v32  ;;  %v3382_v13 = vsel %vm45_vm0, %v3379_v25, %v3380_v2  ;;  %v3533_v4 = vpop.permute.xlu1 %3532 }
 0x751   :  { %v3242_v6 = vpack.c.bf16 %v3237_v53, %v3237_v53  ;;  %v3387_v14 = vmul.f32 %v3381_v57, %v7716_v62  ;;  %v3244_v3 = vpack.c.bf16 %v3238_v59, %v3238_v59  ;;  %v3245_v8 = vpack.c.bf16 %v3234_v0, %v3234_v0 }
 0x752   :  { %3007 = vrot.lane.b32.xlu1 %v2994_v18, %s6855_s24  ;;  %v3534_v15 = vrot.slane %v3531_v12, 4  ;;  %v3383_v16 = vsel %vm548_vm3, %v3382_v13, %v3378_v29  ;;  %v3389_v24 = vmul.f32 %v3380_v2, %v3370_v27  ;;  %v3686_v29 = vpop.permute.xlu0 %3685  ;;  %v3525_v13 = vld [vmem:[#allocation2 + $0x10] sm:$0xf] }
 0x753   :  { %v3392_v18 = vcombine.high %v3387_v14, %v3387_v14 }
 0x754   :  { %3009 = vrot.lane.b32.xlu0 %v2995_v17, %s6855_s24  ;;  %v3535_v17 = vrot.slane %v3533_v4, 4  ;;  %v3536_v26 = vsel %vm706_vm4, %v3534_v15, %v3531_v12  ;;  %v3688_v53 = vpop.permute.xlu1 %3687  ;;  %v3400_v55 = vpack.c.bf16 %v3389_v24, %v3389_v24 }
 0x755   :  { %v3397_v33 = vpack.c.bf16 %v3392_v18, %v3392_v18  ;;  %v3542_v35 = vmul.f32 %v3536_v26, %v7716_v62  ;;  %v3690_v0 = vrot.slane %v3688_v53, 4 }
 0x756   :  { %3011 = vrot.lane.b32.xlu1 %v2996_v20, %s6855_s24  ;;  %v3396_v20 = vpack.c.bf16 %v3387_v14, %v3387_v14  ;;  %v3537_v28 = vsel %vm45_vm0, %v3534_v15, %v3535_v17  ;;  %v3544_v14 = vmul.f32 %v3535_v17, %v3525_v13  ;;  %v3680_v15 = vld [vmem:[#allocation2 + $0x14] sm:$0xf] }
 0x757   :  { %v3538_v25 = vsel %vm706_vm4, %v3537_v28, %v3533_v4  ;;  %v3551_v62 = vpack.c.bf16 %v3542_v35, %v3542_v35  ;;  %v3699_v26 = vmul.f32 %v3690_v0, %v3680_v15 }
 0x758   :  { %3013 = vrot.lane.b32.xlu0 %v2997_v21, %s6855_s24  ;;  %v3388_v21 = vmul.f32 %v3383_v16, %v7720_v11  ;;  %v3543_v57 = vmul.f32 %v3538_v25, %v7720_v11 }
 0x75a   :  { %3840 = vrot.lane.b32.xlu1 %v7733_v30, %s6856_s29  ;;  %v3393_v46 = vcombine.high %v3388_v21, %v3388_v21  ;;  %v3398_v34 = vpack.c.bf16 %v3388_v21, %v3388_v21  ;;  %v3548_v59 = vcombine.high %v3543_v57, %v3543_v57  ;;  %v3553_v4 = vpack.c.bf16 %v3543_v57, %v3543_v57 }
 0x75c   :  { %3842 = vrot.lane.b32.xlu0 %v7738_v31, %s6856_s29  ;;  %v3399_v32 = vpack.c.bf16 %v3393_v46, %v3393_v46 }
 0x75e   :  { %3995 = vrot.lane.b32.xlu1 %v7749_v36, %s6857_s16 }
 0x760   :  { %3997 = vrot.lane.b32.xlu0 %v7754_v41, %s6857_s16 }
 0x762   :  { %3253 = vrot.lane.b32.xlu1 %v3241_v37, %s6857_s16  ;;  %v3547_v37 = vcombine.high %v3542_v35, %v3542_v35 }
 0x764   :  { %4150 = vrot.lane.b32.xlu0 %v7765_v49, %s6855_s24  ;;  %v3552_v2 = vpack.c.bf16 %v3547_v37, %v3547_v37  ;;  %v2962_v37 = vpack.c.bf16 %v7700_v56, %v7700_v56 }
 0x766   :  { %3257 = vrot.lane.b32.xlu1 %v3243_v10, %s6857_s16 }
 0x768   :  { %3255 = vrot.lane.b32.xlu0 %v3242_v6, %s6857_s16  ;;  %v3689_v6 = vrot.slane %v3686_v29, 4 }
 0x76a   :  { %3261 = vrot.lane.b32.xlu1 %v3245_v8, %s6857_s16  ;;  %v3691_v10 = vsel %vm744_vm5, %v3689_v6, %v3686_v29  ;;  %v3692_v12 = vsel %vm45_vm0, %v3689_v6, %v3690_v0 }
 0x76b   :  { %v3697_v11 = vmul.f32 %v3691_v10, %v7708_v60  ;;  %v3693_v8 = vsel %vm744_vm5, %v3692_v12, %v3688_v53 }
 0x76c   :  { %3259 = vrot.lane.b32.xlu0 %v3244_v3, %s6857_s16  ;;  %v3554_v3 = vpack.c.bf16 %v3548_v59, %v3548_v59  ;;  %v3698_v21 = vmul.f32 %v3693_v8, %v7712_v61  ;;  %v2963_v59 = vpack.c.bf16 %v7702_v58, %v7702_v58 }
 0x76d   :  { %v3702_v16 = vcombine.high %v3697_v11, %v3697_v11  ;;  %v3706_v18 = vpack.c.bf16 %v3697_v11, %v3697_v11 }
 0x76e   :  { %4152 = vrot.lane.b32.xlu1 %v7782_v19, %s6855_s24  ;;  %v3703_v27 = vcombine.high %v3698_v21, %v3698_v21  ;;  %v3708_v28 = vpack.c.bf16 %v3698_v21, %v3698_v21 }
 0x76f   :  { %v3707_v17 = vpack.c.bf16 %v3702_v16, %v3702_v16 }
 0x770   :  { %3408 = vrot.lane.b32.xlu0 %v3396_v20, %s6856_s29  ;;  %v3555_v20 = vpack.c.bf16 %v3544_v14, %v3544_v14  ;;  %v3709_v35 = vpack.c.bf16 %v3703_v27, %v3703_v27  ;;  %v3126_v14 = vsel %vm184_vm7, %v2963_v59, 0 }
 0x772   :  { %3410 = vrot.lane.b32.xlu1 %v3397_v33, %s6856_s29  ;;  %v3710_v33 = vpack.c.bf16 %v3699_v26, %v3699_v26 }
 0x774   :  { %3412 = vrot.lane.b32.xlu0 %v3398_v34, %s6856_s29 }
 0x776   :  { %3414 = vrot.lane.b32.xlu1 %v3399_v32, %s6856_s29  ;;  %v2961_v32 = vpack.c.bf16 %v7698_v9, %v7698_v9 }
 0x778   :  { %3416 = vrot.lane.b32.xlu0 %v3400_v55, %s6856_s29  ;;  %v6514_v55 = vld [vmem:[%s8441_s5 + $0x24] sm:$0x3]  ;;  %v3120_v9 = vsel %vm184_vm7, %v2961_v32, 0 }
 0x77a   :  { %3563 = vrot.lane.b32.xlu1 %v3551_v62, %s6850_s21 }
 0x77c   :  { %3565 = vrot.lane.b32.xlu0 %v3552_v2, %s6850_s21  ;;  %v2964_v2 = vpack.c.bf16 %v7704_v63, %v7704_v63 }
 0x77e   :  { %3567 = vrot.lane.b32.xlu1 %v3553_v4, %s6850_s21 }
 0x780   :  { %3569 = vrot.lane.b32.xlu0 %v3554_v3, %s6850_s21 }
 0x782   :  { %3571 = vrot.lane.b32.xlu1 %v3555_v20, %s6850_s21 }
 0x784   :  { %3718 = vrot.lane.b32.xlu0 %v3706_v18, %s6849_s18 }
 0x786   :  { %3720 = vrot.lane.b32.xlu1 %v3707_v17, %s6849_s18  ;;  %v3835_v17 = vld [vmem:[#allocation2 + $0x14] sm:$0xf] }
 0x788   :  { %3722 = vrot.lane.b32.xlu0 %v3708_v28, %s6849_s18 }
 0x78a   :  { %3724 = vrot.lane.b32.xlu1 %v3709_v35, %s6849_s18 }
 0x78c   :  { %3726 = vrot.lane.b32.xlu0 %v3710_v33, %s6849_s18  ;;  %v6513_v33 = vld [vmem:[%s8441_s5 + $0x2c] sm:$0x3] }
 0x7c2   :  { %v3006_v24 = vpop.permute.xlu0 %3005 }
 0x7c4   :  { %v3008_v46 = vpop.permute.xlu1 %3007 }
 0x7c5   :  { %v3015_v25 = vsel %vm175_vm6, %v3006_v24, %v3008_v46 }
 0x7c6   :  { %v3010_v34 = vpop.permute.xlu0 %3009  ;;  %v3023_v53 = vsel %vm184_vm7, %v3015_v25, 0 }
 0x7c7   :  { %v3016_v29 = vsel %vm175_vm6, %v3008_v46, %v3010_v34 }
 0x7c8   :  { %6515 = vmatprep.subr.msk.bf16.mxu0 %vm184_vm7, %v3016_v29  ;;  %v3012_v57 = vpop.permute.xlu1 %3011 }
 0x7c9   :  { %3035 = vmatpush1.bf16.msra.mxu0 %v3023_v53  ;;  %v3017_v0 = vsel %vm175_vm6, %v3010_v34, %v3012_v57 }
 0x7ca   :  { %v3014_v6 = vpop.permute.xlu0 %3013  ;;  %6519 = vmatprep.subr.msk.bf16.mxu0 %vm184_vm7, %v2962_v37  ;;  %v3029_v56 = vsel %vm184_vm7, %v3017_v0, 0 }
 0x7cb   :  { %v3018_v62 = vsel %vm175_vm6, %v3012_v57, %v3014_v6 }
 0x7cc   :  { %6517 = vmatprep.subr.msk.bf16.mxu1 %vm184_vm7, %v3018_v62  ;;  %6516 = vmatmul.mubr.msk.bf16.vlgmr.msra.gmra.mrb[40].mxu0 %vm180_vm8, %v6514_v55  ;;  %v3841_v10 = vpop.permute.xlu1 %3840 }
 0x7cd   :  { %3076 = vmatpush1.bf16.msra.mxu1 %v3029_v56  ;;  %3132 = vmatpush1.bf16.msra.mxu0 %v3120_v9  ;;  %v3844_v13 = vrot.slane %v3841_v10, 4 }
 0x7ce   :  { %v3843_v12 = vpop.permute.xlu0 %3842  ;;  %6521 = vmatprep.subr.msk.bf16.mxu1 %vm184_vm7, %v2964_v2  ;;  %3163 = vmatprep.mubr.bf16.mxu0 %v6847_v22 }
 0x7cf   :  { %v3845_v11 = vrot.slane %v3843_v12, 4  ;;  %v3846_v4 = vsel %vm586_vm9, %v3844_v13, %v3841_v10 }
 0x7d0   :  { %6518 = vmatmul.mubr.msk.bf16.vlgmr.msra.gmra.mrb[40].mxu1 %vm180_vm8, %v6514_v55  ;;  %v3852_v58 = vmul.f32 %v3846_v4, %v7708_v60  ;;  %v3996_v8 = vpop.permute.xlu1 %3995 }
 0x7d1   :  { %v3847_v63 = vsel %vm45_vm0, %v3844_v13, %v3845_v11  ;;  %3173 = vmatpush1.bf16.msra.mxu1 %v3126_v14  ;;  %3204 = vmatprep.mubr.bf16.mxu1 %v6847_v22  ;;  %v3999_v18 = vrot.slane %v3996_v8, 4  ;;  %v3854_v29 = vmul.f32 %v3845_v11, %v3835_v17  ;;  %v3990_v11 = vld [vmem:[#allocation2 + $0x14] sm:$0xf] }
 0x7d2   :  { %v3848_v3 = vsel %vm586_vm9, %v3847_v63, %v3843_v12  ;;  %v3998_v15 = vpop.permute.xlu0 %3997  ;;  %v3857_v21 = vcombine.high %v3852_v58, %v3852_v58  ;;  %v3861_v26 = vpack.c.bf16 %v3852_v58, %v3852_v58 }
 0x7d3   :  { %v3853_v16 = vmul.f32 %v3848_v3, %v7712_v61  ;;  %v4000_v20 = vrot.slane %v3998_v15, 4  ;;  %v4001_v28 = vsel %vm428_vm10, %v3999_v18, %v3996_v8  ;;  %v3865_v56 = vpack.c.bf16 %v3854_v29, %v3854_v29 }
 0x7d4   :  { %v3862_v35 = vpack.c.bf16 %v3857_v21, %v3857_v21  ;;  %3873 = vrot.lane.b32.xlu1 %v3861_v26, %s6853_s14  ;;  %v3254_v34 = vpop.permute.xlu1 %3253  ;;  %v4007_v37 = vmul.f32 %v4001_v28, %v7708_v60 }
 0x7d5   :  { %v3858_v27 = vcombine.high %v3853_v16, %v3853_v16  ;;  %v3863_v24 = vpack.c.bf16 %v3853_v16, %v3853_v16  ;;  %v4002_v46 = vsel %vm45_vm0, %v3999_v18, %v4000_v20  ;;  %v4009_v16 = vmul.f32 %v4000_v20, %v3990_v11 }
 0x7d6   :  { %v4151_v25 = vpop.permute.xlu0 %4150  ;;  %3875 = vrot.lane.b32.xlu0 %v3862_v35, %s6853_s14  ;;  %v4003_v32 = vsel %vm428_vm10, %v4002_v46, %v3998_v15  ;;  %v4012_v9 = vcombine.high %v4007_v37, %v4007_v37  ;;  %v4016_v10 = vpack.c.bf16 %v4007_v37, %v4007_v37  ;;  %v6525_v15 = vld [vmem:[%s8441_s5 + $0x26] sm:$0x3] }
 0x7d7   :  { %v3864_v53 = vpack.c.bf16 %v3858_v27, %v3858_v27  ;;  %v4154_v6 = vrot.slane %v4151_v25, 4  ;;  %v4008_v2 = vmul.f32 %v4003_v32, %v7712_v61  ;;  %v4020_v35 = vpack.c.bf16 %v4009_v16, %v4009_v16  ;;  %v4145_v32 = vld [vmem:[#allocation2 + $0x14] sm:$0xf] }
 0x7d8   :  { %6520 = vmatmul.mubr.msk.bf16.vlgmr.msra.gmra.mrb[40].mxu0 %vm180_vm8, %v6513_v33  ;;  %3877 = vrot.lane.b32.xlu1 %v3863_v24, %s6853_s14  ;;  %v3258_v55 = vpop.permute.xlu1 %3257  ;;  %v4017_v58 = vpack.c.bf16 %v4012_v9, %v4012_v9 }
 0x7d9   :  { %3314 = vmatprep.mubr.bf16.mxu0 %v6847_v22  ;;  %v4156_v14 = vsel %vm175_vm6, %v4154_v6, %v4151_v25  ;;  %v4013_v3 = vcombine.high %v4008_v2, %v4008_v2  ;;  %v4018_v18 = vpack.c.bf16 %v4008_v2, %v4008_v2 }
 0x7da   :  { %v3256_v57 = vpop.permute.xlu0 %3255  ;;  %3879 = vrot.lane.b32.xlu0 %v3864_v53, %s6853_s14  ;;  %v4162_v21 = vmul.f32 %v4156_v14, %v7708_v60 }
 0x7db   :  { %v3263_v0 = vsel %vm428_vm10, %v3254_v34, %v3256_v57  ;;  %v3264_v62 = vsel %vm428_vm10, %v3256_v57, %v3258_v55  ;;  %v4019_v28 = vpack.c.bf16 %v4013_v3, %v4013_v3 }
 0x7dc   :  { %6526 = vmatprep.subr.msk.bf16.mxu0 %vm184_vm7, %v3264_v62  ;;  %v3271_v59 = vsel %vm184_vm7, %v3263_v0, 0  ;;  %6522 = vmatmul.mubr.msk.bf16.vlgmr.msra.gmra.mrb[40].mxu1 %vm180_vm8, %v6513_v33  ;;  %v3262_v12 = vpop.permute.xlu1 %3261  ;;  %v4167_v24 = vcombine.high %v4162_v21, %v4162_v21  ;;  %v4171_v53 = vpack.c.bf16 %v4162_v21, %v4162_v21 }
 0x7dd   :  { %3283 = vmatpush1.bf16.msra.mxu0 %v3271_v59  ;;  %3881 = vrot.lane.b32.xlu1 %v3865_v56, %s6853_s14  ;;  %v6532_v59 = vld [vmem:[%s8441_s5 + $0x28] sm:$0x3] }
 0x7de   :  { %v3260_v13 = vpop.permute.xlu0 %3259  ;;  %3355 = vmatprep.mubr.bf16.mxu1 %v6847_v22  ;;  %4028 = vrot.lane.b32.xlu0 %v4016_v10, %s6852_s30 }
 0x7df   :  { %v3265_v4 = vsel %vm428_vm10, %v3258_v55, %v3260_v13  ;;  %v3266_v63 = vsel %vm428_vm10, %v3260_v13, %v3262_v12  ;;  %v4172_v55 = vpack.c.bf16 %v4167_v24, %v4167_v24 }
 0x7e0   :  { %6528 = vmatprep.subr.msk.bf16.mxu1 %vm184_vm7, %v3266_v63  ;;  %v3277_v8 = vsel %vm184_vm7, %v3265_v4, 0  ;;  %v4153_v26 = vpop.permute.xlu1 %4152 }
 0x7e1   :  { %3324 = vmatpush1.bf16.msra.mxu1 %v3277_v8  ;;  %4030 = vrot.lane.b32.xlu1 %v4017_v58, %s6852_s30  ;;  %v4155_v27 = vrot.slane %v4153_v26, 4 }
 0x7e2   :  { %v3409_v17 = vpop.permute.xlu0 %3408  ;;  %4032 = vrot.lane.b32.xlu0 %v4018_v18, %s6852_s30 }
 0x7e3   :  { %v4157_v33 = vsel %vm45_vm0, %v4154_v6, %v4155_v27  ;;  %v4164_v56 = vmul.f32 %v4155_v27, %v4145_v32 }
 0x7e4   :  { %6527 = vmatmul.mubr.msk.bf16.vlgmr.msra.gmra.mrb[40].mxu0 %vm180_vm8, %v6525_v15  ;;  %v4158_v20 = vsel %vm175_vm6, %v4157_v33, %v4153_v26  ;;  %v3411_v60 = vpop.permute.xlu1 %3410  ;;  %v6539_v26 = vld [vmem:[%s8441_s5 + $0x2a] sm:$0x3] }
 0x7e5   :  { %3469 = vmatprep.mubr.bf16.mxu0 %v6847_v22  ;;  %4034 = vrot.lane.b32.xlu1 %v4019_v28, %s6852_s30  ;;  %v4163_v34 = vmul.f32 %v4158_v20, %v7712_v61  ;;  %v3418_v25 = vsel %vm586_vm9, %v3409_v17, %v3411_v60  ;;  %v4175_v11 = vpack.c.bf16 %v4164_v56, %v4164_v56 }
 0x7e6   :  { %v3413_v46 = vpop.permute.xlu0 %3412  ;;  %4036 = vrot.lane.b32.xlu0 %v4020_v35, %s6852_s30  ;;  %v3426_v37 = vsel %vm184_vm7, %v3418_v25, 0  ;;  %v6546_v25 = vld [vmem:[%s8441_s5 + $0x2e] sm:$0x3] }
 0x7e7   :  { %v3419_v29 = vsel %vm586_vm9, %v3411_v60, %v3413_v46  ;;  %v4168_v57 = vcombine.high %v4163_v34, %v4163_v34  ;;  %v4173_v9 = vpack.c.bf16 %v4163_v34, %v4163_v34 }
 0x7e8   :  { %6533 = vmatprep.subr.msk.bf16.mxu0 %vm184_vm7, %v3419_v29  ;;  %6529 = vmatmul.mubr.msk.bf16.vlgmr.msra.gmra.mrb[40].mxu1 %vm180_vm8, %v6525_v15  ;;  %v3415_v61 = vpop.permute.xlu1 %3414 }
 0x7e9   :  { %3438 = vmatpush1.bf16.msra.mxu0 %v3426_v37  ;;  %4183 = vrot.lane.b32.xlu1 %v4171_v53, %s6848_s15  ;;  %v3420_v0 = vsel %vm586_vm9, %v3413_v46, %v3415_v61  ;;  %v4174_v10 = vpack.c.bf16 %v4168_v57, %v4168_v57 }
 0x7ea   :  { %v3417_v6 = vpop.permute.xlu0 %3416  ;;  %3510 = vmatprep.mubr.bf16.mxu1 %v6847_v22  ;;  %4185 = vrot.lane.b32.xlu0 %v4172_v55, %s6848_s15  ;;  %v3432_v2 = vsel %vm184_vm7, %v3420_v0, 0  ;;  %v6553_v0 = vld [vmem:[%s8441_s5 + $0x30] sm:$0x3] }
 0x7eb   :  { %v3421_v62 = vsel %vm586_vm9, %v3415_v61, %v3417_v6 }
 0x7ec   :  { %6535 = vmatprep.subr.msk.bf16.mxu1 %vm184_vm7, %v3421_v62  ;;  %v3564_v12 = vpop.permute.xlu1 %3563 }
 0x7ed   :  { %3479 = vmatpush1.bf16.msra.mxu1 %v3432_v2  ;;  %4187 = vrot.lane.b32.xlu1 %v4173_v9, %s6848_s15 }
 0x7ee   :  { %v3566_v13 = vpop.permute.xlu0 %3565  ;;  %4189 = vrot.lane.b32.xlu0 %v4174_v10, %s6848_s15 }
 0x7ef   :  { %v3573_v14 = vsel %vm744_vm5, %v3564_v12, %v3566_v13 }
 0x7f0   :  { %6534 = vmatmul.mubr.msk.bf16.vlgmr.msra.gmra.mrb[40].mxu0 %vm180_vm8, %v6532_v59  ;;  %v3568_v4 = vpop.permute.xlu1 %3567  ;;  %v3581_v3 = vsel %vm184_vm7, %v3573_v14, 0 }
 0x7f1   :  { %3624 = vmatprep.mubr.bf16.mxu0 %v6847_v22  ;;  %4191 = vrot.lane.b32.xlu1 %v4175_v11, %s6848_s15  ;;  %v3574_v58 = vsel %vm744_vm5, %v3566_v13, %v3568_v4 }
 0x7f2   :  { %v3570_v63 = vpop.permute.xlu0 %3569  ;;  %6540 = vmatprep.subr.msk.bf16.mxu0 %vm184_vm7, %v3574_v58 }
 0x7f3   :  { %v3575_v8 = vsel %vm744_vm5, %v3568_v4, %v3570_v63  ;;  %3593 = vmatpush1.bf16.msra.mxu0 %v3581_v3  ;;  %v6560_v3 = vld [vmem:[%s8441_s5 + $0x32] sm:$0x3] }
 0x7f4   :  { %6536 = vmatmul.mubr.msk.bf16.vlgmr.msra.gmra.mrb[40].mxu1 %vm180_vm8, %v6532_v59  ;;  %v3572_v15 = vpop.permute.xlu1 %3571  ;;  %v3587_v21 = vsel %vm184_vm7, %v3575_v8, 0 }
 0x7f5   :  { %3665 = vmatprep.mubr.bf16.mxu1 %v6847_v22  ;;  %v3576_v18 = vsel %vm744_vm5, %v3570_v63, %v3572_v15 }
 0x7f6   :  { %v3719_v16 = vpop.permute.xlu0 %3718  ;;  %6542 = vmatprep.subr.msk.bf16.mxu1 %vm184_vm7, %v3576_v18 }
 0x7f7   :  { %3634 = vmatpush1.bf16.msra.mxu1 %v3587_v21 }
 0x7f8   :  { %v3721_v17 = vpop.permute.xlu1 %3720 }
 0x7f9   :  { %v3728_v28 = vsel %vm706_vm4, %v3719_v16, %v3721_v17 }
 0x7fa   :  { %v3723_v27 = vpop.permute.xlu0 %3722  ;;  %v3736_v35 = vsel %vm184_vm7, %v3728_v28, 0 }
 0x7fb   :  { %v3729_v33 = vsel %vm706_vm4, %v3721_v17, %v3723_v27 }
 0x7fc   :  { %6547 = vmatprep.subr.msk.bf16.mxu0 %vm184_vm7, %v3729_v33  ;;  %6541 = vmatmul.mubr.msk.bf16.vlgmr.msra.gmra.mrb[40].mxu0 %vm180_vm8, %v6539_v26  ;;  %v3725_v24 = vpop.permute.xlu1 %3724 }
 0x7fd   :  { %3748 = vmatpush1.bf16.msra.mxu0 %v3736_v35  ;;  %3779 = vmatprep.mubr.bf16.mxu0 %v6847_v22  ;;  %v3730_v60 = vsel %vm706_vm4, %v3723_v27, %v3725_v24 }
 0x7fe   :  { %v3727_v20 = vpop.permute.xlu0 %3726  ;;  %v3742_v34 = vsel %vm184_vm7, %v3730_v60, 0 }
 0x7ff   :  { %v3731_v46 = vsel %vm706_vm4, %v3725_v24, %v3727_v20  ;;  %v6567_v20 = vld [vmem:[%s8441_s5 + $0x34] sm:$0x3] }
 0x800   :  { %6549 = vmatprep.subr.msk.bf16.mxu1 %vm184_vm7, %v3731_v46  ;;  %6543 = vmatmul.mubr.msk.bf16.vlgmr.msra.gmra.mrb[40].mxu1 %vm180_vm8, %v6539_v26 }
 0x801   :  { %3789 = vmatpush1.bf16.msra.mxu1 %v3742_v34  ;;  %3820 = vmatprep.mubr.bf16.mxu1 %v6847_v22 }
 0x808   :  { %6548 = vmatmul.mubr.msk.bf16.vlgmr.msra.gmra.mrb[40].mxu0 %vm180_vm8, %v6546_v25 }
 0x809   :  { %3934 = vmatprep.mubr.bf16.mxu0 %v6847_v22 }
 0x80c   :  { %6550 = vmatmul.mubr.msk.bf16.vlgmr.msra.gmra.mrb[40].mxu1 %vm180_vm8, %v6546_v25 }
 0x80d   :  { %3975 = vmatprep.mubr.bf16.mxu1 %v6847_v22 }
 0x846   :  { %v3874_v29 = vpop.permute.xlu1 %3873 }
 0x848   :  { %v3876_v53 = vpop.permute.xlu0 %3875 }
 0x849   :  { %v3883_v37 = vsel %vm548_vm3, %v3874_v29, %v3876_v53 }
 0x84a   :  { %v3878_v32 = vpop.permute.xlu1 %3877  ;;  %v3891_v57 = vsel %vm184_vm7, %v3883_v37, 0 }
 0x84b   :  { %v3884_v55 = vsel %vm548_vm3, %v3876_v53, %v3878_v32 }
 0x84c   :  { %v3880_v61 = vpop.permute.xlu0 %3879  ;;  %6554 = vmatprep.subr.msk.bf16.mxu0 %vm184_vm7, %v3884_v55 }
 0x84d   :  { %v3885_v6 = vsel %vm548_vm3, %v3878_v32, %v3880_v61  ;;  %3903 = vmatpush1.bf16.msra.mxu0 %v3891_v57 }
 0x84e   :  { %v3897_v9 = vsel %vm184_vm7, %v3885_v6, 0 }
 0x84f   :  { %v3882_v62 = vpop.permute.xlu1 %3881 }
 0x850   :  { %v3886_v56 = vsel %vm548_vm3, %v3880_v61, %v3882_v62  ;;  %v4029_v2 = vpop.permute.xlu0 %4028  ;;  %6555 = vmatmul.mubr.msk.bf16.vlgmr.msra.gmra.mrb[40].mxu0 %vm180_vm8, %v6553_v0 }
 0x851   :  { %6556 = vmatprep.subr.msk.bf16.mxu1 %vm184_vm7, %v3886_v56  ;;  %4089 = vmatprep.mubr.bf16.mxu0 %v6847_v22 }
 0x852   :  { %3944 = vmatpush1.bf16.msra.mxu1 %v3897_v9 }
 0x853   :  { %v4031_v59 = vpop.permute.xlu1 %4030 }
 0x854   :  { %v4038_v10 = vsel %vm390_vm2, %v4029_v2, %v4031_v59  ;;  %v4033_v12 = vpop.permute.xlu0 %4032 }
 0x855   :  { %6557 = vmatmul.mubr.msk.bf16.vlgmr.msra.gmra.mrb[40].mxu1 %vm180_vm8, %v6553_v0  ;;  %v4039_v13 = vsel %vm390_vm2, %v4031_v59, %v4033_v12  ;;  %v4046_v11 = vsel %vm184_vm7, %v4038_v10, 0 }
 0x856   :  { %4130 = vmatprep.mubr.bf16.mxu1 %v6847_v22  ;;  %6561 = vmatprep.subr.msk.bf16.mxu0 %vm184_vm7, %v4039_v13 }
 0x857   :  { %v4035_v14 = vpop.permute.xlu1 %4034  ;;  %4058 = vmatpush1.bf16.msra.mxu0 %v4046_v11 }
 0x858   :  { %v4040_v4 = vsel %vm390_vm2, %v4033_v12, %v4035_v14  ;;  %v4037_v63 = vpop.permute.xlu0 %4036 }
 0x859   :  { %v4041_v58 = vsel %vm390_vm2, %v4035_v14, %v4037_v63  ;;  %v4052_v8 = vsel %vm184_vm7, %v4040_v4, 0 }
 0x85a   :  { %6563 = vmatprep.subr.msk.bf16.mxu1 %vm184_vm7, %v4041_v58 }
 0x85b   :  { %v4184_v15 = vpop.permute.xlu1 %4183  ;;  %4099 = vmatpush1.bf16.msra.mxu1 %v4052_v8 }
 0x85c   :  { %v4186_v16 = vpop.permute.xlu0 %4185  ;;  %6562 = vmatmul.mubr.msk.bf16.vlgmr.msra.gmra.mrb[40].mxu0 %vm180_vm8, %v6560_v3 }
 0x85d   :  { %v4193_v18 = vsel %vm138_vm1, %v4184_v15, %v4186_v16  ;;  %4244 = vmatprep.mubr.bf16.mxu0 %v6847_v22 }
 0x85e   :  { %v4201_v17 = vsel %vm184_vm7, %v4193_v18, 0 }
 0x85f   :  { %v4188_v21 = vpop.permute.xlu1 %4187 }
 0x860   :  { %v4194_v26 = vsel %vm138_vm1, %v4186_v16, %v4188_v21  ;;  %v4190_v27 = vpop.permute.xlu0 %4189 }
 0x861   :  { %6564 = vmatmul.mubr.msk.bf16.vlgmr.msra.gmra.mrb[40].mxu1 %vm180_vm8, %v6560_v3  ;;  %6568 = vmatprep.subr.msk.bf16.mxu0 %vm184_vm7, %v4194_v26  ;;  %v4195_v28 = vsel %vm138_vm1, %v4188_v21, %v4190_v27 }
 0x862   :  { %4213 = vmatpush1.bf16.msra.mxu0 %v4201_v17  ;;  %4285 = vmatprep.mubr.bf16.mxu1 %v6847_v22  ;;  %v4207_v24 = vsel %vm184_vm7, %v4195_v28, 0  ;;  %v6572_v17 = vld [vmem:[%s8439_s3 + $0xc] sm:$0xf] }
 0x863   :  { %v4192_v33 = vpop.permute.xlu1 %4191 }
 0x864   :  { %v4196_v35 = vsel %vm138_vm1, %v4190_v27, %v4192_v33  ;;  %v6573_v33 = vld [vmem:[%s8440_s4 + $0xc] sm:$0xf] }
 0x865   :  { %6570 = vmatprep.subr.msk.bf16.mxu1 %vm184_vm7, %v4196_v35 }
 0x866   :  { %4254 = vmatpush1.bf16.msra.mxu1 %v4207_v24 }
 0x868   :  { %6569 = vmatmul.mubr.msk.bf16.vlgmr.msra.gmra.mrb[40].mxu0 %vm180_vm8, %v6567_v20 }
 0x869   :  { %4472 = vmatprep.mubr.bf16.mxu0 %v6847_v22 }
 0x86d   :  { %6571 = vmatmul.mubr.msk.bf16.vlgmr.msra.gmra.mrb[40].mxu1 %vm180_vm8, %v6567_v20 }
 0x86e   :  { %4513 = vmatprep.mubr.bf16.mxu1 %v6847_v22 }
 0x93b   :  { %v4246_v60 = vpop.f32.mrb[40].mxu0 }
 0x93c   :  { %v4302_v46 = vsel %vm45_vm0, %v4246_v60, 0.0  ;;  %v4312_v34 = vmul.f32 %v4246_v60, %v4246_v60  ;;  %v4248_v25 = vpop.f32.mrb[41].mxu0 }
 0x93d   :  { %v4303_v29 = vsel %vm45_vm0, %v4248_v25, 0.0  ;;  %v4313_v53 = vmul.f32 %v4248_v25, %v4248_v25  ;;  %v4250_v37 = vpop.f32.mrb[42].mxu0 }
 0x93e   :  { %v4316_v32 = vsel %vm45_vm0, %v4312_v34, 0.0  ;;  %v4304_v55 = vadd.f32 %v4303_v29, %v4302_v46  ;;  %v4251_v57 = vpop.f32.mrb[43].mxu0 }
 0x93f   :  { %v4317_v61 = vsel %vm45_vm0, %v4313_v53, 0.0 }
 0x940   :  { %v4287_v6 = vpop.f32.mrb[40].mxu1  ;;  %v4318_v0 = vadd.f32 %v4317_v61, %v4316_v32 }
 0x941   :  { %v4305_v62 = vsel %vm45_vm0, %v4287_v6, 0.0  ;;  %v4314_v56 = vmul.f32 %v4287_v6, %v4287_v6  ;;  %v4289_v9 = vpop.f32.mrb[41].mxu1 }
 0x942   :  { %v4306_v2 = vadd.f32 %v4305_v62, %v4304_v55  ;;  %v4307_v59 = vsel %vm45_vm0, %v4289_v9, 0.0  ;;  %v4315_v10 = vmul.f32 %v4289_v9, %v4289_v9  ;;  %v4291_v12 = vpop.f32.mrb[42].mxu1 }
 0x943   :  { %v4319_v13 = vsel %vm45_vm0, %v4314_v56, 0.0  ;;  %v4292_v11 = vpop.f32.mrb[43].mxu1 }
 0x944   :  { %v4308_v14 = vadd.f32 %v4307_v59, %v4306_v2  ;;  %v4320_v4 = vadd.f32 %v4319_v13, %v4318_v0  ;;  %v4321_v63 = vsel %vm45_vm0, %v4315_v10, 0.0 }
 0x946   :  { %4309 = vadd.xlane.f32.xlu0 %v4308_v14  ;;  %v4322_v58 = vadd.f32 %v4321_v63, %v4320_v4 }
 0x948   :  { %4323 = vadd.xlane.f32.xlu1 %v4322_v58 }
 0x9d3   :  { %v4310_v3 = vpop.xlane.xlu0 %4309 }
 0x9d4   :  { %v4311_v8 = vmul.f32 0.001953125, %v4310_v3 }
 0x9d5   :  { %v4324_v15 = vpop.xlane.xlu1 %4323 }
 0x9d6   :  { %v4326_v16 = vmul.f32 %v4311_v8, %v4311_v8  ;;  %v4325_v18 = vmul.f32 0.001953125, %v4324_v15 }
 0x9d8   :  { %v4327_v21 = vsub.f32 %v4325_v18, %v4326_v16 }
 0x9da   :  { %v4328_v26 = vadd.f32 1e-05, %v4327_v21 }
 0x9dc   :  { %6837 = vrsqrt.f32 %v4328_v26 }
 0x9e6   :  { %v6838_v27 = vpop.eup %6837 }
 0x9e7   :  { %v4330_v28 = vmul.f32 %v6838_v27, %v6572_v17 }
 0x9e9   :  { %4335 = vperm.xlu0 %6824, %v4330_v28   ;;  %v4331_v35 = vmul.f32 %v4330_v28, %v4311_v8 }
 0x9eb   :  { %v4332_v24 = vsub.f32 %v6573_v33, %v4331_v35 }
 0x9ed   :  { %4344 = vperm.xlu1 %6823, %v4332_v24   ;;  %4378 = vrot.lane.b32.xlu0 %v7627_v38, %s6848_s15 }
 0x9f1   :  { %4626 = vrot.lane.b32.xlu0 %v7634_v47, %s6852_s30  ;;  %4380 = vrot.lane.b32.xlu1 %v7639_v48, %s6848_s15 }
 0x9f5   :  { %4781 = vrot.lane.b32.xlu0 %v7648_v23, %s6853_s14  ;;  %4628 = vrot.lane.b32.xlu1 %v7653_v39, %s6852_s30 }
 0x9f9   :  { %4936 = vrot.lane.b32.xlu0 %v7662_v40, %s6849_s18  ;;  %4783 = vrot.lane.b32.xlu1 %v7667_v42, %s6853_s14 }
 0x9fd   :  { %5091 = vrot.lane.b32.xlu0 %v7676_v43, %s6850_s21  ;;  %4938 = vrot.lane.b32.xlu1 %v7681_v44, %s6849_s18 }
 0xa01   :  { %5246 = vrot.lane.b32.xlu0 %v7733_v30, %s6856_s29  ;;  %5093 = vrot.lane.b32.xlu1 %v7690_v45, %s6850_s21 }
 0xa05   :  { %5401 = vrot.lane.b32.xlu0 %v7749_v36, %s6857_s16  ;;  %5248 = vrot.lane.b32.xlu1 %v7738_v31, %s6856_s29 }
 0xa09   :  { %5556 = vrot.lane.b32.xlu0 %v7765_v49, %s6855_s24  ;;  %5403 = vrot.lane.b32.xlu1 %v7754_v41, %s6857_s16 }
 0xa0d   :  { %5558 = vrot.lane.b32.xlu1 %v7782_v19, %s6855_s24 }
 0xa68   :  { %v4336_v38 = vpop.permute.xlu0 %4335 }
 0xa69   :  { %v4338_v47 = vmul.f32 %v4336_v38, %v4246_v60  ;;  %v4339_v48 = vmul.f32 %v4336_v38, %v4248_v25  ;;  %v4340_v23 = vmul.f32 %v4336_v38, %v4287_v6  ;;  %v4341_v39 = vmul.f32 %v4336_v38, %v4289_v9 }
 0xa6c   :  { %v4379_v40 = vpop.permute.xlu0 %4378  ;;  %v4345_v42 = vpop.permute.xlu1 %4344 }
 0xa6d   :  { %v4347_v43 = vadd.f32 %v4345_v42, %v4338_v47  ;;  %v4348_v44 = vadd.f32 %v4345_v42, %v4339_v48  ;;  %v4349_v45 = vadd.f32 %v4345_v42, %v4340_v23  ;;  %v4350_v30 = vadd.f32 %v4345_v42, %v4341_v39 }
 0xa6e   :  { %v4382_v6 = vrot.slane %v4379_v40, 4 }
 0xa6f   :  { %v8027_v31 = vmax.f32 %v4347_v43, 0.0  ;;  %v8029_v36 = vmax.f32 %v4348_v44, 0.0  ;;  %v8031_v49 = vmax.f32 %v4349_v45, 0.0  ;;  %v8033_v41 = vmax.f32 %v4350_v30, 0.0 }
 0xa70   :  { %v4381_v19 = vpop.permute.xlu1 %4380  ;;  %v4627_v46 = vpop.permute.xlu0 %4626  ;;  %v4384_v9 = vsel %vm138_vm1, %v4382_v6, %v4379_v40 }
 0xa71   :  { %v8037_v20 = vcombine.low %v8027_v31, %v8029_v36  ;;  %v8041_v60 = vcombine.low %v8031_v49, %v8033_v41  ;;  %v4630_v34 = vrot.slane %v4627_v46, 4  ;;  %v4383_v62 = vrot.slane %v4381_v19, 4 }
 0xa73   :  { %4363 = vst [vmem:[#allocation2 + $0x4] sm:$0xff] %v8037_v20  ;;  %4364 = vst [vmem:[#allocation2 + $0xc] sm:$0xff] %v8041_v60  ;;  %v4632_v32 = vsel %vm390_vm2, %v4630_v34, %v4627_v46  ;;  %v4385_v2 = vsel %vm45_vm0, %v4382_v6, %v4383_v62 }
 0xa74   :  { %v4629_v25 = vpop.permute.xlu1 %4628  ;;  %v4386_v12 = vsel %vm138_vm1, %v4385_v2, %v4381_v19  ;;  %v4782_v13 = vpop.permute.xlu0 %4781 }
 0xa75   :  { %v4631_v29 = vrot.slane %v4629_v25, 4  ;;  %v4785_v58 = vrot.slane %v4782_v13, 4 }
 0xa77   :  { %v4633_v53 = vsel %vm45_vm0, %v4630_v34, %v4631_v29  ;;  %v4787_v18 = vsel %vm548_vm3, %v4785_v58, %v4782_v13 }
 0xa78   :  { %v4634_v55 = vsel %vm390_vm2, %v4633_v53, %v4629_v25  ;;  %v4784_v11 = vpop.permute.xlu1 %4783  ;;  %v4937_v21 = vpop.permute.xlu0 %4936 }
 0xa79   :  { %v4786_v3 = vrot.slane %v4784_v11, 4  ;;  %v4940_v38 = vrot.slane %v4937_v21, 4 }
 0xa7a   :  { %v4619_v37 = vld [vmem:[#allocation2] sm:$0xff]  ;;  %v4372_v61 = vld [vmem:[#allocation2 + $0x8] sm:$0xff]  ;;  %v4373_v63 = vld [vmem:[#allocation2 + $0x10] sm:$0xf] }
 0xa7b   :  { %v4638_v57 = vmul.f32 %v4632_v32, %v4619_v37  ;;  %v8048_v56 = vmul.f32 %v4634_v55, %v4372_v61  ;;  %v4390_v10 = vmul.f32 %v4619_v37, %v4384_v9  ;;  %v4391_v14 = vmul.f32 %v4386_v12, %v4372_v61  ;;  %v4621_v24 = vld [vmem:[#allocation2 + $0x10] sm:$0xf] }
 0xa7c   :  { %v4392_v15 = vmul.f32 %v4383_v62, %v4373_v63  ;;  %v4788_v26 = vsel %vm45_vm0, %v4785_v58, %v4786_v3  ;;  %v4939_v17 = vpop.permute.xlu1 %4938  ;;  %v4793_v35 = vmul.f32 %v4787_v18, %v4619_v37  ;;  %v4640_v39 = vmul.f32 %v4631_v29, %v4621_v24  ;;  %v4776_v44 = vld [vmem:[#allocation2 + $0x10] sm:$0xf]  ;;  %v5092_v29 = vpop.permute.xlu0 %5091 }
 0xa7d   :  { %v4647_v0 = vpack.c.bf16 %v4638_v57, %v4638_v57  ;;  %v4649_v59 = vpack.c.bf16 %v8048_v56, %v8048_v56  ;;  %v4399_v4 = vpack.c.bf16 %v4390_v10, %v4390_v10  ;;  %v4395_v8 = vcombine.high %v4390_v10, %v4390_v10  ;;  %v4931_v9 = vld [vmem:[#allocation2 + $0x10] sm:$0xf] }
 0xa7e   :  { %v4401_v16 = vpack.c.bf16 %v4391_v14, %v4391_v14  ;;  %v4396_v27 = vcombine.high %v4391_v14, %v4391_v14  ;;  %v4403_v33 = vpack.c.bf16 %v4392_v15, %v4392_v15  ;;  %v4789_v47 = vsel %vm548_vm3, %v4788_v26, %v4784_v11 }
 0xa7f   :  { %4659 = vrot.lane.b32.xlu1 %v4647_v0, %s6857_s16  ;;  %4411 = vrot.lane.b32.xlu0 %v4399_v4, %s6855_s24  ;;  %v4400_v28 = vpack.c.bf16 %v4395_v8, %v4395_v8  ;;  %v4941_v48 = vrot.slane %v4939_v17, 4  ;;  %v4802_v40 = vpack.c.bf16 %v4793_v35, %v4793_v35  ;;  %v4942_v42 = vsel %vm706_vm4, %v4940_v38, %v4937_v21 }
 0xa80   :  { %v4402_v23 = vpack.c.bf16 %v4396_v27, %v4396_v27  ;;  %v4794_v43 = vmul.f32 %v4789_v47, %v4372_v61  ;;  %v4651_v30 = vpack.c.bf16 %v4640_v39, %v4640_v39  ;;  %v4948_v19 = vmul.f32 %v4942_v42, %v4619_v37  ;;  %v5094_v55 = vpop.permute.xlu1 %5093  ;;  %v5247_v11 = vpop.permute.xlu0 %5246 }
 0xa81   :  { %v4943_v45 = vsel %vm45_vm0, %v4940_v38, %v4941_v48  ;;  %v4795_v46 = vmul.f32 %v4786_v3, %v4776_v44  ;;  %v4643_v6 = vcombine.high %v4638_v57, %v4638_v57  ;;  %v5095_v62 = vrot.slane %v5092_v29, 4 }
 0xa82   :  { %v4804_v34 = vpack.c.bf16 %v4794_v43, %v4794_v43  ;;  %v4944_v25 = vsel %vm706_vm4, %v4943_v45, %v4939_v17  ;;  %v4957_v53 = vpack.c.bf16 %v4948_v19, %v4948_v19  ;;  %v5096_v2 = vrot.slane %v5094_v55, 4 }
 0xa83   :  { %4663 = vrot.lane.b32.xlu1 %v4649_v59, %s6857_s16  ;;  %4415 = vrot.lane.b32.xlu0 %v4401_v16, %s6855_s24  ;;  %v4949_v32 = vmul.f32 %v4944_v25, %v4372_v61  ;;  %v4806_v0 = vpack.c.bf16 %v4795_v46, %v4795_v46  ;;  %v4950_v37 = vmul.f32 %v4941_v48, %v4931_v9  ;;  %v5250_v3 = vrot.slane %v5247_v11, 4 }
 0xa84   :  { %v4648_v10 = vpack.c.bf16 %v4643_v6, %v4643_v6  ;;  %v4644_v12 = vcombine.high %v8048_v56, %v8048_v56  ;;  %v5097_v13 = vsel %vm744_vm5, %v5095_v62, %v5092_v29  ;;  %v5098_v57 = vsel %vm45_vm0, %v5095_v62, %v5096_v2  ;;  %v5249_v61 = vpop.permute.xlu1 %5248  ;;  %v5402_v38 = vpop.permute.xlu0 %5401 }
 0xa85   :  { %v4959_v59 = vpack.c.bf16 %v4949_v32, %v4949_v32  ;;  %v4798_v14 = vcombine.high %v4793_v35, %v4793_v35  ;;  %v4961_v4 = vpack.c.bf16 %v4950_v37, %v4950_v37  ;;  %v5103_v58 = vmul.f32 %v5097_v13, %v8037_v20 }
 0xa86   :  { %v4650_v63 = vpack.c.bf16 %v4644_v12, %v4644_v12  ;;  %v5099_v8 = vsel %vm744_vm5, %v5098_v57, %v5094_v55  ;;  %v5251_v15 = vrot.slane %v5249_v61, 4  ;;  %v4799_v16 = vcombine.high %v4794_v43, %v4794_v43  ;;  %v5241_v55 = vld [vmem:[#allocation2 + $0x14] sm:$0xf] }
 0xa87   :  { %4413 = vrot.lane.b32.xlu1 %v4400_v28, %s6855_s24  ;;  %4419 = vrot.lane.b32.xlu0 %v4403_v33, %s6855_s24  ;;  %v4803_v56 = vpack.c.bf16 %v4798_v14, %v4798_v14  ;;  %v5112_v18 = vpack.c.bf16 %v5103_v58, %v5103_v58  ;;  %v5252_v21 = vsel %vm586_vm9, %v5250_v3, %v5247_v11  ;;  %v5405_v42 = vrot.slane %v5402_v38, 4 }
 0xa88   :  { %v5104_v26 = vmul.f32 %v5099_v8, %v8041_v60  ;;  %v5253_v17 = vsel %vm45_vm0, %v5250_v3, %v5251_v15  ;;  %v4805_v27 = vpack.c.bf16 %v4799_v16, %v4799_v16  ;;  %v5258_v28 = vmul.f32 %v5252_v21, %v8037_v20  ;;  %v5557_v46 = vpop.permute.xlu0 %5556 }
 0xa89   :  { %v4953_v33 = vcombine.high %v4948_v19, %v4948_v19  ;;  %v5254_v24 = vsel %vm586_vm9, %v5253_v17, %v5249_v61  ;;  %v4954_v39 = vcombine.high %v4949_v32, %v4949_v32  ;;  %v5108_v43 = vcombine.high %v5103_v58, %v5103_v58 }
 0xa8a   :  { %v5114_v35 = vpack.c.bf16 %v5104_v26, %v5104_v26  ;;  %v5267_v47 = vpack.c.bf16 %v5258_v28, %v5258_v28  ;;  %v5259_v48 = vmul.f32 %v5254_v24, %v8041_v60  ;;  %v5407_v19 = vsel %vm428_vm10, %v5405_v42, %v5402_v38 }
 0xa8b   :  { %4417 = vrot.lane.b32.xlu1 %v4402_v23, %s6855_s24  ;;  %4814 = vrot.lane.b32.xlu0 %v4802_v40, %s6856_s29  ;;  %v4958_v23 = vpack.c.bf16 %v4953_v33, %v4953_v33  ;;  %v5086_v40 = vld [vmem:[#allocation2 + $0x14] sm:$0xf]  ;;  %v4960_v45 = vpack.c.bf16 %v4954_v39, %v4954_v39  ;;  %v5113_v25 = vpack.c.bf16 %v5108_v43, %v5108_v43  ;;  %v5560_v6 = vrot.slane %v5557_v46, 4 }
 0xa8c   :  { %v5269_v44 = vpack.c.bf16 %v5259_v48, %v5259_v48  ;;  %v5109_v29 = vcombine.high %v5104_v26, %v5104_v26  ;;  %v5413_v32 = vmul.f32 %v5407_v19, %v8037_v20  ;;  %v5260_v9 = vmul.f32 %v5251_v15, %v5241_v55  ;;  %v5396_v15 = vld [vmem:[#allocation2 + $0x14] sm:$0xf] }
 0xa8d   :  { %v5264_v61 = vcombine.high %v5259_v48, %v5259_v48 }
 0xa8e   :  { %v5115_v62 = vpack.c.bf16 %v5109_v29, %v5109_v29  ;;  %v5422_v37 = vpack.c.bf16 %v5413_v32, %v5413_v32  ;;  %v5271_v13 = vpack.c.bf16 %v5260_v9, %v5260_v9  ;;  %v6575_v29 = vld [vmem:[%s8441_s5 + $0x36] sm:$0x3] }
 0xa8f   :  { %4667 = vrot.lane.b32.xlu1 %v4651_v30, %s6857_s16  ;;  %4818 = vrot.lane.b32.xlu0 %v4804_v34, %s6856_s29  ;;  %v5105_v30 = vmul.f32 %v5096_v2, %v5086_v40  ;;  %v5404_v34 = vpop.permute.xlu1 %5403  ;;  %v5263_v2 = vcombine.high %v5258_v28, %v5258_v28  ;;  %v5270_v8 = vpack.c.bf16 %v5264_v61, %v5264_v61 }
 0xa91   :  { %v5268_v57 = vpack.c.bf16 %v5263_v2, %v5263_v2 }
 0xa93   :  { %4969 = vrot.lane.b32.xlu1 %v4957_v53, %s6850_s21  ;;  %4822 = vrot.lane.b32.xlu0 %v4806_v0, %s6856_s29  ;;  %v5116_v53 = vpack.c.bf16 %v5105_v30, %v5105_v30  ;;  %v5406_v0 = vrot.slane %v5404_v34, 4  ;;  %v5559_v12 = vpop.permute.xlu1 %5558 }
 0xa97   :  { %4973 = vrot.lane.b32.xlu1 %v4959_v59, %s6850_s21  ;;  %4661 = vrot.lane.b32.xlu0 %v4648_v10, %s6857_s16  ;;  %v5562_v59 = vsel %vm175_vm6, %v5560_v6, %v5557_v46  ;;  %v5408_v10 = vsel %vm45_vm0, %v5405_v42, %v5406_v0 }
 0xa98   :  { %v5568_v11 = vmul.f32 %v5562_v59, %v8037_v20  ;;  %v5409_v14 = vsel %vm428_vm10, %v5408_v10, %v5404_v34  ;;  %v4368_v34 = vpack.c.bf16 %v8029_v36, %v8029_v36  ;;  %v4370_v36 = vpack.c.bf16 %v8033_v41, %v8033_v41  ;;  %v6574_v41 = vld [vmem:[%s8441_s5 + $0x3e] sm:$0x3] }
 0xa99   :  { %v5414_v3 = vmul.f32 %v5409_v14, %v8041_v60  ;;  %v6586_v14 = vld [vmem:[%s8441_s5 + $0x38] sm:$0x3] }
 0xa9a   :  { %v5577_v58 = vpack.c.bf16 %v5568_v11, %v5568_v11  ;;  %v5573_v28 = vcombine.high %v5568_v11, %v5568_v11 }
 0xa9b   :  { %4977 = vrot.lane.b32.xlu1 %v4961_v4, %s6850_s21  ;;  %4665 = vrot.lane.b32.xlu0 %v4650_v63, %s6857_s16  ;;  %v5561_v4 = vrot.slane %v5559_v12, 4  ;;  %v5418_v63 = vcombine.high %v5413_v32, %v5413_v32  ;;  %v5419_v16 = vcombine.high %v5414_v3, %v5414_v3  ;;  %v5424_v21 = vpack.c.bf16 %v5414_v3, %v5414_v3 }
 0xa9d   :  { %v5423_v20 = vpack.c.bf16 %v5418_v63, %v5418_v63  ;;  %v5425_v17 = vpack.c.bf16 %v5419_v16, %v5419_v16 }
 0xa9f   :  { %4816 = vrot.lane.b32.xlu1 %v4803_v56, %s6856_s29  ;;  %5124 = vrot.lane.b32.xlu0 %v5112_v18, %s6849_s18  ;;  %v5563_v56 = vsel %vm45_vm0, %v5560_v6, %v5561_v4  ;;  %v5415_v18 = vmul.f32 %v5406_v0, %v5396_v15 }
 0xaa0   :  { %v5564_v26 = vsel %vm175_vm6, %v5563_v56, %v5559_v12 }
 0xaa1   :  { %v5426_v33 = vpack.c.bf16 %v5415_v18, %v5415_v18 }
 0xaa3   :  { %4820 = vrot.lane.b32.xlu1 %v4805_v27, %s6856_s29  ;;  %5128 = vrot.lane.b32.xlu0 %v5114_v35, %s6849_s18  ;;  %v5569_v27 = vmul.f32 %v5564_v26, %v8041_v60  ;;  %v5551_v35 = vld [vmem:[#allocation2 + $0x14] sm:$0xf] }
 0xaa4   :  { %v5570_v24 = vmul.f32 %v5561_v4, %v5551_v35 }
 0xaa5   :  { %v5579_v38 = vpack.c.bf16 %v5569_v27, %v5569_v27  ;;  %v5574_v48 = vcombine.high %v5569_v27, %v5569_v27 }
 0xaa7   :  { %5279 = vrot.lane.b32.xlu1 %v5267_v47, %s6853_s14  ;;  %4971 = vrot.lane.b32.xlu0 %v4958_v23, %s6850_s21  ;;  %v5578_v47 = vpack.c.bf16 %v5573_v28, %v5573_v28  ;;  %v5581_v23 = vpack.c.bf16 %v5570_v24, %v5570_v24  ;;  %v5580_v39 = vpack.c.bf16 %v5574_v48, %v5574_v48 }
 0xaab   :  { %5283 = vrot.lane.b32.xlu1 %v5269_v44, %s6853_s14  ;;  %4975 = vrot.lane.b32.xlu0 %v4960_v45, %s6850_s21 }
 0xaaf   :  { %5126 = vrot.lane.b32.xlu1 %v5113_v25, %s6849_s18  ;;  %5132 = vrot.lane.b32.xlu0 %v5116_v53, %s6849_s18  ;;  %v4367_v25 = vpack.c.bf16 %v8027_v31, %v8027_v31 }
 0xab1   :  { %v4526_v31 = vsel %vm184_vm7, %v4367_v25, 0 }
 0xab3   :  { %5130 = vrot.lane.b32.xlu1 %v5115_v62, %s6849_s18  ;;  %5434 = vrot.lane.b32.xlu0 %v5422_v37, %s6852_s30  ;;  %v4369_v62 = vpack.c.bf16 %v8031_v49, %v8031_v49 }
 0xab5   :  { %v4532_v37 = vsel %vm184_vm7, %v4369_v62, 0 }
 0xab7   :  { %5287 = vrot.lane.b32.xlu1 %v5271_v13, %s6853_s14  ;;  %5281 = vrot.lane.b32.xlu0 %v5268_v57, %s6853_s14 }
 0xabb   :  { %5589 = vrot.lane.b32.xlu1 %v5577_v58, %s6848_s15  ;;  %5285 = vrot.lane.b32.xlu0 %v5270_v8, %s6853_s14 }
 0xabf   :  { %5436 = vrot.lane.b32.xlu1 %v5423_v20, %s6852_s30  ;;  %5438 = vrot.lane.b32.xlu0 %v5424_v21, %s6852_s30  ;;  %v6593_v21 = vld [vmem:[%s8441_s5 + $0x3a] sm:$0x3] }
 0xac3   :  { %5440 = vrot.lane.b32.xlu1 %v5425_v17, %s6852_s30  ;;  %5442 = vrot.lane.b32.xlu0 %v5426_v33, %s6852_s30 }
 0xac7   :  { %5593 = vrot.lane.b32.xlu1 %v5579_v38, %s6848_s15  ;;  %5591 = vrot.lane.b32.xlu0 %v5578_v47, %s6848_s15 }
 0xacb   :  { %5597 = vrot.lane.b32.xlu1 %v5581_v23, %s6848_s15  ;;  %5595 = vrot.lane.b32.xlu0 %v5580_v39, %s6848_s15  ;;  %v6600_v23 = vld [vmem:[%s8441_s5 + $0x3c] sm:$0x3] }
 0xaf1   :  { %v4660_v60 = vpop.permute.xlu1 %4659  ;;  %v4412_v40 = vpop.permute.xlu0 %4411 }
 0xaf5   :  { %v4664_v42 = vpop.permute.xlu1 %4663  ;;  %v4416_v43 = vpop.permute.xlu0 %4415 }
 0xaf9   :  { %v4414_v44 = vpop.permute.xlu1 %4413  ;;  %v4420_v45 = vpop.permute.xlu0 %4419 }
 0xafa   :  { %v4421_v30 = vsel %vm175_vm6, %v4412_v40, %v4414_v44  ;;  %v4422_v19 = vsel %vm175_vm6, %v4414_v44, %v4416_v43 }
 0xafb   :  { %v4429_v46 = vsel %vm184_vm7, %v4421_v30, 0  ;;  %6576 = vmatprep.subr.msk.bf16.mxu0 %vm184_vm7, %v4422_v19 }
 0xafc   :  { %4441 = vmatpush1.bf16.msra.mxu0 %v4429_v46 }
 0xafd   :  { %6580 = vmatprep.subr.msk.bf16.mxu0 %vm184_vm7, %v4368_v34  ;;  %v4418_v53 = vpop.permute.xlu1 %4417  ;;  %v4815_v32 = vpop.permute.xlu0 %4814  ;;  %v6607_v34 = vld [vmem:[%s8441_s5 + $0x40] sm:$0x3] }
 0xafe   :  { %v4423_v55 = vsel %vm175_vm6, %v4416_v43, %v4418_v53  ;;  %v4424_v6 = vsel %vm175_vm6, %v4418_v53, %v4420_v45 }
 0xaff   :  { %v4435_v0 = vsel %vm184_vm7, %v4423_v55, 0  ;;  %6577 = vmatmul.mubr.msk.bf16.vlgmr.msra.gmra.mrb[44].mxu0 %vm180_vm8, %v6575_v29  ;;  %6578 = vmatprep.subr.msk.bf16.mxu1 %vm184_vm7, %v4424_v6 }
 0xb00   :  { %4482 = vmatpush1.bf16.msra.mxu1 %v4435_v0  ;;  %4538 = vmatpush1.bf16.msra.mxu0 %v4526_v31 }
 0xb01   :  { %6582 = vmatprep.subr.msk.bf16.mxu1 %vm184_vm7, %v4370_v36  ;;  %v4668_v9 = vpop.permute.xlu1 %4667  ;;  %4569 = vmatprep.mubr.bf16.mxu0 %v6847_v22  ;;  %v4819_v2 = vpop.permute.xlu0 %4818 }
 0xb03   :  { %6579 = vmatmul.mubr.msk.bf16.vlgmr.msra.gmra.mrb[44].mxu1 %vm180_vm8, %v6575_v29 }
 0xb04   :  { %4579 = vmatpush1.bf16.msra.mxu1 %v4532_v37  ;;  %4610 = vmatprep.mubr.bf16.mxu1 %v6847_v22 }
 0xb05   :  { %v4970_v49 = vpop.permute.xlu1 %4969  ;;  %v4823_v59 = vpop.permute.xlu0 %4822 }
 0xb07   :  { %6581 = vmatmul.mubr.msk.bf16.vlgmr.msra.gmra.mrb[48].mxu0 %vm180_vm8, %v6574_v41 }
 0xb08   :  { %4720 = vmatprep.mubr.bf16.mxu0 %v6847_v22 }
 0xb09   :  { %v4974_v10 = vpop.permute.xlu1 %4973  ;;  %v4662_v12 = vpop.permute.xlu0 %4661 }
 0xb0a   :  { %v4669_v13 = vsel %vm428_vm10, %v4660_v60, %v4662_v12  ;;  %v4670_v11 = vsel %vm428_vm10, %v4662_v12, %v4664_v42 }
 0xb0b   :  { %6583 = vmatmul.mubr.msk.bf16.vlgmr.msra.gmra.mrb[48].mxu1 %vm180_vm8, %v6574_v41  ;;  %v4677_v57 = vsel %vm184_vm7, %v4669_v13, 0  ;;  %6587 = vmatprep.subr.msk.bf16.mxu0 %vm184_vm7, %v4670_v11 }
 0xb0c   :  { %4761 = vmatprep.mubr.bf16.mxu1 %v6847_v22  ;;  %4689 = vmatpush1.bf16.msra.mxu0 %v4677_v57 }
 0xb0d   :  { %v4978_v61 = vpop.permute.xlu1 %4977  ;;  %v4666_v4 = vpop.permute.xlu0 %4665 }
 0xb0e   :  { %v4671_v63 = vsel %vm428_vm10, %v4664_v42, %v4666_v4  ;;  %v4672_v58 = vsel %vm428_vm10, %v4666_v4, %v4668_v9  ;;  %v6614_v9 = vld [vmem:[%s8441_s5 + $0x42] sm:$0x3] }
 0xb0f   :  { %v4683_v3 = vsel %vm184_vm7, %v4671_v63, 0  ;;  %6588 = vmatmul.mubr.msk.bf16.vlgmr.msra.gmra.mrb[52].mxu0 %vm180_vm8, %v6586_v14  ;;  %6589 = vmatprep.subr.msk.bf16.mxu1 %vm184_vm7, %v4672_v58 }
 0xb10   :  { %4730 = vmatpush1.bf16.msra.mxu1 %v4683_v3  ;;  %4875 = vmatprep.mubr.bf16.mxu0 %v6847_v22 }
 0xb11   :  { %v4817_v8 = vpop.permute.xlu1 %4816  ;;  %v5125_v15 = vpop.permute.xlu0 %5124 }
 0xb12   :  { %v4824_v56 = vsel %vm586_vm9, %v4815_v32, %v4817_v8  ;;  %v4825_v20 = vsel %vm586_vm9, %v4817_v8, %v4819_v2 }
 0xb13   :  { %v4832_v16 = vsel %vm184_vm7, %v4824_v56, 0  ;;  %6594 = vmatprep.subr.msk.bf16.mxu0 %vm184_vm7, %v4825_v20  ;;  %6590 = vmatmul.mubr.msk.bf16.vlgmr.msra.gmra.mrb[52].mxu1 %vm180_vm8, %v6586_v14 }
 0xb14   :  { %4844 = vmatpush1.bf16.msra.mxu0 %v4832_v16  ;;  %4916 = vmatprep.mubr.bf16.mxu1 %v6847_v22 }
 0xb15   :  { %v4821_v18 = vpop.permute.xlu1 %4820  ;;  %v5129_v26 = vpop.permute.xlu0 %5128 }
 0xb16   :  { %v4826_v17 = vsel %vm586_vm9, %v4819_v2, %v4821_v18  ;;  %v4827_v27 = vsel %vm586_vm9, %v4821_v18, %v4823_v59  ;;  %v6628_v18 = vld [vmem:[%s8441_s5 + $0x46] sm:$0x3] }
 0xb17   :  { %v4838_v28 = vsel %vm184_vm7, %v4826_v17, 0  ;;  %6596 = vmatprep.subr.msk.bf16.mxu1 %vm184_vm7, %v4827_v27  ;;  %6595 = vmatmul.mubr.msk.bf16.vlgmr.msra.gmra.mrb[56].mxu0 %vm180_vm8, %v6593_v21 }
 0xb18   :  { %4885 = vmatpush1.bf16.msra.mxu1 %v4838_v28  ;;  %5030 = vmatprep.mubr.bf16.mxu0 %v6847_v22 }
 0xb19   :  { %v5280_v33 = vpop.permute.xlu1 %5279  ;;  %v4972_v35 = vpop.permute.xlu0 %4971 }
 0xb1a   :  { %v4979_v24 = vsel %vm744_vm5, %v4970_v49, %v4972_v35  ;;  %v4980_v38 = vsel %vm744_vm5, %v4972_v35, %v4974_v10 }
 0xb1b   :  { %v4987_v47 = vsel %vm184_vm7, %v4979_v24, 0  ;;  %6597 = vmatmul.mubr.msk.bf16.vlgmr.msra.gmra.mrb[56].mxu1 %vm180_vm8, %v6593_v21  ;;  %6601 = vmatprep.subr.msk.bf16.mxu0 %vm184_vm7, %v4980_v38 }
 0xb1c   :  { %4999 = vmatpush1.bf16.msra.mxu0 %v4987_v47  ;;  %5071 = vmatprep.mubr.bf16.mxu1 %v6847_v22 }
 0xb1d   :  { %v5284_v48 = vpop.permute.xlu1 %5283  ;;  %v4976_v39 = vpop.permute.xlu0 %4975 }
 0xb1e   :  { %v4981_v60 = vsel %vm744_vm5, %v4974_v10, %v4976_v39  ;;  %v4982_v40 = vsel %vm744_vm5, %v4976_v39, %v4978_v61  ;;  %v6621_v61 = vld [vmem:[%s8441_s5 + $0x44] sm:$0x3] }
 0xb1f   :  { %v4993_v42 = vsel %vm184_vm7, %v4981_v60, 0  ;;  %6602 = vmatmul.mubr.msk.bf16.vlgmr.msra.gmra.mrb[60].mxu0 %vm180_vm8, %v6600_v23  ;;  %6603 = vmatprep.subr.msk.bf16.mxu1 %vm184_vm7, %v4982_v40 }
 0xb20   :  { %5040 = vmatpush1.bf16.msra.mxu1 %v4993_v42  ;;  %5185 = vmatprep.mubr.bf16.mxu0 %v6847_v22 }
 0xb21   :  { %v5127_v43 = vpop.permute.xlu1 %5126  ;;  %v5133_v44 = vpop.permute.xlu0 %5132 }
 0xb22   :  { %v5134_v45 = vsel %vm706_vm4, %v5125_v15, %v5127_v43  ;;  %v5135_v30 = vsel %vm706_vm4, %v5127_v43, %v5129_v26 }
 0xb23   :  { %v5142_v19 = vsel %vm184_vm7, %v5134_v45, 0  ;;  %6608 = vmatprep.subr.msk.bf16.mxu0 %vm184_vm7, %v5135_v30  ;;  %6604 = vmatmul.mubr.msk.bf16.vlgmr.msra.gmra.mrb[60].mxu1 %vm180_vm8, %v6600_v23 }
 0xb24   :  { %5154 = vmatpush1.bf16.msra.mxu0 %v5142_v19  ;;  %5226 = vmatprep.mubr.bf16.mxu1 %v6847_v22 }
 0xb25   :  { %v5131_v46 = vpop.permute.xlu1 %5130  ;;  %v5435_v25 = vpop.permute.xlu0 %5434 }
 0xb26   :  { %v5136_v29 = vsel %vm706_vm4, %v5129_v26, %v5131_v46  ;;  %v5137_v53 = vsel %vm706_vm4, %v5131_v46, %v5133_v44 }
 0xb27   :  { %v5148_v32 = vsel %vm184_vm7, %v5136_v29, 0  ;;  %6610 = vmatprep.subr.msk.bf16.mxu1 %vm184_vm7, %v5137_v53  ;;  %6609 = vmatmul.mubr.msk.bf16.vlgmr.msra.gmra.mrb[64].mxu0 %vm180_vm8, %v6607_v34 }
 0xb28   :  { %5195 = vmatpush1.bf16.msra.mxu1 %v5148_v32  ;;  %5340 = vmatprep.mubr.bf16.mxu0 %v6847_v22 }
 0xb29   :  { %v5288_v55 = vpop.permute.xlu1 %5287  ;;  %v5282_v6 = vpop.permute.xlu0 %5281 }
 0xb2a   :  { %v5289_v0 = vsel %vm548_vm3, %v5280_v33, %v5282_v6  ;;  %v5290_v31 = vsel %vm548_vm3, %v5282_v6, %v5284_v48 }
 0xb2b   :  { %v5297_v36 = vsel %vm184_vm7, %v5289_v0, 0  ;;  %6611 = vmatmul.mubr.msk.bf16.vlgmr.msra.gmra.mrb[64].mxu1 %vm180_vm8, %v6607_v34  ;;  %6615 = vmatprep.subr.msk.bf16.mxu0 %vm184_vm7, %v5290_v31 }
 0xb2c   :  { %5309 = vmatpush1.bf16.msra.mxu0 %v5297_v36  ;;  %5381 = vmatprep.mubr.bf16.mxu1 %v6847_v22 }
 0xb2d   :  { %v5590_v62 = vpop.permute.xlu1 %5589  ;;  %v5286_v2 = vpop.permute.xlu0 %5285 }
 0xb2e   :  { %v5291_v37 = vsel %vm548_vm3, %v5284_v48, %v5286_v2  ;;  %v5292_v41 = vsel %vm548_vm3, %v5286_v2, %v5288_v55 }
 0xb2f   :  { %v5303_v49 = vsel %vm184_vm7, %v5291_v37, 0  ;;  %6616 = vmatmul.mubr.msk.bf16.vlgmr.msra.gmra.mrb[68].mxu0 %vm180_vm8, %v6614_v9  ;;  %6617 = vmatprep.subr.msk.bf16.mxu1 %vm184_vm7, %v5292_v41 }
 0xb30   :  { %5350 = vmatpush1.bf16.msra.mxu1 %v5303_v49  ;;  %5495 = vmatprep.mubr.bf16.mxu0 %v6847_v22 }
 0xb31   :  { %v5437_v59 = vpop.permute.xlu1 %5436  ;;  %v5439_v10 = vpop.permute.xlu0 %5438 }
 0xb32   :  { %v5444_v12 = vsel %vm390_vm2, %v5435_v25, %v5437_v59  ;;  %v5445_v13 = vsel %vm390_vm2, %v5437_v59, %v5439_v10 }
 0xb33   :  { %v5452_v11 = vsel %vm184_vm7, %v5444_v12, 0  ;;  %6618 = vmatmul.mubr.msk.bf16.vlgmr.msra.gmra.mrb[68].mxu1 %vm180_vm8, %v6614_v9  ;;  %6622 = vmatprep.subr.msk.bf16.mxu0 %vm184_vm7, %v5445_v13 }
 0xb34   :  { %5464 = vmatpush1.bf16.msra.mxu0 %v5452_v11  ;;  %5536 = vmatprep.mubr.bf16.mxu1 %v6847_v22 }
 0xb35   :  { %v5441_v57 = vpop.permute.xlu1 %5440  ;;  %v5443_v14 = vpop.permute.xlu0 %5442 }
 0xb36   :  { %v5446_v4 = vsel %vm390_vm2, %v5439_v10, %v5441_v57  ;;  %v5447_v63 = vsel %vm390_vm2, %v5441_v57, %v5443_v14 }
 0xb37   :  { %v5458_v58 = vsel %vm184_vm7, %v5446_v4, 0  ;;  %6623 = vmatmul.mubr.msk.bf16.vlgmr.msra.gmra.mrb[72].mxu0 %vm180_vm8, %v6621_v61  ;;  %6624 = vmatprep.subr.msk.bf16.mxu1 %vm184_vm7, %v5447_v63 }
 0xb38   :  { %5505 = vmatpush1.bf16.msra.mxu1 %v5458_v58  ;;  %5650 = vmatprep.mubr.bf16.mxu0 %v6847_v22 }
 0xb39   :  { %v5594_v3 = vpop.permute.xlu1 %5593  ;;  %v5592_v8 = vpop.permute.xlu0 %5591 }
 0xb3a   :  { %v5599_v15 = vsel %vm138_vm1, %v5590_v62, %v5592_v8  ;;  %v5600_v56 = vsel %vm138_vm1, %v5592_v8, %v5594_v3 }
 0xb3b   :  { %v5607_v20 = vsel %vm184_vm7, %v5599_v15, 0  ;;  %6625 = vmatmul.mubr.msk.bf16.vlgmr.msra.gmra.mrb[72].mxu1 %vm180_vm8, %v6621_v61  ;;  %6629 = vmatprep.subr.msk.bf16.mxu0 %vm184_vm7, %v5600_v56 }
 0xb3c   :  { %5619 = vmatpush1.bf16.msra.mxu0 %v5607_v20  ;;  %5691 = vmatprep.mubr.bf16.mxu1 %v6847_v22 }
 0xb3d   :  { %v5598_v16 = vpop.permute.xlu1 %5597  ;;  %v5596_v21 = vpop.permute.xlu0 %5595 }
 0xb3e   :  { %v5601_v26 = vsel %vm138_vm1, %v5594_v3, %v5596_v21  ;;  %v5602_v17 = vsel %vm138_vm1, %v5596_v21, %v5598_v16 }
 0xb3f   :  { %v5613_v27 = vsel %vm184_vm7, %v5601_v26, 0  ;;  %6630 = vmatmul.mubr.msk.bf16.vlgmr.msra.gmra.mrb[76].mxu0 %vm180_vm8, %v6628_v18  ;;  %6631 = vmatprep.subr.msk.bf16.mxu1 %vm184_vm7, %v5602_v17 }
 0xb40   :  { %5660 = vmatpush1.bf16.msra.mxu1 %v5613_v27  ;;  %5855 = vmatprep.mubr.bf16.mxu0 %v6847_v22 }
 0xb43   :  { %6632 = vmatmul.mubr.msk.bf16.vlgmr.msra.gmra.mrb[76].mxu1 %vm180_vm8, %v6628_v18 }
 0xb44   :  { %5896 = vmatprep.mubr.bf16.mxu1 %v6847_v22 }
 0xbd2   :  { %v4474_v28 = vpop.f32.mrb[44].mxu0 }
 0xbd3   :  { %v4476_v33 = vpop.f32.mrb[45].mxu0 }
 0xbd4   :  { %v4478_v35 = vpop.f32.mrb[46].mxu0 }
 0xbd5   :  { %v4479_v24 = vpop.f32.mrb[47].mxu0 }
 0xbd6   :  { %v4515_v38 = vpop.f32.mrb[44].mxu1 }
 0xbd7   :  { %v4517_v47 = vpop.f32.mrb[45].mxu1 }
 0xbd8   :  { %v4519_v48 = vpop.f32.mrb[46].mxu1 }
 0xbd9   :  { %v4520_v23 = vpop.f32.mrb[47].mxu1 }
 0xbda   :  { %v4571_v39 = vpop.f32.mrb[48].mxu0 }
 0xbdb   :  { %v4572_v60 = vadd.f32 %v4571_v39, %v4474_v28  ;;  %v4573_v40 = vpop.f32.mrb[49].mxu0 }
 0xbdc   :  { %v4574_v42 = vadd.f32 %v4573_v40, %v4476_v33  ;;  %v4575_v43 = vpop.f32.mrb[50].mxu0 }
 0xbdd   :  { %v4576_v44 = vpop.f32.mrb[51].mxu0 }
 0xbde   :  { %v4612_v45 = vpop.f32.mrb[48].mxu1 }
 0xbdf   :  { %v4613_v30 = vadd.f32 %v4612_v45, %v4515_v38  ;;  %v4614_v19 = vpop.f32.mrb[49].mxu1 }
 0xbe0   :  { %v4615_v46 = vadd.f32 %v4614_v19, %v4517_v47  ;;  %v4616_v34 = vpop.f32.mrb[50].mxu1 }
 0xbe1   :  { %v4617_v25 = vpop.f32.mrb[51].mxu1 }
 0xbe2   :  { %v4722_v29 = vpop.f32.mrb[52].mxu0 }
 0xbe3   :  { %v4770_v53 = vadd.f32 %v4722_v29, %v4572_v60  ;;  %v4724_v32 = vpop.f32.mrb[53].mxu0 }
 0xbe4   :  { %v4771_v55 = vadd.f32 %v4724_v32, %v4574_v42  ;;  %v4726_v6 = vpop.f32.mrb[54].mxu0 }
 0xbe5   :  { %v4727_v0 = vpop.f32.mrb[55].mxu0 }
 0xbe6   :  { %v4763_v31 = vpop.f32.mrb[52].mxu1 }
 0xbe7   :  { %v4772_v36 = vadd.f32 %v4763_v31, %v4613_v30  ;;  %v4765_v62 = vpop.f32.mrb[53].mxu1 }
 0xbe8   :  { %v4773_v9 = vadd.f32 %v4765_v62, %v4615_v46  ;;  %v4767_v2 = vpop.f32.mrb[54].mxu1 }
 0xbe9   :  { %v4768_v37 = vpop.f32.mrb[55].mxu1 }
 0xbea   :  { %v4877_v41 = vpop.f32.mrb[56].mxu0 }
 0xbeb   :  { %v4925_v49 = vadd.f32 %v4877_v41, %v4770_v53  ;;  %v4879_v59 = vpop.f32.mrb[57].mxu0  ;;  %v8265_v53 = vld [vmem:[%s8443_s1] sm:$0xff] }
 0xbec   :  { %v4926_v10 = vadd.f32 %v4879_v59, %v4771_v55  ;;  %v4881_v12 = vpop.f32.mrb[58].mxu0  ;;  %v6008_v31 = vcombine.high %v8265_v53, %v8265_v53  ;;  %v6012_v59 = vsel %vm45_vm0, %v8265_v53, 0.0 }
 0xbed   :  { %v4882_v13 = vpop.f32.mrb[59].mxu0  ;;  %v6022_v12 = vmul.f32 %v8265_v53, %v8265_v53 }
 0xbee   :  { %v4918_v11 = vpop.f32.mrb[56].mxu1 }
 0xbef   :  { %v4927_v57 = vadd.f32 %v4918_v11, %v4772_v36  ;;  %v4920_v61 = vpop.f32.mrb[57].mxu1 }
 0xbf0   :  { %v4928_v14 = vadd.f32 %v4920_v61, %v4773_v9  ;;  %v4922_v4 = vpop.f32.mrb[58].mxu1 }
 0xbf1   :  { %v4923_v63 = vpop.f32.mrb[59].mxu1 }
 0xbf2   :  { %v5032_v58 = vpop.f32.mrb[60].mxu0 }
 0xbf3   :  { %v5080_v3 = vadd.f32 %v5032_v58, %v4925_v49  ;;  %v5034_v8 = vpop.f32.mrb[61].mxu0  ;;  %v8272_v49 = vld [vmem:[%s8443_s1 + $0x8] sm:$0xff] }
 0xbf4   :  { %v5081_v15 = vadd.f32 %v5034_v8, %v4926_v10  ;;  %v5036_v56 = vpop.f32.mrb[62].mxu0  ;;  %v6013_v10 = vsel %vm45_vm0, %v6008_v31, 0.0  ;;  %v6009_v63 = vcombine.high %v8272_v49, %v8272_v49  ;;  %v6015_v8 = vsel %vm45_vm0, %v8272_v49, 0.0 }
 0xbf5   :  { %v5037_v20 = vpop.f32.mrb[63].mxu0  ;;  %v6014_v58 = vadd.f32 %v6013_v10, %v6012_v59  ;;  %v6026_v56 = vcombine.high %v6022_v12, %v6022_v12 }
 0xbf6   :  { %v5073_v16 = vpop.f32.mrb[60].mxu1 }
 0xbf7   :  { %v5082_v18 = vadd.f32 %v5073_v16, %v4927_v57  ;;  %v5075_v21 = vpop.f32.mrb[61].mxu1 }
 0xbf8   :  { %v5083_v26 = vadd.f32 %v5075_v21, %v4928_v14  ;;  %v5077_v17 = vpop.f32.mrb[62].mxu1  ;;  %v8282_v14 = vld [vmem:[%s8443_s1 + $0x10] sm:$0xff] }
 0xbf9   :  { %v5078_v27 = vpop.f32.mrb[63].mxu1  ;;  %v6030_v17 = vsel %vm45_vm0, %v6022_v12, 0.0 }
 0xbfa   :  { %v5187_v28 = vpop.f32.mrb[64].mxu0 }
 0xbfb   :  { %v5235_v33 = vadd.f32 %v5187_v28, %v5080_v3  ;;  %v5189_v35 = vpop.f32.mrb[65].mxu0 }
 0xbfc   :  { %v5236_v24 = vadd.f32 %v5189_v35, %v5081_v15  ;;  %v5191_v38 = vpop.f32.mrb[66].mxu0  ;;  %v6023_v15 = vmul.f32 %v8272_v49, %v8272_v49  ;;  %v6017_v35 = vsel %vm45_vm0, %v6009_v63, 0.0 }
 0xbfd   :  { %v5192_v47 = vpop.f32.mrb[67].mxu0 }
 0xbfe   :  { %v5228_v48 = vpop.f32.mrb[64].mxu1 }
 0xbff   :  { %v5237_v23 = vadd.f32 %v5228_v48, %v5082_v18  ;;  %v5230_v39 = vpop.f32.mrb[65].mxu1  ;;  %v6196_v18 = vcombine.high %v8282_v14, %v8282_v14  ;;  %v6027_v48 = vcombine.high %v6023_v15, %v6023_v15 }
 0xc00   :  { %v5238_v60 = vadd.f32 %v5230_v39, %v5083_v26  ;;  %v5232_v40 = vpop.f32.mrb[66].mxu1  ;;  %v6200_v39 = vsel %vm45_vm0, %v8282_v14, 0.0 }
 0xc01   :  { %v5233_v42 = vpop.f32.mrb[67].mxu1 }
 0xc02   :  { %v5342_v43 = vpop.f32.mrb[68].mxu0 }
 0xc03   :  { %v5390_v44 = vadd.f32 %v5342_v43, %v5235_v33  ;;  %v5344_v45 = vpop.f32.mrb[69].mxu0  ;;  %v6016_v33 = vadd.f32 %v6015_v8, %v6014_v58 }
 0xc04   :  { %v5391_v30 = vadd.f32 %v5344_v45, %v5236_v24  ;;  %v5346_v19 = vpop.f32.mrb[70].mxu0  ;;  %v6210_v24 = vmul.f32 %v8282_v14, %v8282_v14  ;;  %v6201_v45 = vsel %vm45_vm0, %v6196_v18, 0.0 }
 0xc05   :  { %v5347_v46 = vpop.f32.mrb[71].mxu0 }
 0xc06   :  { %v5383_v34 = vpop.f32.mrb[68].mxu1 }
 0xc07   :  { %v5392_v25 = vadd.f32 %v5383_v34, %v5237_v23  ;;  %v5385_v29 = vpop.f32.mrb[69].mxu1  ;;  %v6031_v23 = vsel %vm45_vm0, %v6026_v56, 0.0 }
 0xc08   :  { %v5393_v32 = vadd.f32 %v5385_v29, %v5238_v60  ;;  %v5387_v55 = vpop.f32.mrb[70].mxu1 }
 0xc09   :  { %v5388_v6 = vpop.f32.mrb[71].mxu1 }
 0xc0a   :  { %v5497_v0 = vpop.f32.mrb[72].mxu0 }
 0xc0b   :  { %v5545_v36 = vadd.f32 %v5497_v0, %v5390_v44  ;;  %v5499_v62 = vpop.f32.mrb[73].mxu0  ;;  %v8312_v44 = vld [vmem:[%s8443_s1 + $0x18] sm:$0xff]  ;;  %v6214_v0 = vcombine.high %v6210_v24, %v6210_v24 }
 0xc0c   :  { %v5546_v9 = vadd.f32 %v5499_v62, %v5391_v30  ;;  %v5501_v2 = vpop.f32.mrb[74].mxu0  ;;  %v6197_v62 = vcombine.high %v8312_v44, %v8312_v44  ;;  %v6203_v59 = vsel %vm45_vm0, %v8312_v44, 0.0 }
 0xc0d   :  { %v5502_v37 = vpop.f32.mrb[75].mxu0  ;;  %v6219_v63 = vsel %vm45_vm0, %v6214_v0, 0.0 }
 0xc0e   :  { %v5538_v41 = vpop.f32.mrb[72].mxu1  ;;  %v6205_v56 = vsel %vm45_vm0, %v6197_v62, 0.0 }
 0xc0f   :  { %v5547_v13 = vadd.f32 %v5538_v41, %v5392_v25  ;;  %v5540_v11 = vpop.f32.mrb[73].mxu1  ;;  %v6033_v25 = vsel %vm45_vm0, %v6023_v15, 0.0 }
 0xc10   :  { %v5548_v57 = vadd.f32 %v5540_v11, %v5393_v32  ;;  %v5542_v61 = vpop.f32.mrb[74].mxu1  ;;  %v6032_v11 = vadd.f32 %v6031_v23, %v6030_v17 }
 0xc11   :  { %v5543_v4 = vpop.f32.mrb[75].mxu1  ;;  %v6211_v61 = vmul.f32 %v8312_v44, %v8312_v44 }
 0xc12   :  { %v5652_v3 = vpop.f32.mrb[76].mxu0  ;;  %v6218_v4 = vsel %vm45_vm0, %v6210_v24, 0.0  ;;  %v6034_v18 = vadd.f32 %v6033_v25, %v6032_v11  ;;  %v6646_v11 = vld [vmem:[%s8442_s6 + $0x8] sm:$0xf] }
 0xc13   :  { %v5700_v20 = vadd.f32 %v5652_v3, %v5545_v36  ;;  %v5654_v16 = vpop.f32.mrb[77].mxu0  ;;  %v6215_v17 = vcombine.high %v6211_v61, %v6211_v61 }
 0xc14   :  { %v5701_v21 = vadd.f32 %v5654_v16, %v5546_v9  ;;  %v5656_v26 = vpop.f32.mrb[78].mxu0  ;;  %v6202_v9 = vadd.f32 %v6201_v45, %v6200_v39  ;;  %v6018_v16 = vadd.f32 %v6017_v35, %v6016_v33 }
 0xc15   :  { %v8294_v27 = vadd.f32 %v5700_v20, %v7577_v51  ;;  %v5657_v28 = vpop.f32.mrb[79].mxu0  ;;  %v6035_v26 = vsel %vm45_vm0, %v6027_v48, 0.0  ;;  %v6223_v39 = vsel %vm45_vm0, %v6215_v17, 0.0 }
 0xc16   :  { %v8300_v38 = vadd.f32 %v5701_v21, %v7580_v54  ;;  %v5693_v47 = vpop.f32.mrb[76].mxu1  ;;  %v6204_v15 = vadd.f32 %v6203_v59, %v6202_v9  ;;  %v6220_v21 = vadd.f32 %v6219_v63, %v6218_v4  ;;  %v6221_v28 = vsel %vm45_vm0, %v6211_v61, 0.0  ;;  %v5714_v4 = vld [vmem:[%s8444_s7] sm:$0xf] }
 0xc17   :  { %v5749_v60 = vsel %vm45_vm0, %v8294_v27, 0.0  ;;  %v5759_v40 = vmul.f32 %v8294_v27, %v8294_v27  ;;  %v5702_v42 = vadd.f32 %v5693_v47, %v5547_v13  ;;  %v5695_v43 = vpop.f32.mrb[77].mxu1  ;;  %v6036_v47 = vadd.f32 %v6035_v26, %v6034_v18 }
 0xc18   :  { %v5750_v30 = vsel %vm45_vm0, %v8300_v38, 0.0  ;;  %v5760_v19 = vmul.f32 %v8300_v38, %v8300_v38  ;;  %v5703_v46 = vadd.f32 %v5695_v43, %v5548_v57  ;;  %v5697_v34 = vpop.f32.mrb[78].mxu1  ;;  %v6206_v24 = vadd.f32 %v6205_v56, %v6204_v15  ;;  %v6647_v56 = vld [vmem:[%s8444_s7 + $0x8] sm:$0xf] }
 0xc19   :  { %v8321_v29 = vadd.f32 %v5702_v42, %v7593_v5  ;;  %v5698_v32 = vpop.f32.mrb[79].mxu1  ;;  %v5751_v55 = vadd.f32 %v5750_v30, %v5749_v60  ;;  %v5763_v6 = vsel %vm45_vm0, %v5759_v40, 0.0  ;;  %v6222_v23 = vadd.f32 %v6221_v28, %v6220_v21 }
 0xc1a   :  { %v8325_v31 = vadd.f32 %v5703_v46, %v7597_v1  ;;  %v5764_v36 = vsel %vm45_vm0, %v5760_v19, 0.0 }
 0xc1b   :  { %v5761_v2 = vmul.f32 %v8321_v29, %v8321_v29  ;;  %v5752_v37 = vsel %vm45_vm0, %v8321_v29, 0.0  ;;  %v5765_v41 = vadd.f32 %v5764_v36, %v5763_v6  ;;  %v6224_v60 = vadd.f32 %v6223_v39, %v6222_v23 }
 0xc1c   :  { %v5753_v10 = vadd.f32 %v5752_v37, %v5751_v55  ;;  %v5754_v12 = vsel %vm45_vm0, %v8325_v31, 0.0  ;;  %v5762_v13 = vmul.f32 %v8325_v31, %v8325_v31 }
 0xc1d   :  { %v5766_v57 = vsel %vm45_vm0, %v5761_v2, 0.0 }
 0xc1e   :  { %v5755_v58 = vadd.f32 %v5754_v12, %v5753_v10  ;;  %v5767_v3 = vadd.f32 %v5766_v57, %v5765_v41  ;;  %v5768_v8 = vsel %vm45_vm0, %v5762_v13, 0.0  ;;  %v6635_v41 = vld [vmem:[%s8442_s6 + $0x4] sm:$0xf] }
 0xc1f   :  { %v6636_v12 = vld [vmem:[%s8444_s7 + $0x4] sm:$0xf] }
 0xc20   :  { %5756 = vadd.xlane.f32.xlu0 %v5755_v58  ;;  %v5769_v20 = vadd.f32 %v5768_v8, %v5767_v3  ;;  %v6653_v58 = vld [vmem:[%s8442_s6 + $0xc] sm:$0xf]  ;;  %v5717_v3 = vsub.f32 %v5714_v4, %v7622_v7 }
 0xc22   :  { %5770 = vadd.xlane.f32.xlu1 %v5769_v20 }
 0xc24   :  { %6019 = vadd.xlane.f32.xlu0 %v6018_v16 }
 0xc26   :  { %6207 = vadd.xlane.f32.xlu1 %v6206_v24 }
 0xc28   :  { %6037 = vadd.xlane.f32.xlu0 %v6036_v47 }
 0xc2c   :  { %6225 = vadd.xlane.f32.xlu0 %v6224_v60 }
 0xcad   :  { %v5757_v40 = vpop.xlane.xlu0 %5756 }
 0xcae   :  { %v5758_v33 = vmul.f32 0.001953125, %v5757_v40 }
 0xcaf   :  { %v5771_v35 = vpop.xlane.xlu1 %5770 }
 0xcb0   :  { %v5773_v42 = vmul.f32 %v5758_v33, %v5758_v33  ;;  %v5772_v43 = vmul.f32 0.001953125, %v5771_v35 }
 0xcb1   :  { %v6020_v48 = vpop.xlane.xlu0 %6019 }
 0xcb2   :  { %v5774_v45 = vsub.f32 %v5772_v43, %v5773_v42  ;;  %v6021_v30 = vmul.f32 0.001953125, %v6020_v48 }
 0xcb3   :  { %v6208_v19 = vpop.xlane.xlu1 %6207 }
 0xcb4   :  { %v5775_v46 = vadd.f32 1e-05, %v5774_v45  ;;  %v6040_v34 = vmul.f32 %v6021_v30, %v6021_v30  ;;  %v6209_v25 = vmul.f32 0.001953125, %v6208_v19 }
 0xcb5   :  { %v6038_v32 = vpop.xlane.xlu0 %6037 }
 0xcb6   :  { %6839 = vrsqrt.f32 %v5775_v46  ;;  %v6039_v55 = vmul.f32 0.001953125, %v6038_v32  ;;  %v6228_v0 = vmul.f32 %v6209_v25, %v6209_v25 }
 0xcb8   :  { %v6041_v6 = vsub.f32 %v6039_v55, %v6040_v34 }
 0xcb9   :  { %v6226_v36 = vpop.xlane.xlu0 %6225 }
 0xcba   :  { %v6042_v62 = vadd.f32 1e-05, %v6041_v6  ;;  %v6227_v9 = vmul.f32 0.001953125, %v6226_v36 }
 0xcbc   :  { %6841 = vrsqrt.f32 %v6042_v62  ;;  %v6229_v2 = vsub.f32 %v6227_v9, %v6228_v0 }
 0xcbe   :  { %v6230_v37 = vadd.f32 1e-05, %v6229_v2 }
 0xcc0   :  { %v6840_v59 = vpop.eup %6839  ;;  %6843 = vrsqrt.f32 %v6230_v37 }
 0xcc1   :  { %v5777_v10 = vmul.f32 %v6840_v59, %v6635_v41 }
 0xcc3   :  { %5782 = vperm.xlu1 %6823, %v5777_v10   ;;  %v5778_v13 = vmul.f32 %v5777_v10, %v5758_v33 }
 0xcc5   :  { %v5779_v57 = vsub.f32 %v6636_v12, %v5778_v13 }
 0xcc6   :  { %v6842_v61 = vpop.eup %6841 }
 0xcc7   :  { %5720 = vperm.xlu1 %6823, %v7616_v50   ;;  %5791 = vperm.xlu0 %6824, %v5779_v57   ;;  %v6044_v63 = vmul.f32 %v6842_v61, %v6646_v11  ;;  %v6654_v50 = vld [vmem:[%s8444_s7 + $0xc] sm:$0xf] }
 0xcc9   :  { %v6045_v8 = vmul.f32 %v6044_v63, %v6021_v30 }
 0xcca   :  { %v6844_v15 = vpop.eup %6843 }
 0xccb   :  { %5729 = vperm.xlu1 %6823, %v5717_v3   ;;  %6049 = vperm.xlu0 %6824, %v6044_v63   ;;  %v6232_v20 = vmul.f32 %v6844_v15, %v6653_v58  ;;  %v6046_v16 = vsub.f32 %v6647_v56, %v6045_v8 }
 0xccd   :  { %v6233_v18 = vmul.f32 %v6232_v20, %v6209_v25 }
 0xccf   :  { %6063 = vperm.xlu1 %6823, %v6046_v16   ;;  %6237 = vperm.xlu0 %6824, %v6232_v20   ;;  %v6234_v21 = vsub.f32 %v6654_v50, %v6233_v18 }
 0xcd3   :  { %6251 = vperm.xlu1 %6823, %v6234_v21  }
 0xd42   :  { %v5783_v7 = vpop.permute.xlu1 %5782 }
 0xd43   :  { %v5785_v26 = vmul.f32 %v5783_v7, %v8294_v27  ;;  %v5786_v17 = vmul.f32 %v5783_v7, %v8300_v38  ;;  %v5787_v28 = vmul.f32 %v5783_v7, %v8321_v29  ;;  %v5788_v24 = vmul.f32 %v5783_v7, %v8325_v31 }
 0xd46   :  { %v5721_v47 = vpop.permute.xlu1 %5720  ;;  %v5792_v23 = vpop.permute.xlu0 %5791 }
 0xd47   :  { %v5794_v39 = vadd.f32 %v5792_v23, %v5785_v26  ;;  %v5795_v60 = vadd.f32 %v5792_v23, %v5786_v17  ;;  %v5796_v40 = vadd.f32 %v5792_v23, %v5787_v28  ;;  %v5797_v33 = vadd.f32 %v5792_v23, %v5788_v24  ;;  %v5744_v23 = vld [vmem:[%s8445_s8] sm:$0x3] }
 0xd48   :  { %v5723_v35 = vmul.f32 %v5721_v47, %v7577_v51  ;;  %v5724_v42 = vmul.f32 %v5721_v47, %v7580_v54  ;;  %v5725_v43 = vmul.f32 %v5721_v47, %v7593_v5  ;;  %v5726_v27 = vmul.f32 %v5721_v47, %v7597_v1 }
 0xd49   :  { %v5799_v48 = vmax.f32 %v5795_v60, 0.0  ;;  %v5801_v38 = vmax.f32 %v5797_v33, 0.0  ;;  %v5798_v30 = vmax.f32 %v5794_v39, 0.0  ;;  %v5800_v31 = vmax.f32 %v5796_v40, 0.0 }
 0xd4a   :  { %v5730_v45 = vpop.permute.xlu1 %5729  ;;  %v6050_v29 = vpop.permute.xlu0 %6049 }
 0xd4b   :  { %v5732_v19 = vadd.f32 %v5730_v45, %v5723_v35  ;;  %v5733_v46 = vadd.f32 %v5730_v45, %v5724_v42  ;;  %v5734_v34 = vadd.f32 %v5730_v45, %v5725_v43  ;;  %v5735_v25 = vadd.f32 %v5730_v45, %v5726_v27  ;;  %v6648_v43 = vld [vmem:[%s8445_s8 + $0x4] sm:$0x3] }
 0xd4c   :  { %v5803_v32 = vpack.c.bf16 %v5799_v48, %v5799_v48  ;;  %v5805_v55 = vpack.c.bf16 %v5801_v38, %v5801_v38  ;;  %v6057_v51 = vrot.slane %v6050_v29, %v7022_v52  ;;  %v5802_v6 = vpack.c.bf16 %v5798_v30, %v5798_v30  ;;  %v6655_v38 = vld [vmem:[%s8445_s8 + $0x6] sm:$0x3] }
 0xd4d   :  { %v5737_v54 = vmax.f32 %v5733_v46, 0.0  ;;  %v5739_v0 = vmax.f32 %v5735_v25, 0.0  ;;  %v5804_v5 = vpack.c.bf16 %v5800_v31, %v5800_v31  ;;  %v5736_v36 = vmax.f32 %v5732_v19, 0.0 }
 0xd4e   :  { %v6059_v1 = vmul.f32 %v6057_v51, %v8265_v53  ;;  %v6060_v62 = vmul.f32 %v6057_v51, %v8272_v49  ;;  %6638 = vmatprep.subr.msk.bf16.mxu0 %vm184_vm7, %v5803_v32  ;;  %6640 = vmatprep.subr.msk.bf16.mxu1 %vm184_vm7, %v5805_v55  ;;  %v6064_v9 = vpop.permute.xlu1 %6063  ;;  %v5812_v2 = vsel %vm184_vm7, %v5802_v6, 0  ;;  %v6238_v37 = vpop.permute.xlu0 %6237  ;;  %v5738_v41 = vmax.f32 %v5734_v34, 0.0  ;;  %v6637_v53 = vld [vmem:[%s8445_s8 + $0x2] sm:$0x3] }
 0xd4f   :  { %v5741_v59 = vpack.c.bf16 %v5737_v54, %v5737_v54  ;;  %v5743_v10 = vpack.c.bf16 %v5739_v0, %v5739_v0  ;;  %v6071_v12 = vrot.slane %v6064_v9, %v7022_v52  ;;  %5824 = vmatpush1.bf16.msra.mxu0 %v5812_v2  ;;  %v5818_v13 = vsel %vm184_vm7, %v5804_v5, 0 }
 0xd50   :  { %5865 = vmatpush1.bf16.msra.mxu1 %v5818_v13  ;;  %v6245_v49 = vrot.slane %v6238_v37, %v7022_v52  ;;  %v5740_v11 = vpack.c.bf16 %v5736_v36, %v5736_v36  ;;  %v5742_v57 = vpack.c.bf16 %v5738_v41, %v5738_v41 }
 0xd51   :  { %v6073_v61 = vadd.f32 %v6071_v12, %v6059_v1  ;;  %v6074_v4 = vadd.f32 %v6071_v12, %v6060_v62  ;;  %6642 = vmatprep.subr.msk.bf16.mxu0 %vm184_vm7, %v5741_v59  ;;  %6644 = vmatprep.subr.msk.bf16.mxu1 %vm184_vm7, %v5743_v10 }
 0xd52   :  { %6639 = vmatmul.mubr.msk.bf16.vlgmr.msra.gmra.mrb[80].mxu0 %vm180_vm8, %v6637_v53  ;;  %v6252_v63 = vpop.permute.xlu1 %6251  ;;  %v5909_v58 = vsel %vm184_vm7, %v5740_v11, 0  ;;  %v5915_v3 = vsel %vm184_vm7, %v5742_v57, 0  ;;  %v6247_v20 = vmul.f32 %v8282_v14, %v6245_v49  ;;  %v6248_v50 = vmul.f32 %v8312_v44, %v6245_v49 }
 0xd53   :  { %v6075_v8 = vmax.f32 %v6073_v61, 0.0  ;;  %v6076_v15 = vmax.f32 %v6074_v4, 0.0  ;;  %6641 = vmatmul.mubr.msk.bf16.vlgmr.msra.gmra.mrb[80].mxu1 %vm180_vm8, %v6637_v53  ;;  %v6259_v56 = vrot.slane %v6252_v63, %v7022_v52  ;;  %5921 = vmatpush1.bf16.msra.mxu0 %v5909_v58 }
 0xd54   :  { %5962 = vmatpush1.bf16.msra.mxu1 %v5915_v3  ;;  %5952 = vmatprep.mubr.bf16.mxu0 %v6847_v22 }
 0xd55   :  { %v6079_v16 = vcombine.high %v6075_v8, %v6075_v8  ;;  %v6080_v18 = vcombine.high %v6076_v15, %v6076_v15  ;;  %5993 = vmatprep.mubr.bf16.mxu1 %v6847_v22  ;;  %v6261_v21 = vadd.f32 %v6259_v56, %v6247_v20  ;;  %v6262_v7 = vadd.f32 %v6259_v56, %v6248_v50 }
 0xd56   :  { %v6083_v52 = vpack.c.bf16 %v6075_v8, %v6075_v8  ;;  %v6085_v47 = vpack.c.bf16 %v6076_v15, %v6076_v15 }
 0xd57   :  { %v6084_v26 = vpack.c.bf16 %v6079_v16, %v6079_v16  ;;  %v6086_v17 = vpack.c.bf16 %v6080_v18, %v6080_v18  ;;  %v6263_v28 = vmax.f32 %v6261_v21, 0.0  ;;  %v6264_v24 = vmax.f32 %v6262_v7, 0.0 }
 0xd58   :  { %v6093_v40 = vsel %vm184_vm7, %v6083_v52, 0  ;;  %v6099_v33 = vsel %vm184_vm7, %v6085_v47, 0 }
 0xd59   :  { %6649 = vmatprep.subr.msk.bf16.mxu0 %vm184_vm7, %v6084_v26  ;;  %6651 = vmatprep.subr.msk.bf16.mxu1 %vm184_vm7, %v6086_v17  ;;  %v6267_v14 = vcombine.high %v6263_v28, %v6263_v28  ;;  %v6268_v44 = vcombine.high %v6264_v24, %v6264_v24  ;;  %v6271_v35 = vpack.c.bf16 %v6263_v28, %v6263_v28 }
 0xd5a   :  { %v6273_v42 = vpack.c.bf16 %v6264_v24, %v6264_v24 }
 0xd5b   :  { %v6272_v39 = vpack.c.bf16 %v6267_v14, %v6267_v14  ;;  %v6274_v60 = vpack.c.bf16 %v6268_v44, %v6268_v44  ;;  %v6281_v27 = vsel %vm184_vm7, %v6271_v35, 0 }
 0xd5c   :  { %v6287_v48 = vsel %vm184_vm7, %v6273_v42, 0 }
 0xd5e   :  { %6643 = vmatmul.mubr.msk.bf16.vlgmr.msra.gmra.mrb[80].mxu0 %vm180_vm8, %v5744_v23 }
 0xd5f   :  { %6645 = vmatmul.mubr.msk.bf16.vlgmr.msra.gmra.mrb[80].mxu1 %vm180_vm8, %v5744_v23  ;;  %6105 = vmatpush1.bf16.msra.mxu0 %v6093_v40 }
 0xd60   :  { %6146 = vmatpush1.bf16.msra.mxu1 %v6099_v33  ;;  %6656 = vmatprep.subr.msk.bf16.mxu0 %vm184_vm7, %v6272_v39 }
 0xd61   :  { %6658 = vmatprep.subr.msk.bf16.mxu1 %vm184_vm7, %v6274_v60  ;;  %6136 = vmatprep.mubr.bf16.mxu0 %v6847_v22 }
 0xd62   :  { %6177 = vmatprep.mubr.bf16.mxu1 %v6847_v22 }
 0xd6a   :  { %6650 = vmatmul.mubr.msk.bf16.vlgmr.msra.gmra.mrb[80].mxu0 %vm180_vm8, %v6648_v43 }
 0xd6b   :  { %6652 = vmatmul.mubr.msk.bf16.vlgmr.msra.gmra.mrb[80].mxu1 %vm180_vm8, %v6648_v43  ;;  %6293 = vmatpush1.bf16.msra.mxu0 %v6281_v27 }
 0xd6c   :  { %6334 = vmatpush1.bf16.msra.mxu1 %v6287_v48  ;;  %6324 = vmatprep.mubr.bf16.mxu0 %v6847_v22 }
 0xd6d   :  { %6365 = vmatprep.mubr.bf16.mxu1 %v6847_v22 }
 0xd76   :  { %6657 = vmatmul.mubr.msk.bf16.vlgmr.msra.gmra.mrb[80].mxu0 %vm180_vm8, %v6655_v38 }
 0xd77   :  { %6659 = vmatmul.mubr.msk.bf16.vlgmr.msra.gmra.mrb[80].mxu1 %vm180_vm8, %v6655_v38 }
 0xe49   :  { %v6326_v45 = vpop.f32.mrb[80].mxu0 }
 0xe4a   :  { %v6367_v29 = vpop.f32.mrb[80].mxu1  ;;  %v6328_v30 = vpop.f32.mrb[81].mxu0 }
 0xe4b   :  { %v6382_v31 = vcombine.low %v6326_v45, %v6328_v30  ;;  %v6369_v19 = vpop.f32.mrb[81].mxu1  ;;  %v6330_v46 = vpop.f32.mrb[82].mxu0 }
 0xe4c   :  { %v6383_v34 = vcombine.low %v6367_v29, %v6369_v19  ;;  %v6371_v25 = vpop.f32.mrb[82].mxu1  ;;  %v6331_v32 = vpop.f32.mrb[83].mxu0 }
 0xe4d   :  { %6386 = vst [vmem:[%s8446_s9] sm:$0xff] %v6382_v31  ;;  %v6372_v22 = vpop.f32.mrb[83].mxu1 }
 0xe4e   :  { %6387 = vst [vmem:[%s8446_s9 + $0x8] sm:$0xff] %v6383_v34 }

</bundles_post_ra>
